<compile_context>
chip_gen: v7x
topology: tpu7x:2x2x1
jax: 0.10.0
libtpu: 0.0.40
codegen_flags: <defaults>
</compile_context>

<pallas_src>
import jax
import jax.numpy as jnp
from jax.experimental import pallas as pl
from jax.experimental.pallas import tpu as pltpu


def _round_up(x, m):
    return ((x + m - 1) // m) * m


def _fused_edge_mlps_kernel(x_ref,
                            w1a_ref, b1a_ref, w2a_ref, b2a_ref,
                            w1b_ref, b1b_ref, w2b_ref, b2b_ref,
                            oa_ref, ob_ref):
    """One row tile of edge_attr through both edge MLPs (shared x tile)."""
    x = x_ref[...]                                           # [T, 1] f32
    # --- EdgeFeatureMLP1: Linear(1->H) -> ReLU -> Linear(H->D) ---
    # d_in == 1: first "matmul" is a rank-1 broadcast multiply on the VPU.
    h = jnp.maximum(x * w1a_ref[...] + b1a_ref[...], 0.0)    # [T, H]
    oa = jnp.dot(h, w2a_ref[...], preferred_element_type=jnp.float32) + b2a_ref[...]
    oa_ref[...] = oa.astype(oa_ref.dtype)
    # --- EdgeFeatureMLP2 on the same x tile ---
    h = jnp.maximum(x * w1b_ref[...] + b1b_ref[...], 0.0)
    ob = jnp.dot(h, w2b_ref[...], preferred_element_type=jnp.float32) + b2b_ref[...]
    ob_ref[...] = ob.astype(ob_ref.dtype)


def fused_edge_mlps(edge_attr, mlp1_layers, mlp2_layers, *, tile_n=512):
    """edge_attr [E,1] -> (EdgeFeatureMLP1(edge_attr), EdgeFeatureMLP2(edge_attr)).

    Each mlp*_layers is [(W1 [1,H], b1 [H]), (W2 [H,D], b2 [D])]
    (nn.Linear weights stored transposed as [in, out]).
    """
    e, d_in = edge_attr.shape
    assert d_in == 1, "edge MLPs take scalar distances"
    (w1a, b1a), (w2a, b2a) = mlp1_layers
    (w1b, b1b), (w2b, b2b) = mlp2_layers
    h_a, d_a = w2a.shape
    h_b, d_b = w2b.shape

    # Row tile: multiple of 8 sublanes; keep >= 2 tiles when possible so the
    # "parallel" axis can shard across v7x's two TensorCores.
    tile_n = max(8, min(tile_n, _round_up(pl.cdiv(e, 2), 8)))
    num_tiles = pl.cdiv(e, tile_n)       # ragged last tile handled by Pallas

    x = edge_attr.astype(jnp.float32)

    def prep(w1, b1, w2, b2, h, d):
        return (w1.reshape(1, h).astype(jnp.float32),
                b1.reshape(1, h).astype(jnp.float32),
                w2.astype(jnp.float32),
                b2.reshape(1, d).astype(jnp.float32))

    ops_a = prep(w1a, b1a, w2a, b2a, h_a, d_a)
    ops_b = prep(w1b, b1b, w2b, b2b, h_b, d_b)

    const = lambda i: (0, 0)             # weights/biases VMEM-resident across tiles
    in_specs = [pl.BlockSpec((tile_n, 1), lambda i: (i, 0)),
                pl.BlockSpec((1, h_a), const), pl.BlockSpec((1, h_a), const),
                pl.BlockSpec((h_a, d_a), const), pl.BlockSpec((1, d_a), const),
                pl.BlockSpec((1, h_b), const), pl.BlockSpec((1, h_b), const),
                pl.BlockSpec((h_b, d_b), const), pl.BlockSpec((1, d_b), const)]
    out_specs = (pl.BlockSpec((tile_n, d_a), lambda i: (i, 0)),
                 pl.BlockSpec((tile_n, d_b), lambda i: (i, 0)))

    # Advisory cost: true (unpadded) work.
    flops = 2 * e * (h_a + h_a * d_a + h_b + h_b * d_b)
    bytes_accessed = (e * 4 + e * (d_a + d_b) * 4
                      + sum(int(a.size) * 4 for a in ops_a + ops_b))

    out_a, out_b = pl.pallas_call(
        _fused_edge_mlps_kernel,
        out_shape=(jax.ShapeDtypeStruct((e, d_a), jnp.float32),
                   jax.ShapeDtypeStruct((e, d_b), jnp.float32)),
        grid=(num_tiles,),
        in_specs=in_specs,
        out_specs=out_specs,
        compiler_params=pltpu.CompilerParams(
            dimension_semantics=("parallel",),     # independent row tiles
            vmem_limit_bytes=8 * 1024 * 1024),
        cost_estimate=pl.CostEstimate(flops=int(flops), transcendentals=0,
                                      bytes_accessed=int(bytes_accessed)),
    )(x, *ops_a, *ops_b)
    return out_a, out_b


def edge_mlp_reference(x, layers):
    """Pure-JAX f32 reference for one Linear -> ReLU -> Linear MLP."""
    (w1, b1), (w2, b2) = layers
    h = jnp.maximum(x @ w1 + b1.reshape(1, -1), 0.0)
    return h @ w2 + b2.reshape(1, -1)


def mapping_layer(pooled, layers):
    """MappingLayer: Linear->ReLU->Linear->ReLU->Linear->exp, in plain XLA.

    Only ~set_size (=5) rows ever reach this layer; a pallas_call launch plus
    pad/slice would dominate the tens-of-ns of actual matmul work (per review).
    """
    h = pooled
    for i, (w, b) in enumerate(layers):
        h = h @ w + b.reshape(1, -1)
        if i < len(layers) - 1:
            h = jnp.maximum(h, 0.0)
    return jnp.exp(h)                        # expact()


def init_linear(key, d_in, d_out, dtype=jnp.float32):
    """nn.Linear-style init; weight stored transposed as [in, out]."""
    kw, kb = jax.random.split(key)
    lim = 1.0 / jnp.sqrt(d_in)
    w = jax.random.uniform(kw, (d_in, d_out), dtype, -lim, lim)
    b = jax.random.uniform(kb, (d_out,), dtype, -lim, lim)
    return w, b


if __name__ == "__main__":
    key = jax.random.PRNGKey(0)
    (k_x, k_e1a, k_e2a, k_e1b, k_e2b,
     k_pool, k_m1, k_m2, k_m3) = jax.random.split(key, 9)

    # ---- EdgeFeatureMLP1 / EdgeFeatureMLP2 over edge_attr [E, 1], fused ----
    n_edges = 1000                      # deliberately not a multiple of the tile
    edge_hidden_dim = 128
    edge_output_dim = 10
    threshold = 0.4
    edge_attr = jax.random.uniform(k_x, (n_edges, 1), jnp.float32, 0.01, threshold)
    mlp1 = [init_linear(k_e1a, 1, edge_hidden_dim),
            init_linear(k_e2a, edge_hidden_dim, edge_output_dim)]
    mlp2 = [init_linear(k_e1b, 1, edge_hidden_dim),
            init_linear(k_e2b, edge_hidden_dim, edge_output_dim)]

    out1, out2 = jax.block_until_ready(fused_edge_mlps(edge_attr, mlp1, mlp2))
    ref1 = edge_mlp_reference(edge_attr, mlp1)
    ref2 = edge_mlp_reference(edge_attr, mlp2)
    assert out1.shape == (n_edges, edge_output_dim)
    assert out2.shape == (n_edges, edge_output_dim)
    assert jnp.allclose(out1, ref1, atol=2e-3, rtol=2e-3)
    assert jnp.allclose(out2, ref2, atol=2e-3, rtol=2e-3)

    # ---- MappingLayer over pooled [set_size, hidden_dim] (plain XLA) ----
    set_size = 5
    hidden_dim = 20
    mapping_hidden_dim = 128
    final_output_dim = 2
    pooled = jax.random.normal(k_pool, (set_size, hidden_dim), jnp.float32)
    m_layers = [init_linear(k_m1, hidden_dim, mapping_hidden_dim),
                init_linear(k_m2, mapping_hidden_dim, mapping_hidden_dim),
                init_linear(k_m3, mapping_hidden_dim, final_output_dim)]
    map_out = jax.block_until_ready(mapping_layer(pooled, m_layers))
    assert map_out.shape == (set_size, final_output_dim)
    assert bool(jnp.all(jnp.isfinite(map_out)))

    # TODO(synk): simu_graph / Matérn point-process graph construction, the
    # per-node neighbor loops with w_tilde caching, one_hot_encode_distance,
    # edge-index coalesce and the ragged global_mean_pool in CoucheinitialeGNN /
    # CouchesintermediairesGNN are data-dependent host-side Python with no clean
    # Pallas equivalent; only the dense MLP compute of DeepSetsModel is kernelized.
    print("KERNEL_OK")
</pallas_src>

<mosaic_0001>
module attributes {stable_mosaic.version = 11 : i64} {
  func.func @_fused_edge_mlps_kernel(%arg0: i32, %arg1: memref<504x1xf32, #tpu.memory_space<vmem>>, %arg2: memref<1x128xf32, #tpu.memory_space<vmem>>, %arg3: memref<1x128xf32, #tpu.memory_space<vmem>>, %arg4: memref<128x10xf32, #tpu.memory_space<vmem>>, %arg5: memref<1x10xf32, #tpu.memory_space<vmem>>, %arg6: memref<1x128xf32, #tpu.memory_space<vmem>>, %arg7: memref<1x128xf32, #tpu.memory_space<vmem>>, %arg8: memref<128x10xf32, #tpu.memory_space<vmem>>, %arg9: memref<1x10xf32, #tpu.memory_space<vmem>>, %arg10: memref<504x10xf32, #tpu.memory_space<vmem>>, %arg11: memref<504x10xf32, #tpu.memory_space<vmem>>) attributes {dimension_semantics = [#tpu.dimension_semantics<parallel>], iteration_bounds = array<i64: 2>, scalar_prefetch = 0 : i64, scratch_operands = 0 : i64, tpu.core_type = #tpu.core_type<tc>, window_params = [{transform_indices = @transform_0, window_bounds = array<i64: 504, 1>}, {pipeline_mode = #tpu.pipeline_mode<synchronous>, transform_indices = @transform_1, window_bounds = array<i64: 1, 128>}, {pipeline_mode = #tpu.pipeline_mode<synchronous>, transform_indices = @transform_2, window_bounds = array<i64: 1, 128>}, {pipeline_mode = #tpu.pipeline_mode<synchronous>, transform_indices = @transform_3, window_bounds = array<i64: 128, 10>}, {pipeline_mode = #tpu.pipeline_mode<synchronous>, transform_indices = @transform_4, window_bounds = array<i64: 1, 10>}, {pipeline_mode = #tpu.pipeline_mode<synchronous>, transform_indices = @transform_5, window_bounds = array<i64: 1, 128>}, {pipeline_mode = #tpu.pipeline_mode<synchronous>, transform_indices = @transform_6, window_bounds = array<i64: 1, 128>}, {pipeline_mode = #tpu.pipeline_mode<synchronous>, transform_indices = @transform_7, window_bounds = array<i64: 128, 10>}, {pipeline_mode = #tpu.pipeline_mode<synchronous>, transform_indices = @transform_8, window_bounds = array<i64: 1, 10>}, {transform_indices = @transform_9, window_bounds = array<i64: 504, 10>}, {transform_indices = @transform_10, window_bounds = array<i64: 504, 10>}]} {
    %c0 = arith.constant 0 : index
    %c0_0 = arith.constant 0 : index
    %0 = vector.load %arg1[%c0, %c0_0] : memref<504x1xf32, #tpu.memory_space<vmem>>, vector<504x1xf32>
    %c0_1 = arith.constant 0 : index
    %c0_2 = arith.constant 0 : index
    %1 = vector.load %arg2[%c0_1, %c0_2] : memref<1x128xf32, #tpu.memory_space<vmem>>, vector<1x128xf32>
    %2 = vector.broadcast %0 : vector<504x1xf32> to vector<504x128xf32>
    %3 = vector.broadcast %1 : vector<1x128xf32> to vector<504x128xf32>
    %4 = arith.mulf %2, %3 : vector<504x128xf32>
    %c0_3 = arith.constant 0 : index
    %c0_4 = arith.constant 0 : index
    %5 = vector.load %arg3[%c0_3, %c0_4] : memref<1x128xf32, #tpu.memory_space<vmem>>, vector<1x128xf32>
    %6 = vector.broadcast %5 : vector<1x128xf32> to vector<504x128xf32>
    %7 = arith.addf %4, %6 : vector<504x128xf32>
    %cst = arith.constant 0.000000e+00 : f32
    %8 = vector.broadcast %cst : f32 to vector<504x128xf32>
    %9 = arith.maximumf %7, %8 : vector<504x128xf32>
    %c0_5 = arith.constant 0 : index
    %c0_6 = arith.constant 0 : index
    %10 = vector.load %arg4[%c0_5, %c0_6] : memref<128x10xf32, #tpu.memory_space<vmem>>, vector<128x10xf32>
    %cst_7 = arith.constant dense<0.000000e+00> : vector<504x10xf32>
    %11 = tpu.matmul %9, %10, %cst_7 {dimension_numbers = #tpu.dot_dimension_numbers<[1], [0], [0], [1], [0, 0, 1, 1], [], []>} : vector<504x128xf32>, vector<128x10xf32>, vector<504x10xf32> -> vector<504x10xf32>
    %c0_8 = arith.constant 0 : index
    %c0_9 = arith.constant 0 : index
    %12 = vector.load %arg5[%c0_8, %c0_9] : memref<1x10xf32, #tpu.memory_space<vmem>>, vector<1x10xf32>
    %13 = vector.broadcast %12 : vector<1x10xf32> to vector<504x10xf32>
    %14 = arith.addf %11, %13 : vector<504x10xf32>
    %c0_10 = arith.constant 0 : index
    %c0_11 = arith.constant 0 : index
    %15 = vector.load %arg10[%c0_10, %c0_11] : memref<504x10xf32, #tpu.memory_space<vmem>>, vector<504x10xf32>
    tpu.vector_store %arg10[%c0_10, %c0_11], %14 {strides = array<i32>} : memref<504x10xf32, #tpu.memory_space<vmem>>, vector<504x10xf32>,
    %c0_12 = arith.constant 0 : index
    %c0_13 = arith.constant 0 : index
    %16 = vector.load %arg6[%c0_12, %c0_13] : memref<1x128xf32, #tpu.memory_space<vmem>>, vector<1x128xf32>
    %17 = vector.broadcast %0 : vector<504x1xf32> to vector<504x128xf32>
    %18 = vector.broadcast %16 : vector<1x128xf32> to vector<504x128xf32>
    %19 = arith.mulf %17, %18 : vector<504x128xf32>
    %c0_14 = arith.constant 0 : index
    %c0_15 = arith.constant 0 : index
    %20 = vector.load %arg7[%c0_14, %c0_15] : memref<1x128xf32, #tpu.memory_space<vmem>>, vector<1x128xf32>
    %21 = vector.broadcast %20 : vector<1x128xf32> to vector<504x128xf32>
    %22 = arith.addf %19, %21 : vector<504x128xf32>
    %cst_16 = arith.constant 0.000000e+00 : f32
    %23 = vector.broadcast %cst_16 : f32 to vector<504x128xf32>
    %24 = arith.maximumf %22, %23 : vector<504x128xf32>
    %c0_17 = arith.constant 0 : index
    %c0_18 = arith.constant 0 : index
    %25 = vector.load %arg8[%c0_17, %c0_18] : memref<128x10xf32, #tpu.memory_space<vmem>>, vector<128x10xf32>
    %cst_19 = arith.constant dense<0.000000e+00> : vector<504x10xf32>
    %26 = tpu.matmul %24, %25, %cst_19 {dimension_numbers = #tpu.dot_dimension_numbers<[1], [0], [0], [1], [0, 0, 1, 1], [], []>} : vector<504x128xf32>, vector<128x10xf32>, vector<504x10xf32> -> vector<504x10xf32>
    %c0_20 = arith.constant 0 : index
    %c0_21 = arith.constant 0 : index
    %27 = vector.load %arg9[%c0_20, %c0_21] : memref<1x10xf32, #tpu.memory_space<vmem>>, vector<1x10xf32>
    %28 = vector.broadcast %27 : vector<1x10xf32> to vector<504x10xf32>
    %29 = arith.addf %26, %28 : vector<504x10xf32>
    %c0_22 = arith.constant 0 : index
    %c0_23 = arith.constant 0 : index
    %30 = vector.load %arg11[%c0_22, %c0_23] : memref<504x10xf32, #tpu.memory_space<vmem>>, vector<504x10xf32>
    tpu.vector_store %arg11[%c0_22, %c0_23], %29 {strides = array<i32>} : memref<504x10xf32, #tpu.memory_space<vmem>>, vector<504x10xf32>,
    return
  }
  func.func @transform_0(%arg0: i32) -> (i32, i32) {
    %c0_i32 = arith.constant 0 : i32
    %c0_i32_0 = arith.constant 0 : i32
    return %arg0, %c0_i32 : i32, i32
  }
  func.func @transform_1(%arg0: i32) -> (i32, i32) {
    %c0_i32 = arith.constant 0 : i32
    %c0_i32_0 = arith.constant 0 : i32
    %c0_i32_1 = arith.constant 0 : i32
    return %c0_i32, %c0_i32_0 : i32, i32
  }
  func.func @transform_2(%arg0: i32) -> (i32, i32) {
    %c0_i32 = arith.constant 0 : i32
    %c0_i32_0 = arith.constant 0 : i32
    %c0_i32_1 = arith.constant 0 : i32
    return %c0_i32, %c0_i32_0 : i32, i32
  }
  func.func @transform_3(%arg0: i32) -> (i32, i32) {
    %c0_i32 = arith.constant 0 : i32
    %c0_i32_0 = arith.constant 0 : i32
    %c0_i32_1 = arith.constant 0 : i32
    return %c0_i32, %c0_i32_0 : i32, i32
  }
  func.func @transform_4(%arg0: i32) -> (i32, i32) {
    %c0_i32 = arith.constant 0 : i32
    %c0_i32_0 = arith.constant 0 : i32
    %c0_i32_1 = arith.constant 0 : i32
    return %c0_i32, %c0_i32_0 : i32, i32
  }
  func.func @transform_5(%arg0: i32) -> (i32, i32) {
    %c0_i32 = arith.constant 0 : i32
    %c0_i32_0 = arith.constant 0 : i32
    %c0_i32_1 = arith.constant 0 : i32
    return %c0_i32, %c0_i32_0 : i32, i32
  }
  func.func @transform_6(%arg0: i32) -> (i32, i32) {
    %c0_i32 = arith.constant 0 : i32
    %c0_i32_0 = arith.constant 0 : i32
    %c0_i32_1 = arith.constant 0 : i32
    return %c0_i32, %c0_i32_0 : i32, i32
  }
  func.func @transform_7(%arg0: i32) -> (i32, i32) {
    %c0_i32 = arith.constant 0 : i32
    %c0_i32_0 = arith.constant 0 : i32
    %c0_i32_1 = arith.constant 0 : i32
    return %c0_i32, %c0_i32_0 : i32, i32
  }
  func.func @transform_8(%arg0: i32) -> (i32, i32) {
    %c0_i32 = arith.constant 0 : i32
    %c0_i32_0 = arith.constant 0 : i32
    %c0_i32_1 = arith.constant 0 : i32
    return %c0_i32, %c0_i32_0 : i32, i32
  }
  func.func @transform_9(%arg0: i32) -> (i32, i32) {
    %c0_i32 = arith.constant 0 : i32
    %c0_i32_0 = arith.constant 0 : i32
    return %arg0, %c0_i32 : i32, i32
  }
  func.func @transform_10(%arg0: i32) -> (i32, i32) {
    %c0_i32 = arith.constant 0 : i32
    %c0_i32_0 = arith.constant 0 : i32
    return %arg0, %c0_i32 : i32, i32
  }
}

</mosaic_0001>

<bundles_post_ra>
// kernel: tpu_custom_call.1
= control target key start
LH: loop header
LB: loop body
LE: loop exit
PB: predicated region body
PF: predicated region fallthrough
CT: control target
= control target key end

     0   :  { %s5639_s0 = inlined_call_operand.vmem [shape: f32[1000,1], index: 0, kind: input, shape index: {}]   ;;  %s5640_s1 = inlined_call_operand.vmem [shape: f32[1,128], index: 1, kind: input, shape index: {}]   ;;  %s5641_s2 = inlined_call_operand.vmem [shape: f32[1,128], index: 2, kind: input, shape index: {}]   ;;  %s5642_s3 = inlined_call_operand.vmem [shape: f32[128,10], index: 3, kind: input, shape index: {}]   ;;  %s5643_s4 = inlined_call_operand.vmem [shape: f32[1,10], index: 4, kind: input, shape index: {}]   ;;  %s5644_s5 = inlined_call_operand.vmem [shape: f32[1,128], index: 5, kind: input, shape index: {}]   ;;  %s5645_s6 = inlined_call_operand.vmem [shape: f32[1,128], index: 6, kind: input, shape index: {}]   ;;  %s5646_s7 = inlined_call_operand.vmem [shape: f32[128,10], index: 7, kind: input, shape index: {}]   ;;  %s5647_s8 = inlined_call_operand.vmem [shape: f32[1,10], index: 8, kind: input, shape index: {}]   ;;  %s5648_s9 = inlined_call_operand.vmem [shape: f32[1000,10], index: 9, kind: output, shape index: {0}]   ;;  %s5649_s10 = inlined_call_operand.vmem [shape: f32[1000,10], index: 10, kind: output, shape index: {1}]  }
   0x1   :  { %5650 = sst [smem:[#allocation4_spill]] %s5639_s0 }
   0x2   :  { %5651 = sst [smem:[#allocation5_spill]] %s5640_s1 }
   0x3   :  { %5652 = sst [smem:[#allocation6_spill]] %s5641_s2 }
   0x4   :  { %5653 = sst [smem:[#allocation7_spill]] %s5642_s3 }
   0x5   :  { %s4086_s13 = smov 0   ;;  %s4088_s14 = smov 0  }
   0x6   :  { %s4090_s15 = smov 0  }
   0x7 LB: > { %s4099_s16 = sadd.s32 4294967295, %s3961_s15   ;;  %s4101_s17 = sadd.s32 1, %s3961_s15   ;;  %s3961_s15 = sphi %s4090_s15, %s5671_s15   ;;  %s3957_s14 = sphi %s4088_s14, %s5670_s14   ;;  %s3953_s13 = sphi %s4086_s13, %s5669_s13  }
   0x8   : > { %s219_s18 = ssub.s32 %s3961_s15, %s4101_s17  ;;  %s222_s19 = sadd.s32 1, %s3957_s14 }
   0x9   : > { %p220_p0 = scmp.eq.s32.totalorder %s219_s18, 0  ;;  %p232_p1 = scmp.ne.s32.totalorder %s3957_s14, %s3953_s13 }
   0xa   : > { %p233_p2 = scmp.eq.s32.totalorder %s4099_s16, 1  ;;  %p3020_p3 = scmp.ge.s32.totalorder %s3961_s15, 1 }
   0xb   : > { %s4109_s20 = scalar_select %p220_p0, %s3957_s14, %s222_s19  }
   0xc   : > { %p4111_p4 = por %p233_p2, %p232_p1  ;;  %p324_p5 = scmp.lt.s32.totalorder %s3961_s15, 3 }
   0xe   : > { %p325_p6 = pnand %p3020_p3, %p324_p5 }
   0xf   : > { %s4116_s22 = smul.u32 (!%p325_p6), 63, %s4099_s16  ;;  %s5655_s3 = sld [smem:[#allocation7_spill]] (!%p325_p6)  ;;  %v1644_v2 = vld [vmem:[%s5646_s7] sm:$0xff] (!%p325_p6)  ;;  %v4027_v3 = vmov (!%p325_p6), 0   ;;  %v1645_v5 = vld [vmem:[%s5646_s7 + $0x8] sm:$0xff] (!%p325_p6)  ;;  %v4028_v8 = vmov (!%p325_p6), 0.0|0.0  }
  0x10   : > { %328 = sbr.rel (%p325_p6) target bundleno = 801 (0x321), region = 56  ;;  %3860 = vset.pattern.permute.xlu1 (!%p325_p6), %v4027_v3  ;;  %3859 = vset.pattern.permute.xlu0 (!%p325_p6), %v4027_v3  ;;  %v3677_v9 = vpack.c.bf16 (!%p325_p6), %v1645_v5, %v1644_v2  ;;  %v1646_v10 = vld [vmem:[%s5646_s7 + $0x10] sm:$0xff] (!%p325_p6)  ;;  %v1647_v11 = vld [vmem:[%s5646_s7 + $0x18] sm:$0xff] (!%p325_p6)  ;;  %v1648_v16 = vld [vmem:[%s5646_s7 + $0x20] sm:$0xff] (!%p325_p6)  ;;  %s5656_s0 = sld [smem:[#allocation4_spill]] (!%p325_p6)  ;;  %vm4029_vm0 = vmmov (!%p325_p6), 0  }
  0x11   : > { %p374_p7 = scmp.lt.s32.totalorder (!%p325_p6), %s4116_s22, 124  ;;  %3652 = vmatprep.subr.bf16.mxu0 (!%p325_p6), %v4028_v8  ;;  %3676 = vmatprep.subr.bf16.mxu1 (!%p325_p6), %v4028_v8  ;;  %v3680_v13 = vpack.c.bf16 (!%p325_p6), %v1647_v11, %v1646_v10  ;;  %v1649_v17 = vld [vmem:[%s5646_s7 + $0x28] sm:$0xff] (!%p325_p6)  ;;  %v1650_v24 = vld [vmem:[%s5646_s7 + $0x30] sm:$0xff] (!%p325_p6)  ;;  %v1651_v25 = vld [vmem:[%s5646_s7 + $0x38] sm:$0xff] (!%p325_p6)  ;;  %v4030_v36 = vmov (!%p325_p6), 0.0   ;;  %s5657_s1 = sld [smem:[#allocation5_spill]] (!%p325_p6) }
  0x12   : > { %3678 = vmatpush3.bf16.msra.mxu1 (!%p325_p6), %v3677_v9  ;;  %v3683_v22 = vpack.c.bf16 (!%p325_p6), %v1649_v17, %v1648_v16  ;;  %v3686_v29 = vpack.c.bf16 (!%p325_p6), %v1651_v25, %v1650_v24  ;;  %v1652_v32 = vld [vmem:[%s5646_s7 + $0x40] sm:$0xff] (!%p325_p6)  ;;  %v1653_v33 = vld [vmem:[%s5646_s7 + $0x48] sm:$0xff] (!%p325_p6)  ;;  %3242 = vmatprep.mubr.msk.f32.mxu0 (!%p325_p6), %vm4029_vm0, %v4030_v36  ;;  %v1654_v41 = vld [vmem:[%s5646_s7 + $0x50] sm:$0xff] (!%p325_p6)  ;;  %s5658_s2 = sld [smem:[#allocation6_spill]] (!%p325_p6)  ;;  %s360_s15 = sand.u32 (!%p325_p6), 1, %s3953_s13   ;;  %vm1377_vm1 = vcmask (!%p325_p6), 80896  }
  0x13   : > { %3679 = vmatprep.subr.bf16.mxu1 (!%p325_p6), %v4028_v8  ;;  %3463 = vmatprep.mubr.msk.f32.mxu1 (!%p325_p6), %vm4029_vm0, %v4030_v36  ;;  %v3689_v38 = vpack.c.bf16 (!%p325_p6), %v1653_v33, %v1652_v32  ;;  %v1655_v42 = vld [vmem:[%s5646_s7 + $0x58] sm:$0xff] (!%p325_p6)  ;;  %v1656_v53 = vld [vmem:[%s5646_s7 + $0x60] sm:$0xff] (!%p325_p6)  ;;  %v1657_v57 = vld [vmem:[%s5646_s7 + $0x68] sm:$0xff] (!%p325_p6)  ;;  %s4771_s18 = smul.u32 (!%p325_p6), 504, %s360_s15 }
  0x14   : > { %v3692_v46 = vpack.c.bf16 (!%p325_p6), %v1655_v42, %v1654_v41  ;;  %v3695_v58 = vpack.c.bf16 (!%p325_p6), %v1657_v57, %v1656_v53  ;;  %v1658_v61 = vld [vmem:[%s5646_s7 + $0x70] sm:$0xff] (!%p325_p6)  ;;  %v1659_v62 = vld [vmem:[%s5646_s7 + $0x78] sm:$0xff] (!%p325_p6) }
  0x15   : > { %v974_v0 = vld [vmem:[%s5655_s3] sm:$0xff] (!%p325_p6)  ;;  %v975_v1 = vld [vmem:[%s5655_s3 + $0x8] sm:$0xff] (!%p325_p6)  ;;  %v976_v6 = vld [vmem:[%s5655_s3 + $0x10] sm:$0xff] (!%p325_p6)  ;;  %v3698_v2 = vpack.c.bf16 (!%p325_p6), %v1659_v62, %v1658_v61  ;;  %s4807_s27 = scalar_lea.vmem (!%p325_p6), [#allocation3], %s4771_s18  }
  0x16   : > { %v3653_v4 = vpack.c.bf16 (!%p325_p6), %v975_v1, %v974_v0  ;;  %v977_v7 = vld [vmem:[%s5655_s3 + $0x18] sm:$0xff] (!%p325_p6)  ;;  %v978_v14 = vld [vmem:[%s5655_s3 + $0x20] sm:$0xff] (!%p325_p6)  ;;  %v979_v15 = vld [vmem:[%s5655_s3 + $0x28] sm:$0xff] (!%p325_p6)  ;;  %3681 = vmatpush3.bf16.msra.mxu1 (!%p325_p6), %v3680_v13 }
  0x17   : > { %v3656_v12 = vpack.c.bf16 %v977_v7, %v976_v6  ;;  %s375_s26 = scalar_select %p374_p7, %s4116_s22, 124  ;;  %v3659_v18 = vpack.c.bf16 %v979_v15, %v978_v14  ;;  %v980_v19 = vld [vmem:[%s5655_s3 + $0x30] sm:$0xff]  ;;  %v981_v23 = vld [vmem:[%s5655_s3 + $0x38] sm:$0xff]  ;;  %3682 = vmatprep.subr.bf16.mxu1 %v4028_v8  ;;  %v982_v30 = vld [vmem:[%s5655_s3 + $0x40] sm:$0xff] }
  0x18   : > { %3654 = vmatpush3.bf16.msra.mxu0 %v3653_v4  ;;  %v3662_v28 = vpack.c.bf16 %v981_v23, %v980_v19  ;;  %v983_v31 = vld [vmem:[%s5655_s3 + $0x48] sm:$0xff]  ;;  %v984_v39 = vld [vmem:[%s5655_s3 + $0x50] sm:$0xff]  ;;  %v985_v40 = vld [vmem:[%s5655_s3 + $0x58] sm:$0xff]  ;;  %s2122_s11 = ssub.s32 (%p4111_p4), 125, %s4116_s22  ;;  %s3050_s12 = smul.u32 (%p4111_p4), 504, %s4099_s16 }
  0x19   : > { %3655 = vmatprep.subr.bf16.mxu0 %v4028_v8  ;;  %s3021_s19 = sshll.u32 %s375_s26, 3  ;;  %v3665_v37 = vpack.c.bf16 %v983_v31, %v982_v30  ;;  %v3668_v45 = vpack.c.bf16 %v985_v40, %v984_v39  ;;  %v986_v51 = vld [vmem:[%s5655_s3 + $0x60] sm:$0xff]  ;;  %v987_v52 = vld [vmem:[%s5655_s3 + $0x68] sm:$0xff]  ;;  %v988_v59 = vld [vmem:[%s5655_s3 + $0x70] sm:$0xff]  ;;  %p2123_p8 = scmp.lt.s32.totalorder (%p4111_p4), %s2122_s11, 63 }
  0x1a   : > { %s4163_s25 = scalar_lea.vmem %s5656_s0, %s3021_s19  ;;  %3684 = vmatpush3.bf16.msra.mxu1 %v3683_v22  ;;  %v3671_v56 = vpack.c.bf16 %v987_v52, %v986_v51  ;;  %v989_v60 = vld [vmem:[%s5655_s3 + $0x78] sm:$0xff]  ;;  %v4307_v51 = vld [vmem:[%s5657_s1] ss:$0 sm:$0xff]  ;;  %s5258_s13 = scalar_lea.vmem (%p4111_p4), %s5648_s9, %s3050_s12  }
  0x1b   : > { %v395_v20 = vld [vmem:[%s4163_s25 + $0x10] sm:$0xff]  ;;  %v393_v21 = vld [vmem:[%s4163_s25] sm:$0xff]  ;;  %v396_v26 = vld [vmem:[%s4163_s25 + $0x18] sm:$0xff]  ;;  %3685 = vmatprep.subr.bf16.mxu1 %v4028_v8  ;;  %v3674_v63 = vpack.c.bf16 %v989_v60, %v988_v59 }
  0x1c   : > { %3657 = vmatpush3.bf16.msra.mxu0 %v3656_v12  ;;  %469 = vperm.xlu1 %3860, %v395_v20   ;;  %v394_v27 = vld [vmem:[%s4163_s25 + $0x8] sm:$0xff]  ;;  %v397_v35 = vld [vmem:[%s4163_s25 + $0x20] sm:$0xff]  ;;  %v400_v43 = vld [vmem:[%s4163_s25 + $0x38] sm:$0xff] }
  0x1d   : > { %3658 = vmatprep.subr.bf16.mxu0 %v4028_v8  ;;  %459 = vperm.xlu0 %3859, %v393_v21   ;;  %v398_v34 = vld [vmem:[%s4163_s25 + $0x28] sm:$0xff]  ;;  %v399_v44 = vld [vmem:[%s4163_s25 + $0x30] sm:$0xff]  ;;  %v401_v48 = vld [vmem:[%s4163_s25 + $0x40] sm:$0xff] }
  0x1e   : > { %3687 = vmatpush3.bf16.msra.mxu1 %v3686_v29  ;;  %v402_v47 = vld [vmem:[%s4163_s25 + $0x48] sm:$0xff]  ;;  %v404_v49 = vld [vmem:[%s4163_s25 + $0x58] sm:$0xff]  ;;  %v403_v50 = vld [vmem:[%s4163_s25 + $0x50] sm:$0xff] }
  0x1f   : > { %3688 = vmatprep.subr.bf16.mxu1 %v4028_v8  ;;  %v406_v54 = vld [vmem:[%s4163_s25 + $0x68] sm:$0xff]  ;;  %v405_v55 = vld [vmem:[%s4163_s25 + $0x60] sm:$0xff]  ;;  %v408_v0 = vld [vmem:[%s4163_s25 + $0x78] sm:$0xff] }
  0x20   : > { %3660 = vmatpush3.bf16.msra.mxu0 %v3659_v18  ;;  %474 = vperm.xlu1 %3860, %v396_v26   ;;  %v407_v1 = vld [vmem:[%s4163_s25 + $0x70] sm:$0xff]  ;;  %v410_v3 = vld [vmem:[%s4163_s25 + $0x88] sm:$0xff]  ;;  %v409_v4 = vld [vmem:[%s4163_s25 + $0x80] sm:$0xff] }
  0x21   : > { %3661 = vmatprep.subr.bf16.mxu0 %v4028_v8  ;;  %464 = vperm.xlu0 %3859, %v394_v27   ;;  %v412_v5 = vld [vmem:[%s4163_s25 + $0x98] sm:$0xff]  ;;  %v411_v6 = vld [vmem:[%s4163_s25 + $0x90] sm:$0xff]  ;;  %v414_v7 = vld [vmem:[%s4163_s25 + $0xa8] sm:$0xff] }
  0x22   : > { %3690 = vmatpush3.bf16.msra.mxu1 %v3689_v38  ;;  %v416_v9 = vld [vmem:[%s4163_s25 + $0xb8] sm:$0xff]  ;;  %v415_v10 = vld [vmem:[%s4163_s25 + $0xb0] sm:$0xff]  ;;  %v418_v11 = vld [vmem:[%s4163_s25 + $0xc8] sm:$0xff] }
  0x23   : > { %3691 = vmatprep.subr.bf16.mxu1 %v4028_v8  ;;  %v417_v12 = vld [vmem:[%s4163_s25 + $0xc0] sm:$0xff]  ;;  %v420_v13 = vld [vmem:[%s4163_s25 + $0xd8] sm:$0xff]  ;;  %v419_v14 = vld [vmem:[%s4163_s25 + $0xd0] sm:$0xff] }
  0x24   : > { %3663 = vmatpush3.bf16.msra.mxu0 %v3662_v28  ;;  %484 = vperm.xlu1 %3860, %v398_v34   ;;  %v422_v15 = vld [vmem:[%s4163_s25 + $0xe8] sm:$0xff]  ;;  %v421_v16 = vld [vmem:[%s4163_s25 + $0xe0] sm:$0xff]  ;;  %v424_v17 = vld [vmem:[%s4163_s25 + $0xf8] sm:$0xff] }
  0x25   : > { %3664 = vmatprep.subr.bf16.mxu0 %v4028_v8  ;;  %479 = vperm.xlu0 %3859, %v397_v35   ;;  %v423_v18 = vld [vmem:[%s4163_s25 + $0xf0] sm:$0xff]  ;;  %v426_v19 = vld [vmem:[%s4163_s25 + $0x108] sm:$0xff]  ;;  %v425_v20 = vld [vmem:[%s4163_s25 + $0x100] sm:$0xff] }
  0x26   : > { %3693 = vmatpush3.bf16.msra.mxu1 %v3692_v46  ;;  %v428_v21 = vld [vmem:[%s4163_s25 + $0x118] sm:$0xff]  ;;  %v427_v22 = vld [vmem:[%s4163_s25 + $0x110] sm:$0xff]  ;;  %v430_v23 = vld [vmem:[%s4163_s25 + $0x128] sm:$0xff] }
  0x27   : > { %3694 = vmatprep.subr.bf16.mxu1 %v4028_v8  ;;  %v429_v24 = vld [vmem:[%s4163_s25 + $0x120] sm:$0xff]  ;;  %v432_v25 = vld [vmem:[%s4163_s25 + $0x138] sm:$0xff]  ;;  %v431_v26 = vld [vmem:[%s4163_s25 + $0x130] sm:$0xff] }
  0x28   : > { %3666 = vmatpush3.bf16.msra.mxu0 %v3665_v37  ;;  %494 = vperm.xlu1 %3860, %v400_v43   ;;  %v434_v27 = vld [vmem:[%s4163_s25 + $0x148] sm:$0xff]  ;;  %v433_v28 = vld [vmem:[%s4163_s25 + $0x140] sm:$0xff]  ;;  %v436_v29 = vld [vmem:[%s4163_s25 + $0x158] sm:$0xff] }
  0x29   : > { %3667 = vmatprep.subr.bf16.mxu0 %v4028_v8  ;;  %489 = vperm.xlu0 %3859, %v399_v44   ;;  %v435_v30 = vld [vmem:[%s4163_s25 + $0x150] sm:$0xff]  ;;  %v438_v31 = vld [vmem:[%s4163_s25 + $0x168] sm:$0xff]  ;;  %v437_v32 = vld [vmem:[%s4163_s25 + $0x160] sm:$0xff] }
  0x2a   : > { %3696 = vmatpush3.bf16.msra.mxu1 %v3695_v58  ;;  %v440_v33 = vld [vmem:[%s4163_s25 + $0x178] sm:$0xff]  ;;  %v439_v34 = vld [vmem:[%s4163_s25 + $0x170] sm:$0xff]  ;;  %v442_v35 = vld [vmem:[%s4163_s25 + $0x188] sm:$0xff] }
  0x2b   : > { %3697 = vmatprep.subr.bf16.mxu1 %v4028_v8  ;;  %v441_v37 = vld [vmem:[%s4163_s25 + $0x180] sm:$0xff]  ;;  %v444_v38 = vld [vmem:[%s4163_s25 + $0x198] sm:$0xff]  ;;  %v443_v39 = vld [vmem:[%s4163_s25 + $0x190] sm:$0xff] }
  0x2c   : > { %3669 = vmatpush3.bf16.msra.mxu0 %v3668_v45  ;;  %504 = vperm.xlu1 %3860, %v402_v47   ;;  %v446_v40 = vld [vmem:[%s4163_s25 + $0x1a8] sm:$0xff]  ;;  %v445_v41 = vld [vmem:[%s4163_s25 + $0x1a0] sm:$0xff]  ;;  %v448_v42 = vld [vmem:[%s4163_s25 + $0x1b8] sm:$0xff] }
  0x2d   : > { %3670 = vmatprep.subr.bf16.mxu0 %v4028_v8  ;;  %499 = vperm.xlu0 %3859, %v401_v48   ;;  %v447_v43 = vld [vmem:[%s4163_s25 + $0x1b0] sm:$0xff]  ;;  %v450_v44 = vld [vmem:[%s4163_s25 + $0x1c8] sm:$0xff]  ;;  %v449_v45 = vld [vmem:[%s4163_s25 + $0x1c0] sm:$0xff] }
  0x2e   : > { %3699 = vmatpush3.bf16.msra.mxu1 %v3698_v2  ;;  %v452_v46 = vld [vmem:[%s4163_s25 + $0x1d8] sm:$0xff]  ;;  %v451_v47 = vld [vmem:[%s4163_s25 + $0x1d0] sm:$0xff]  ;;  %v454_v48 = vld [vmem:[%s4163_s25 + $0x1e8] sm:$0xff] }
  0x2f   : > { %v4312_v52 = vld [vmem:[%s5644_s5] ss:$0 sm:$0xff] }
  0x30   : > { %514 = vperm.xlu1 %3860, %v404_v49   ;;  %3672 = vmatpush3.bf16.msra.mxu0 %v3671_v56  ;;  %v453_v49 = vld [vmem:[%s4163_s25 + $0x1e0] sm:$0xff] }
  0x31   : > { %509 = vperm.xlu0 %3859, %v403_v50   ;;  %3673 = vmatprep.subr.bf16.mxu0 %v4028_v8  ;;  %v413_v8 = vld [vmem:[%s4163_s25 + $0xa0] sm:$0xff]  ;;  %v455_v50 = vld [vmem:[%s4163_s25 + $0x1f0] sm:$0xff]  ;;  %s4802_s25 = scalar_lea.vmem [#allocation2], %s4771_s18  }
  0x32   : > { %v4317_v53 = vld [vmem:[%s5658_s2] ss:$0 sm:$0xff] }
  0x34   : > { %524 = vperm.xlu1 %3860, %v406_v54   ;;  %3675 = vmatpush3.bf16.msra.mxu0 %v3674_v63  ;;  %v4322_v54 = vld [vmem:[%s5645_s6] ss:$0 sm:$0xff] }
  0x35   : > { %519 = vperm.xlu0 %3859, %v405_v55  }
  0x38   : > { %534 = vperm.xlu1 %3860, %v408_v0  }
  0x39   : > { %529 = vperm.xlu0 %3859, %v407_v1  }
  0x3c   : > { %544 = vperm.xlu1 %3860, %v410_v3  }
  0x3d   : > { %539 = vperm.xlu0 %3859, %v409_v4  }
  0x40   : > { %554 = vperm.xlu1 %3860, %v412_v5  }
  0x41   : > { %549 = vperm.xlu0 %3859, %v411_v6  }
  0x44   : > { %564 = vperm.xlu1 %3860, %v414_v7  }
  0x45   : > { %559 = vperm.xlu0 %3859, %v413_v8  }
  0x48   : > { %574 = vperm.xlu1 %3860, %v416_v9  }
  0x49   : > { %569 = vperm.xlu0 %3859, %v415_v10  }
  0x4c   : > { %584 = vperm.xlu1 %3860, %v418_v11  }
  0x4d   : > { %579 = vperm.xlu0 %3859, %v417_v12  }
  0x50   : > { %594 = vperm.xlu1 %3860, %v420_v13  }
  0x51   : > { %589 = vperm.xlu0 %3859, %v419_v14  }
  0x54   : > { %604 = vperm.xlu1 %3860, %v422_v15  }
  0x55   : > { %599 = vperm.xlu0 %3859, %v421_v16  }
  0x58   : > { %614 = vperm.xlu1 %3860, %v424_v17  }
  0x59   : > { %609 = vperm.xlu0 %3859, %v423_v18  }
  0x5c   : > { %624 = vperm.xlu1 %3860, %v426_v19  }
  0x5d   : > { %619 = vperm.xlu0 %3859, %v425_v20  }
  0x60   : > { %634 = vperm.xlu1 %3860, %v428_v21  }
  0x61   : > { %629 = vperm.xlu0 %3859, %v427_v22  }
  0x64   : > { %644 = vperm.xlu1 %3860, %v430_v23  }
  0x65   : > { %639 = vperm.xlu0 %3859, %v429_v24  }
  0x68   : > { %654 = vperm.xlu1 %3860, %v432_v25  }
  0x69   : > { %649 = vperm.xlu0 %3859, %v431_v26  }
  0x6c   : > { %664 = vperm.xlu1 %3860, %v434_v27  }
  0x6d   : > { %659 = vperm.xlu0 %3859, %v433_v28  }
  0x70   : > { %674 = vperm.xlu1 %3860, %v436_v29  }
  0x71   : > { %669 = vperm.xlu0 %3859, %v435_v30  }
  0x74   : > { %684 = vperm.xlu1 %3860, %v438_v31  }
  0x75   : > { %679 = vperm.xlu0 %3859, %v437_v32  }
  0x78   : > { %694 = vperm.xlu1 %3860, %v440_v33  }
  0x79   : > { %689 = vperm.xlu0 %3859, %v439_v34  }
  0x7c   : > { %704 = vperm.xlu1 %3860, %v442_v35  }
  0x7d   : > { %699 = vperm.xlu0 %3859, %v441_v37  }
  0x80   : > { %714 = vperm.xlu1 %3860, %v444_v38  }
  0x81   : > { %709 = vperm.xlu0 %3859, %v443_v39  }
  0x84   : > { %724 = vperm.xlu1 %3860, %v446_v40  }
  0x85   : > { %719 = vperm.xlu0 %3859, %v445_v41  }
  0x88   : > { %734 = vperm.xlu1 %3860, %v448_v42  }
  0x89   : > { %729 = vperm.xlu0 %3859, %v447_v43  }
  0x8c   : > { %744 = vperm.xlu1 %3860, %v450_v44  }
  0x8d   : > { %739 = vperm.xlu0 %3859, %v449_v45  }
  0x90   : > { %754 = vperm.xlu1 %3860, %v452_v46  }
  0x91   : > { %749 = vperm.xlu0 %3859, %v451_v47  }
  0x94   : > { %764 = vperm.xlu1 %3860, %v454_v48  }
  0x95   : > { %759 = vperm.xlu0 %3859, %v453_v49  }
  0x99   : > { %769 = vperm.xlu0 %3859, %v455_v50  }
  0x9b   : > { %v470_v58 = vpop.permute.xlu1 %469 }
  0x9c   : > { %v460_v55 = vpop.permute.xlu0 %459  ;;  %v780_v61 = vmul.f32 %v4307_v51, %v470_v58  ;;  %v1450_v62 = vmul.f32 %v4312_v52, %v470_v58 }
  0x9d   : > { %v778_v56 = vmul.f32 %v4307_v51, %v460_v55  ;;  %v1448_v57 = vmul.f32 %v4312_v52, %v460_v55 }
  0x9e   : > { %v850_v6 = vadd.f32 %v4317_v53, %v780_v61  ;;  %v1520_v7 = vadd.f32 %v4322_v54, %v1450_v62 }
  0x9f   : > { %v848_v59 = vadd.f32 %v4317_v53, %v778_v56  ;;  %v1518_v60 = vadd.f32 %v4322_v54, %v1448_v57  ;;  %v475_v8 = vpop.permute.xlu1 %474 }
  0xa0   : > { %v465_v63 = vpop.permute.xlu0 %464  ;;  %v781_v9 = vmul.f32 %v4307_v51, %v475_v8  ;;  %v1451_v10 = vmul.f32 %v4312_v52, %v475_v8  ;;  %v913_v14 = vmax.f32 %v850_v6, 0.0  ;;  %v1583_v15 = vmax.f32 %v1520_v7, 0.0 }
  0xa1   : > { %v779_v0 = vmul.f32 %v4307_v51, %v465_v63  ;;  %v1449_v1 = vmul.f32 %v4312_v52, %v465_v63  ;;  %v911_v2 = vmax.f32 %v848_v59, 0.0  ;;  %v1581_v3 = vmax.f32 %v1518_v60, 0.0 }
  0xa2   : > { %v851_v16 = vadd.f32 %v4317_v53, %v781_v9  ;;  %v1521_v17 = vadd.f32 %v4322_v54, %v1451_v10 }
  0xa3   : > { %v849_v4 = vadd.f32 %v4317_v53, %v779_v0  ;;  %v1519_v5 = vadd.f32 %v4322_v54, %v1449_v1  ;;  %3243 = vmatmul.mubr.f32.vlgmr.msra.gmra.mrb[0].mxu0 %v911_v2  ;;  %3464 = vmatmul.mubr.f32.vlgmr.msra.gmra.mrb[0].mxu1 %v1581_v3  ;;  %v485_v18 = vpop.permute.xlu1 %484 }
  0xa4   : > { %3245 = vmatprep.mubr.msk.f32.mxu0 %vm4029_vm0, %v4030_v36  ;;  %3466 = vmatprep.mubr.msk.f32.mxu1 %vm4029_vm0, %v4030_v36  ;;  %v480_v13 = vpop.permute.xlu0 %479  ;;  %v783_v21 = vmul.f32 %v4307_v51, %v485_v18  ;;  %v1453_v22 = vmul.f32 %v4312_v52, %v485_v18  ;;  %v914_v25 = vmax.f32 %v851_v16, 0.0  ;;  %v1584_v26 = vmax.f32 %v1521_v17, 0.0 }
  0xa5   : > { %v912_v11 = vmax.f32 %v849_v4, 0.0  ;;  %v1582_v12 = vmax.f32 %v1519_v5, 0.0  ;;  %v782_v19 = vmul.f32 %v4307_v51, %v480_v13  ;;  %v1452_v20 = vmul.f32 %v4312_v52, %v480_v13 }
  0xa6   : > { %v853_v28 = vadd.f32 %v4317_v53, %v783_v21  ;;  %v1523_v29 = vadd.f32 %v4322_v54, %v1453_v22 }
  0xa7   : > { %3246 = vmatmul.mubr.f32.gmra.mrb[2].mxu0 %v912_v11  ;;  %3467 = vmatmul.mubr.f32.gmra.mrb[2].mxu1 %v1582_v12  ;;  %v852_v23 = vadd.f32 %v4317_v53, %v782_v19  ;;  %v1522_v24 = vadd.f32 %v4322_v54, %v1452_v20  ;;  %v495_v30 = vpop.permute.xlu1 %494 }
  0xa8   : > { %3248 = vmatprep.mubr.msk.f32.mxu0 %vm4029_vm0, %v4030_v36  ;;  %3469 = vmatprep.mubr.msk.f32.mxu1 %vm4029_vm0, %v4030_v36  ;;  %v490_v27 = vpop.permute.xlu0 %489  ;;  %v785_v35 = vmul.f32 %v4307_v51, %v495_v30  ;;  %v1455_v37 = vmul.f32 %v4312_v52, %v495_v30  ;;  %v916_v40 = vmax.f32 %v853_v28, 0.0  ;;  %v1586_v41 = vmax.f32 %v1523_v29, 0.0 }
  0xa9   : > { %v784_v31 = vmul.f32 %v4307_v51, %v490_v27  ;;  %v1454_v32 = vmul.f32 %v4312_v52, %v490_v27  ;;  %v915_v33 = vmax.f32 %v852_v23, 0.0  ;;  %v1585_v34 = vmax.f32 %v1522_v24, 0.0 }
  0xaa   : > { %v855_v43 = vadd.f32 %v4317_v53, %v785_v35  ;;  %v1525_v44 = vadd.f32 %v4322_v54, %v1455_v37 }
  0xab   : > { %3249 = vmatmul.mubr.f32.gmra.mrb[4].mxu0 %v913_v14  ;;  %3470 = vmatmul.mubr.f32.gmra.mrb[4].mxu1 %v1583_v15  ;;  %v854_v38 = vadd.f32 %v4317_v53, %v784_v31  ;;  %v1524_v39 = vadd.f32 %v4322_v54, %v1454_v32  ;;  %v505_v45 = vpop.permute.xlu1 %504 }
  0xac   : > { %3251 = vmatprep.mubr.msk.f32.mxu0 %vm4029_vm0, %v4030_v36  ;;  %3472 = vmatprep.mubr.msk.f32.mxu1 %vm4029_vm0, %v4030_v36  ;;  %v500_v42 = vpop.permute.xlu0 %499  ;;  %v787_v50 = vmul.f32 %v4307_v51, %v505_v45  ;;  %v1457_v55 = vmul.f32 %v4312_v52, %v505_v45  ;;  %v918_v58 = vmax.f32 %v855_v43, 0.0  ;;  %v1588_v59 = vmax.f32 %v1525_v44, 0.0 }
  0xad   : > { %v786_v46 = vmul.f32 %v4307_v51, %v500_v42  ;;  %v1456_v47 = vmul.f32 %v4312_v52, %v500_v42  ;;  %v917_v48 = vmax.f32 %v854_v38, 0.0  ;;  %v1587_v49 = vmax.f32 %v1524_v39, 0.0 }
  0xae   : > { %v857_v61 = vadd.f32 %v4317_v53, %v787_v50  ;;  %v1527_v62 = vadd.f32 %v4322_v54, %v1457_v55 }
  0xaf   : > { %3252 = vmatmul.mubr.f32.gmra.mrb[6].mxu0 %v914_v25  ;;  %3473 = vmatmul.mubr.f32.gmra.mrb[6].mxu1 %v1584_v26  ;;  %v856_v56 = vadd.f32 %v4317_v53, %v786_v46  ;;  %v1526_v57 = vadd.f32 %v4322_v54, %v1456_v47  ;;  %v515_v63 = vpop.permute.xlu1 %514 }
  0xb0   : > { %3254 = vmatprep.mubr.msk.f32.mxu0 %vm4029_vm0, %v4030_v36  ;;  %3475 = vmatprep.mubr.msk.f32.mxu1 %vm4029_vm0, %v4030_v36  ;;  %v510_v60 = vpop.permute.xlu0 %509  ;;  %v789_v4 = vmul.f32 %v4307_v51, %v515_v63  ;;  %v1459_v5 = vmul.f32 %v4312_v52, %v515_v63  ;;  %v920_v8 = vmax.f32 %v857_v61, 0.0  ;;  %v1590_v9 = vmax.f32 %v1527_v62, 0.0 }
  0xb1   : > { %v788_v0 = vmul.f32 %v4307_v51, %v510_v60  ;;  %v1458_v1 = vmul.f32 %v4312_v52, %v510_v60  ;;  %v919_v2 = vmax.f32 %v856_v56, 0.0  ;;  %v1589_v3 = vmax.f32 %v1526_v57, 0.0 }
  0xb2   : > { %v859_v11 = vadd.f32 %v4317_v53, %v789_v4  ;;  %v1529_v12 = vadd.f32 %v4322_v54, %v1459_v5 }
  0xb3   : > { %3255 = vmatmul.mubr.f32.gmra.mrb[8].mxu0 %v915_v33  ;;  %3476 = vmatmul.mubr.f32.gmra.mrb[8].mxu1 %v1585_v34  ;;  %v858_v6 = vadd.f32 %v4317_v53, %v788_v0  ;;  %v1528_v7 = vadd.f32 %v4322_v54, %v1458_v1  ;;  %v525_v13 = vpop.permute.xlu1 %524 }
  0xb4   : > { %3257 = vmatprep.mubr.msk.f32.mxu0 %vm4029_vm0, %v4030_v36  ;;  %3478 = vmatprep.mubr.msk.f32.mxu1 %vm4029_vm0, %v4030_v36  ;;  %v520_v10 = vpop.permute.xlu0 %519  ;;  %v791_v18 = vmul.f32 %v4307_v51, %v525_v13  ;;  %v1461_v19 = vmul.f32 %v4312_v52, %v525_v13  ;;  %v922_v22 = vmax.f32 %v859_v11, 0.0  ;;  %v1592_v23 = vmax.f32 %v1529_v12, 0.0 }
  0xb5   : > { %v790_v14 = vmul.f32 %v4307_v51, %v520_v10  ;;  %v1460_v15 = vmul.f32 %v4312_v52, %v520_v10  ;;  %v921_v16 = vmax.f32 %v858_v6, 0.0  ;;  %v1591_v17 = vmax.f32 %v1528_v7, 0.0 }
  0xb6   : > { %v861_v25 = vadd.f32 %v4317_v53, %v791_v18  ;;  %v1531_v26 = vadd.f32 %v4322_v54, %v1461_v19 }
  0xb7   : > { %3258 = vmatmul.mubr.f32.gmra.mrb[10].mxu0 %v916_v40  ;;  %3479 = vmatmul.mubr.f32.gmra.mrb[10].mxu1 %v1586_v41  ;;  %v860_v20 = vadd.f32 %v4317_v53, %v790_v14  ;;  %v1530_v21 = vadd.f32 %v4322_v54, %v1460_v15  ;;  %v535_v27 = vpop.permute.xlu1 %534 }
  0xb8   : > { %3260 = vmatprep.mubr.msk.f32.mxu0 %vm4029_vm0, %v4030_v36  ;;  %3481 = vmatprep.mubr.msk.f32.mxu1 %vm4029_vm0, %v4030_v36  ;;  %v530_v24 = vpop.permute.xlu0 %529  ;;  %v793_v32 = vmul.f32 %v4307_v51, %v535_v27  ;;  %v1463_v33 = vmul.f32 %v4312_v52, %v535_v27  ;;  %v924_v37 = vmax.f32 %v861_v25, 0.0  ;;  %v1594_v38 = vmax.f32 %v1531_v26, 0.0 }
  0xb9   : > { %v792_v28 = vmul.f32 %v4307_v51, %v530_v24  ;;  %v1462_v29 = vmul.f32 %v4312_v52, %v530_v24  ;;  %v923_v30 = vmax.f32 %v860_v20, 0.0  ;;  %v1593_v31 = vmax.f32 %v1530_v21, 0.0 }
  0xba   : > { %v863_v40 = vadd.f32 %v4317_v53, %v793_v32  ;;  %v1533_v41 = vadd.f32 %v4322_v54, %v1463_v33 }
  0xbb   : > { %3261 = vmatmul.mubr.f32.gmra.mrb[12].mxu0 %v917_v48  ;;  %3482 = vmatmul.mubr.f32.gmra.mrb[12].mxu1 %v1587_v49  ;;  %v862_v34 = vadd.f32 %v4317_v53, %v792_v28  ;;  %v1532_v35 = vadd.f32 %v4322_v54, %v1462_v29  ;;  %v545_v42 = vpop.permute.xlu1 %544 }
  0xbc   : > { %3263 = vmatprep.mubr.msk.f32.mxu0 %vm4029_vm0, %v4030_v36  ;;  %3484 = vmatprep.mubr.msk.f32.mxu1 %vm4029_vm0, %v4030_v36  ;;  %v540_v39 = vpop.permute.xlu0 %539  ;;  %v795_v47 = vmul.f32 %v4307_v51, %v545_v42  ;;  %v1465_v48 = vmul.f32 %v4312_v52, %v545_v42  ;;  %v926_v55 = vmax.f32 %v863_v40, 0.0  ;;  %v1596_v56 = vmax.f32 %v1533_v41, 0.0 }
  0xbd   : > { %v794_v43 = vmul.f32 %v4307_v51, %v540_v39  ;;  %v1464_v44 = vmul.f32 %v4312_v52, %v540_v39  ;;  %v925_v45 = vmax.f32 %v862_v34, 0.0  ;;  %v1595_v46 = vmax.f32 %v1532_v35, 0.0 }
  0xbf   : > { %3264 = vmatmul.mubr.f32.gmra.mrb[14].mxu0 %v918_v58  ;;  %3485 = vmatmul.mubr.f32.gmra.mrb[14].mxu1 %v1588_v59  ;;  %v864_v49 = vadd.f32 %v4317_v53, %v794_v43  ;;  %v1534_v50 = vadd.f32 %v4322_v54, %v1464_v44  ;;  %v865_v58 = vadd.f32 %v4317_v53, %v795_v47  ;;  %v555_v60 = vpop.permute.xlu1 %554 }
  0xc0   : > { %3266 = vmatprep.mubr.msk.f32.mxu0 %vm4029_vm0, %v4030_v36  ;;  %3487 = vmatprep.mubr.msk.f32.mxu1 %vm4029_vm0, %v4030_v36  ;;  %v550_v57 = vpop.permute.xlu0 %549  ;;  %v1535_v59 = vadd.f32 %v4322_v54, %v1465_v48  ;;  %v797_v1 = vmul.f32 %v4307_v51, %v555_v60 }
  0xc1   : > { %v796_v61 = vmul.f32 %v4307_v51, %v550_v57  ;;  %v1466_v62 = vmul.f32 %v4312_v52, %v550_v57  ;;  %v927_v63 = vmax.f32 %v864_v49, 0.0  ;;  %v1597_v0 = vmax.f32 %v1534_v50, 0.0 }
  0xc2   : > { %v928_v5 = vmax.f32 %v865_v58, 0.0  ;;  %v1598_v6 = vmax.f32 %v1535_v59, 0.0 }
  0xc3   : > { %3267 = vmatmul.mubr.f32.gmra.mrb[16].mxu0 %v919_v2  ;;  %3488 = vmatmul.mubr.f32.gmra.mrb[16].mxu1 %v1589_v3  ;;  %v1467_v2 = vmul.f32 %v4312_v52, %v555_v60  ;;  %v866_v3 = vadd.f32 %v4317_v53, %v796_v61  ;;  %v1536_v4 = vadd.f32 %v4322_v54, %v1466_v62  ;;  %v565_v10 = vpop.permute.xlu1 %564 }
  0xc4   : > { %3269 = vmatprep.mubr.msk.f32.mxu0 %vm4029_vm0, %v4030_v36  ;;  %3490 = vmatprep.mubr.msk.f32.mxu1 %vm4029_vm0, %v4030_v36  ;;  %v560_v7 = vpop.permute.xlu0 %559  ;;  %v799_v15 = vmul.f32 %v4307_v51, %v565_v10 }
  0xc5   : > { %v798_v11 = vmul.f32 %v4307_v51, %v560_v7  ;;  %v1468_v12 = vmul.f32 %v4312_v52, %v560_v7  ;;  %v929_v13 = vmax.f32 %v866_v3, 0.0  ;;  %v1599_v14 = vmax.f32 %v1536_v4, 0.0 }
  0xc7   : > { %3270 = vmatmul.mubr.f32.gmra.mrb[18].mxu0 %v920_v8  ;;  %3491 = vmatmul.mubr.f32.gmra.mrb[18].mxu1 %v1590_v9  ;;  %v867_v8 = vadd.f32 %v4317_v53, %v797_v1  ;;  %v1537_v9 = vadd.f32 %v4322_v54, %v1467_v2  ;;  %v1538_v18 = vadd.f32 %v4322_v54, %v1468_v12  ;;  %v575_v24 = vpop.permute.xlu1 %574 }
  0xc8   : > { %3272 = vmatprep.mubr.msk.f32.mxu0 %vm4029_vm0, %v4030_v36  ;;  %3493 = vmatprep.mubr.msk.f32.mxu1 %vm4029_vm0, %v4030_v36  ;;  %v570_v21 = vpop.permute.xlu0 %569  ;;  %v801_v29 = vmul.f32 %v4307_v51, %v575_v24 }
  0xc9   : > { %v930_v19 = vmax.f32 %v867_v8, 0.0  ;;  %v1600_v20 = vmax.f32 %v1537_v9, 0.0  ;;  %v800_v25 = vmul.f32 %v4307_v51, %v570_v21  ;;  %v1470_v26 = vmul.f32 %v4312_v52, %v570_v21 }
  0xca   : > { %v1601_v28 = vmax.f32 %v1538_v18, 0.0 }
  0xcb   : > { %3273 = vmatmul.mubr.f32.gmra.mrb[20].mxu0 %v921_v16  ;;  %3494 = vmatmul.mubr.f32.gmra.mrb[20].mxu1 %v1591_v17  ;;  %v1469_v16 = vmul.f32 %v4312_v52, %v565_v10  ;;  %v868_v17 = vadd.f32 %v4317_v53, %v798_v11  ;;  %v1540_v32 = vadd.f32 %v4322_v54, %v1470_v26  ;;  %v585_v39 = vpop.permute.xlu1 %584 }
  0xcc   : > { %3275 = vmatprep.mubr.msk.f32.mxu0 %vm4029_vm0, %v4030_v36  ;;  %3496 = vmatprep.mubr.msk.f32.mxu1 %vm4029_vm0, %v4030_v36  ;;  %v580_v35 = vpop.permute.xlu0 %579  ;;  %v803_v44 = vmul.f32 %v4307_v51, %v585_v39 }
  0xcd   : > { %v931_v27 = vmax.f32 %v868_v17, 0.0  ;;  %v802_v40 = vmul.f32 %v4307_v51, %v580_v35  ;;  %v1472_v41 = vmul.f32 %v4312_v52, %v580_v35  ;;  %v1603_v43 = vmax.f32 %v1540_v32, 0.0 }
  0xcf   : > { %3276 = vmatmul.mubr.f32.gmra.mrb[22].mxu0 %v922_v22  ;;  %3497 = vmatmul.mubr.f32.gmra.mrb[22].mxu1 %v1592_v23  ;;  %v869_v22 = vadd.f32 %v4317_v53, %v799_v15  ;;  %v1539_v23 = vadd.f32 %v4322_v54, %v1469_v16  ;;  %v1542_v47 = vadd.f32 %v4322_v54, %v1472_v41  ;;  %v595_v57 = vpop.permute.xlu1 %594 }
  0xd0   : > { %3278 = vmatprep.mubr.msk.f32.mxu0 %vm4029_vm0, %v4030_v36  ;;  %3499 = vmatprep.mubr.msk.f32.mxu1 %vm4029_vm0, %v4030_v36  ;;  %v590_v50 = vpop.permute.xlu0 %589  ;;  %v805_v62 = vmul.f32 %v4307_v51, %v595_v57 }
  0xd1   : > { %v932_v33 = vmax.f32 %v869_v22, 0.0  ;;  %v1602_v34 = vmax.f32 %v1539_v23, 0.0  ;;  %v804_v58 = vmul.f32 %v4307_v51, %v590_v50  ;;  %v1474_v59 = vmul.f32 %v4312_v52, %v590_v50 }
  0xd2   : > { %v1605_v61 = vmax.f32 %v1542_v47, 0.0 }
  0xd3   : > { %3279 = vmatmul.mubr.f32.gmra.mrb[24].mxu0 %v923_v30  ;;  %3500 = vmatmul.mubr.f32.gmra.mrb[24].mxu1 %v1593_v31  ;;  %v1471_v30 = vmul.f32 %v4312_v52, %v575_v24  ;;  %v870_v31 = vadd.f32 %v4317_v53, %v800_v25  ;;  %v1544_v1 = vadd.f32 %v4322_v54, %v1474_v59  ;;  %v605_v7 = vpop.permute.xlu1 %604 }
  0xd4   : > { %3281 = vmatprep.mubr.msk.f32.mxu0 %vm4029_vm0, %v4030_v36  ;;  %3502 = vmatprep.mubr.msk.f32.mxu1 %vm4029_vm0, %v4030_v36  ;;  %v600_v4 = vpop.permute.xlu0 %599  ;;  %v807_v12 = vmul.f32 %v4307_v51, %v605_v7 }
  0xd5   : > { %v933_v42 = vmax.f32 %v870_v31, 0.0  ;;  %v806_v8 = vmul.f32 %v4307_v51, %v600_v4  ;;  %v1476_v9 = vmul.f32 %v4312_v52, %v600_v4  ;;  %v1607_v11 = vmax.f32 %v1544_v1, 0.0 }
  0xd7   : > { %3282 = vmatmul.mubr.f32.gmra.mrb[26].mxu0 %v924_v37  ;;  %3503 = vmatmul.mubr.f32.gmra.mrb[26].mxu1 %v1594_v38  ;;  %v871_v37 = vadd.f32 %v4317_v53, %v801_v29  ;;  %v1541_v38 = vadd.f32 %v4322_v54, %v1471_v30  ;;  %v1546_v15 = vadd.f32 %v4322_v54, %v1476_v9  ;;  %v615_v21 = vpop.permute.xlu1 %614 }
  0xd8   : > { %3284 = vmatprep.mubr.msk.f32.mxu0 %vm4029_vm0, %v4030_v36  ;;  %3505 = vmatprep.mubr.msk.f32.mxu1 %vm4029_vm0, %v4030_v36  ;;  %v610_v18 = vpop.permute.xlu0 %609  ;;  %v809_v26 = vmul.f32 %v4307_v51, %v615_v21 }
  0xd9   : > { %v934_v48 = vmax.f32 %v871_v37, 0.0  ;;  %v1604_v49 = vmax.f32 %v1541_v38, 0.0  ;;  %v808_v22 = vmul.f32 %v4307_v51, %v610_v18  ;;  %v1478_v23 = vmul.f32 %v4312_v52, %v610_v18 }
  0xda   : > { %v1609_v25 = vmax.f32 %v1546_v15, 0.0 }
  0xdb   : > { %3285 = vmatmul.mubr.f32.gmra.mrb[28].mxu0 %v925_v45  ;;  %3506 = vmatmul.mubr.f32.gmra.mrb[28].mxu1 %v1595_v46  ;;  %v1473_v45 = vmul.f32 %v4312_v52, %v585_v39  ;;  %v872_v46 = vadd.f32 %v4317_v53, %v802_v40  ;;  %v1548_v29 = vadd.f32 %v4322_v54, %v1478_v23  ;;  %v625_v35 = vpop.permute.xlu1 %624 }
  0xdc   : > { %3287 = vmatprep.mubr.msk.f32.mxu0 %vm4029_vm0, %v4030_v36  ;;  %3508 = vmatprep.mubr.msk.f32.mxu1 %vm4029_vm0, %v4030_v36  ;;  %v620_v32 = vpop.permute.xlu0 %619  ;;  %v811_v41 = vmul.f32 %v4307_v51, %v625_v35 }
  0xdd   : > { %v935_v60 = vmax.f32 %v872_v46, 0.0  ;;  %v810_v37 = vmul.f32 %v4307_v51, %v620_v32  ;;  %v1480_v38 = vmul.f32 %v4312_v52, %v620_v32  ;;  %v1611_v40 = vmax.f32 %v1548_v29, 0.0 }
  0xdf   : > { %3288 = vmatmul.mubr.f32.gmra.mrb[30].mxu0 %v926_v55  ;;  %3509 = vmatmul.mubr.f32.gmra.mrb[30].mxu1 %v1596_v56  ;;  %v873_v55 = vadd.f32 %v4317_v53, %v803_v44  ;;  %v1543_v56 = vadd.f32 %v4322_v54, %v1473_v45  ;;  %v1550_v44 = vadd.f32 %v4322_v54, %v1480_v38  ;;  %v635_v50 = vpop.permute.xlu1 %634 }
  0xe0   : > { %3290 = vmatprep.mubr.msk.f32.mxu0 %vm4029_vm0, %v4030_v36  ;;  %3511 = vmatprep.mubr.msk.f32.mxu1 %vm4029_vm0, %v4030_v36  ;;  %v630_v47 = vpop.permute.xlu0 %629  ;;  %v813_v59 = vmul.f32 %v4307_v51, %v635_v50 }
  0xe1   : > { %v936_v2 = vmax.f32 %v873_v55, 0.0  ;;  %v1606_v3 = vmax.f32 %v1543_v56, 0.0  ;;  %v812_v55 = vmul.f32 %v4307_v51, %v630_v47  ;;  %v1482_v56 = vmul.f32 %v4312_v52, %v630_v47 }
  0xe3   : > { %3291 = vmatmul.mubr.f32.gmra.mrb[32].mxu0 %v927_v63  ;;  %3512 = vmatmul.mubr.f32.gmra.mrb[32].mxu1 %v1597_v0  ;;  %v1475_v63 = vmul.f32 %v4312_v52, %v595_v57  ;;  %v874_v0 = vadd.f32 %v4317_v53, %v804_v58  ;;  %v1613_v58 = vmax.f32 %v1550_v44, 0.0  ;;  %v645_v4 = vpop.permute.xlu1 %644 }
  0xe4   : > { %3293 = vmatprep.mubr.msk.f32.mxu0 %vm4029_vm0, %v4030_v36  ;;  %3514 = vmatprep.mubr.msk.f32.mxu1 %vm4029_vm0, %v4030_v36  ;;  %v640_v1 = vpop.permute.xlu0 %639  ;;  %v815_v9 = vmul.f32 %v4307_v51, %v645_v4 }
  0xe5   : > { %v937_v10 = vmax.f32 %v874_v0, 0.0 }
  0xe7   : > { %3294 = vmatmul.mubr.f32.gmra.mrb[34].mxu0 %v928_v5  ;;  %3515 = vmatmul.mubr.f32.gmra.mrb[34].mxu1 %v1598_v6  ;;  %v875_v5 = vadd.f32 %v4317_v53, %v805_v62  ;;  %v1545_v6 = vadd.f32 %v4322_v54, %v1475_v63  ;;  %v1552_v62 = vadd.f32 %v4322_v54, %v1482_v56  ;;  %v655_v18 = vpop.permute.xlu1 %654 }
  0xe8   : > { %3296 = vmatprep.mubr.msk.f32.mxu0 %vm4029_vm0, %v4030_v36  ;;  %3517 = vmatprep.mubr.msk.f32.mxu1 %vm4029_vm0, %v4030_v36  ;;  %v650_v15 = vpop.permute.xlu0 %649  ;;  %v817_v23 = vmul.f32 %v4307_v51, %v655_v18 }
  0xe9   : > { %v938_v16 = vmax.f32 %v875_v5, 0.0  ;;  %v1608_v17 = vmax.f32 %v1545_v6, 0.0  ;;  %v814_v5 = vmul.f32 %v4307_v51, %v640_v1  ;;  %v1484_v6 = vmul.f32 %v4312_v52, %v640_v1 }
  0xeb   : > { %3297 = vmatmul.mubr.f32.gmra.mrb[36].mxu0 %v929_v13  ;;  %3518 = vmatmul.mubr.f32.gmra.mrb[36].mxu1 %v1599_v14  ;;  %v1477_v13 = vmul.f32 %v4312_v52, %v605_v7  ;;  %v876_v14 = vadd.f32 %v4317_v53, %v806_v8  ;;  %v1615_v8 = vmax.f32 %v1552_v62, 0.0  ;;  %v665_v32 = vpop.permute.xlu1 %664 }
  0xec   : > { %3299 = vmatprep.mubr.msk.f32.mxu0 %vm4029_vm0, %v4030_v36  ;;  %3520 = vmatprep.mubr.msk.f32.mxu1 %vm4029_vm0, %v4030_v36  ;;  %v660_v29 = vpop.permute.xlu0 %659  ;;  %v819_v38 = vmul.f32 %v4307_v51, %v665_v32 }
  0xed   : > { %v939_v24 = vmax.f32 %v876_v14, 0.0 }
  0xef   : > { %3300 = vmatmul.mubr.f32.gmra.mrb[38].mxu0 %v930_v19  ;;  %3521 = vmatmul.mubr.f32.gmra.mrb[38].mxu1 %v1600_v20  ;;  %v877_v19 = vadd.f32 %v4317_v53, %v807_v12  ;;  %v1547_v20 = vadd.f32 %v4322_v54, %v1477_v13  ;;  %v1554_v12 = vadd.f32 %v4322_v54, %v1484_v6  ;;  %v675_v47 = vpop.permute.xlu1 %674 }
  0xf0   : > { %3302 = vmatprep.mubr.msk.f32.mxu0 %vm4029_vm0, %v4030_v36  ;;  %3523 = vmatprep.mubr.msk.f32.mxu1 %vm4029_vm0, %v4030_v36  ;;  %v670_v44 = vpop.permute.xlu0 %669  ;;  %v821_v56 = vmul.f32 %v4307_v51, %v675_v47 }
  0xf1   : > { %v940_v30 = vmax.f32 %v877_v19, 0.0  ;;  %v1610_v31 = vmax.f32 %v1547_v20, 0.0  ;;  %v816_v19 = vmul.f32 %v4307_v51, %v650_v15  ;;  %v1486_v20 = vmul.f32 %v4312_v52, %v650_v15 }
  0xf3   : > { %3303 = vmatmul.mubr.f32.gmra.mrb[40].mxu0 %v931_v27  ;;  %3524 = vmatmul.mubr.f32.gmra.mrb[40].mxu1 %v1601_v28  ;;  %v1479_v27 = vmul.f32 %v4312_v52, %v615_v21  ;;  %v878_v28 = vadd.f32 %v4317_v53, %v808_v22  ;;  %v1617_v22 = vmax.f32 %v1554_v12, 0.0  ;;  %v685_v1 = vpop.permute.xlu1 %684 }
  0xf4   : > { %3305 = vmatprep.mubr.msk.f32.mxu0 %vm4029_vm0, %v4030_v36  ;;  %3526 = vmatprep.mubr.msk.f32.mxu1 %vm4029_vm0, %v4030_v36  ;;  %v680_v62 = vpop.permute.xlu0 %679  ;;  %v823_v6 = vmul.f32 %v4307_v51, %v685_v1 }
  0xf5   : > { %v941_v39 = vmax.f32 %v878_v28, 0.0 }
  0xf7   : > { %3306 = vmatmul.mubr.f32.gmra.mrb[42].mxu0 %v932_v33  ;;  %3527 = vmatmul.mubr.f32.gmra.mrb[42].mxu1 %v1602_v34  ;;  %v879_v33 = vadd.f32 %v4317_v53, %v809_v26  ;;  %v1549_v34 = vadd.f32 %v4322_v54, %v1479_v27  ;;  %v1556_v26 = vadd.f32 %v4322_v54, %v1486_v20  ;;  %v695_v15 = vpop.permute.xlu1 %694 }
  0xf8   : > { %3308 = vmatprep.mubr.msk.f32.mxu0 %vm4029_vm0, %v4030_v36  ;;  %3529 = vmatprep.mubr.msk.f32.mxu1 %vm4029_vm0, %v4030_v36  ;;  %v690_v12 = vpop.permute.xlu0 %689  ;;  %v825_v20 = vmul.f32 %v4307_v51, %v695_v15 }
  0xf9   : > { %v942_v45 = vmax.f32 %v879_v33, 0.0  ;;  %v1612_v46 = vmax.f32 %v1549_v34, 0.0  ;;  %v818_v33 = vmul.f32 %v4307_v51, %v660_v29  ;;  %v1488_v34 = vmul.f32 %v4312_v52, %v660_v29 }
  0xfb   : > { %3309 = vmatmul.mubr.f32.gmra.mrb[44].mxu0 %v933_v42  ;;  %3530 = vmatmul.mubr.f32.gmra.mrb[44].mxu1 %v1603_v43  ;;  %v1481_v42 = vmul.f32 %v4312_v52, %v625_v35  ;;  %v880_v43 = vadd.f32 %v4317_v53, %v810_v37  ;;  %v1619_v37 = vmax.f32 %v1556_v26, 0.0 }
  0xfc   : > { %3311 = vmatprep.mubr.msk.f32.mxu0 %vm4029_vm0, %v4030_v36  ;;  %3532 = vmatprep.mubr.msk.f32.mxu1 %vm4029_vm0, %v4030_v36  ;;  %v700_v26 = vpop.permute.xlu0 %699 }
  0xfd   : > { %v943_v57 = vmax.f32 %v880_v43, 0.0 }
  0xff   : > { %3312 = vmatmul.mubr.f32.gmra.mrb[46].mxu0 %v934_v48  ;;  %3533 = vmatmul.mubr.f32.gmra.mrb[46].mxu1 %v1604_v49  ;;  %v881_v48 = vadd.f32 %v4317_v53, %v811_v41  ;;  %v1551_v49 = vadd.f32 %v4322_v54, %v1481_v42  ;;  %v1558_v41 = vadd.f32 %v4322_v54, %v1488_v34 }
 0x100   : > { %3314 = vmatprep.mubr.msk.f32.mxu0 %vm4029_vm0, %v4030_v36  ;;  %3535 = vmatprep.mubr.msk.f32.mxu1 %vm4029_vm0, %v4030_v36 }
 0x101   : > { %v944_v63 = vmax.f32 %v881_v48, 0.0  ;;  %v1614_v0 = vmax.f32 %v1551_v49, 0.0  ;;  %v820_v48 = vmul.f32 %v4307_v51, %v670_v44  ;;  %v1490_v49 = vmul.f32 %v4312_v52, %v670_v44 }
 0x103   : > { %3315 = vmatmul.mubr.f32.gmra.mrb[48].mxu0 %v935_v60  ;;  %3536 = vmatmul.mubr.f32.gmra.mrb[48].mxu1 %v1605_v61  ;;  %v1483_v60 = vmul.f32 %v4312_v52, %v635_v50  ;;  %v882_v61 = vadd.f32 %v4317_v53, %v812_v55  ;;  %v1621_v55 = vmax.f32 %v1558_v41, 0.0  ;;  %v710_v41 = vpop.permute.xlu0 %709 }
 0x104   : > { %3317 = vmatprep.mubr.msk.f32.mxu0 %vm4029_vm0, %v4030_v36  ;;  %3538 = vmatprep.mubr.msk.f32.mxu1 %vm4029_vm0, %v4030_v36 }
 0x105   : > { %v945_v7 = vmax.f32 %v882_v61, 0.0 }
 0x107   : > { %3318 = vmatmul.mubr.f32.gmra.mrb[50].mxu0 %v936_v2  ;;  %3539 = vmatmul.mubr.f32.gmra.mrb[50].mxu1 %v1606_v3  ;;  %v883_v2 = vadd.f32 %v4317_v53, %v813_v59  ;;  %v1553_v3 = vadd.f32 %v4322_v54, %v1483_v60  ;;  %v1560_v59 = vadd.f32 %v4322_v54, %v1490_v49 }
 0x108   : > { %3320 = vmatprep.mubr.msk.f32.mxu0 %vm4029_vm0, %v4030_v36  ;;  %3541 = vmatprep.mubr.msk.f32.mxu1 %vm4029_vm0, %v4030_v36 }
 0x109   : > { %v946_v13 = vmax.f32 %v883_v2, 0.0  ;;  %v1616_v14 = vmax.f32 %v1553_v3, 0.0  ;;  %v822_v2 = vmul.f32 %v4307_v51, %v680_v62  ;;  %v1492_v3 = vmul.f32 %v4312_v52, %v680_v62 }
 0x10b   : > { %3321 = vmatmul.mubr.f32.gmra.mrb[52].mxu0 %v937_v10  ;;  %3542 = vmatmul.mubr.f32.gmra.mrb[52].mxu1 %v1607_v11  ;;  %v1485_v10 = vmul.f32 %v4312_v52, %v645_v4  ;;  %v884_v11 = vadd.f32 %v4317_v53, %v814_v5  ;;  %v1623_v5 = vmax.f32 %v1560_v59, 0.0  ;;  %v720_v59 = vpop.permute.xlu0 %719 }
 0x10c   : > { %3323 = vmatprep.mubr.msk.f32.mxu0 %vm4029_vm0, %v4030_v36  ;;  %3544 = vmatprep.mubr.msk.f32.mxu1 %vm4029_vm0, %v4030_v36 }
 0x10d   : > { %v947_v21 = vmax.f32 %v884_v11, 0.0 }
 0x10f   : > { %3324 = vmatmul.mubr.f32.gmra.mrb[54].mxu0 %v938_v16  ;;  %3545 = vmatmul.mubr.f32.gmra.mrb[54].mxu1 %v1608_v17  ;;  %v885_v16 = vadd.f32 %v4317_v53, %v815_v9  ;;  %v1555_v17 = vadd.f32 %v4322_v54, %v1485_v10  ;;  %v1562_v9 = vadd.f32 %v4322_v54, %v1492_v3 }
 0x110   : > { %3326 = vmatprep.mubr.msk.f32.mxu0 %vm4029_vm0, %v4030_v36  ;;  %3547 = vmatprep.mubr.msk.f32.mxu1 %vm4029_vm0, %v4030_v36 }
 0x111   : > { %v948_v27 = vmax.f32 %v885_v16, 0.0  ;;  %v1618_v28 = vmax.f32 %v1555_v17, 0.0  ;;  %v824_v16 = vmul.f32 %v4307_v51, %v690_v12  ;;  %v1494_v17 = vmul.f32 %v4312_v52, %v690_v12  ;;  %v4697_v51 = vld [vmem:[%s5658_s2] ss:$0 sm:$0xff] }
 0x113   : > { %3327 = vmatmul.mubr.f32.gmra.mrb[56].mxu0 %v939_v24  ;;  %3548 = vmatmul.mubr.f32.gmra.mrb[56].mxu1 %v1609_v25  ;;  %v1487_v24 = vmul.f32 %v4312_v52, %v655_v18  ;;  %v886_v25 = vadd.f32 %v4317_v53, %v816_v19  ;;  %v1625_v19 = vmax.f32 %v1562_v9, 0.0  ;;  %v730_v9 = vpop.permute.xlu0 %729 }
 0x114   : > { %3329 = vmatprep.mubr.msk.f32.mxu0 %vm4029_vm0, %v4030_v36  ;;  %3550 = vmatprep.mubr.msk.f32.mxu1 %vm4029_vm0, %v4030_v36 }
 0x115   : > { %v949_v35 = vmax.f32 %v886_v25, 0.0 }
 0x117   : > { %3330 = vmatmul.mubr.f32.gmra.mrb[58].mxu0 %v940_v30  ;;  %3551 = vmatmul.mubr.f32.gmra.mrb[58].mxu1 %v1610_v31  ;;  %v887_v30 = vadd.f32 %v4317_v53, %v817_v23  ;;  %v1557_v31 = vadd.f32 %v4322_v54, %v1487_v24  ;;  %v1564_v23 = vadd.f32 %v4322_v54, %v1494_v17 }
 0x118   : > { %3332 = vmatprep.mubr.msk.f32.mxu0 %vm4029_vm0, %v4030_v36  ;;  %3553 = vmatprep.mubr.msk.f32.mxu1 %vm4029_vm0, %v4030_v36 }
 0x119   : > { %v950_v42 = vmax.f32 %v887_v30, 0.0  ;;  %v1620_v43 = vmax.f32 %v1557_v31, 0.0  ;;  %v4719_v30 = vld [vmem:[%s5644_s5] ss:$0 sm:$0xff] }
 0x11a   : > { %v1496_v31 = vmul.f32 %v4719_v30, %v700_v26 }
 0x11b   : > { %3333 = vmatmul.mubr.f32.gmra.mrb[60].mxu0 %v941_v39  ;;  %3554 = vmatmul.mubr.f32.gmra.mrb[60].mxu1 %v1611_v40  ;;  %v1489_v39 = vmul.f32 %v4312_v52, %v665_v32  ;;  %v888_v40 = vadd.f32 %v4317_v53, %v818_v33  ;;  %v1627_v33 = vmax.f32 %v1564_v23, 0.0  ;;  %v740_v23 = vpop.permute.xlu0 %739 }
 0x11c   : > { %3335 = vmatprep.mubr.msk.f32.mxu0 %vm4029_vm0, %v4030_v36  ;;  %3556 = vmatprep.mubr.msk.f32.mxu1 %vm4029_vm0, %v4030_v36 }
 0x11d   : > { %v951_v50 = vmax.f32 %v888_v40, 0.0 }
 0x11f   : > { %3336 = vmatmul.mubr.f32.gmra.mrb[62].mxu0 %v942_v45  ;;  %3557 = vmatmul.mubr.f32.gmra.mrb[62].mxu1 %v1612_v46  ;;  %v889_v45 = vadd.f32 %v4317_v53, %v819_v38  ;;  %v1559_v46 = vadd.f32 %v4322_v54, %v1489_v39 }
 0x120   : > { %3338 = vmatprep.mubr.msk.f32.mxu0 %vm4029_vm0, %v4030_v36  ;;  %3559 = vmatprep.mubr.msk.f32.mxu1 %vm4029_vm0, %v4030_v36 }
 0x121   : > { %v952_v60 = vmax.f32 %v889_v45, 0.0  ;;  %v1622_v61 = vmax.f32 %v1559_v46, 0.0  ;;  %v1498_v46 = vmul.f32 %v4719_v30, %v710_v41 }
 0x123   : > { %3339 = vmatmul.mubr.f32.gmra.mrb[64].mxu0 %v943_v57  ;;  %3560 = vmatmul.mubr.f32.gmra.mrb[64].mxu1 %v1613_v58  ;;  %v1491_v57 = vmul.f32 %v4312_v52, %v675_v47  ;;  %v890_v58 = vadd.f32 %v4317_v53, %v820_v48 }
 0x124   : > { %3341 = vmatprep.mubr.msk.f32.mxu0 %vm4029_vm0, %v4030_v36  ;;  %3562 = vmatprep.mubr.msk.f32.mxu1 %vm4029_vm0, %v4030_v36 }
 0x125   : > { %v953_v4 = vmax.f32 %v890_v58, 0.0 }
 0x127   : > { %3342 = vmatmul.mubr.f32.gmra.mrb[66].mxu0 %v944_v63  ;;  %3563 = vmatmul.mubr.f32.gmra.mrb[66].mxu1 %v1614_v0  ;;  %v891_v63 = vadd.f32 %v4317_v53, %v821_v56  ;;  %v1561_v0 = vadd.f32 %v4322_v54, %v1491_v57 }
 0x128   : > { %3344 = vmatprep.mubr.msk.f32.mxu0 %vm4029_vm0, %v4030_v36  ;;  %3565 = vmatprep.mubr.msk.f32.mxu1 %vm4029_vm0, %v4030_v36 }
 0x129   : > { %v954_v10 = vmax.f32 %v891_v63, 0.0  ;;  %v1624_v11 = vmax.f32 %v1561_v0, 0.0  ;;  %v1500_v0 = vmul.f32 %v4719_v30, %v720_v59 }
 0x12b   : > { %3345 = vmatmul.mubr.f32.gmra.mrb[68].mxu0 %v945_v7  ;;  %3566 = vmatmul.mubr.f32.gmra.mrb[68].mxu1 %v1615_v8  ;;  %v1493_v7 = vmul.f32 %v4312_v52, %v685_v1  ;;  %v892_v8 = vadd.f32 %v4317_v53, %v822_v2 }
 0x12c   : > { %3347 = vmatprep.mubr.msk.f32.mxu0 %vm4029_vm0, %v4030_v36  ;;  %3568 = vmatprep.mubr.msk.f32.mxu1 %vm4029_vm0, %v4030_v36 }
 0x12d   : > { %v955_v18 = vmax.f32 %v892_v8, 0.0 }
 0x12f   : > { %3348 = vmatmul.mubr.f32.gmra.mrb[70].mxu0 %v946_v13  ;;  %3569 = vmatmul.mubr.f32.gmra.mrb[70].mxu1 %v1616_v14  ;;  %v893_v13 = vadd.f32 %v4317_v53, %v823_v6  ;;  %v1563_v14 = vadd.f32 %v4322_v54, %v1493_v7  ;;  %v705_v54 = vpop.permute.xlu1 %704 }
 0x130   : > { %3350 = vmatprep.mubr.msk.f32.mxu0 %vm4029_vm0, %v4030_v36  ;;  %3571 = vmatprep.mubr.msk.f32.mxu1 %vm4029_vm0, %v4030_v36 }
 0x131   : > { %v956_v24 = vmax.f32 %v893_v13, 0.0  ;;  %v1626_v25 = vmax.f32 %v1563_v14, 0.0  ;;  %v1502_v14 = vmul.f32 %v4719_v30, %v730_v9 }
 0x133   : > { %3351 = vmatmul.mubr.f32.gmra.mrb[72].mxu0 %v947_v21  ;;  %3572 = vmatmul.mubr.f32.gmra.mrb[72].mxu1 %v1617_v22  ;;  %v1495_v21 = vmul.f32 %v4312_v52, %v695_v15  ;;  %v894_v22 = vadd.f32 %v4317_v53, %v824_v16  ;;  %v895_v52 = vadd.f32 %v4697_v51, %v825_v20  ;;  %v715_v44 = vpop.permute.xlu1 %714  ;;  %v4785_v20 = vld [vmem:[%s5647_s8] ss:$0 sm:$0xff] }
 0x134   : > { %3353 = vmatprep.mubr.msk.f32.mxu0 %vm4029_vm0, %v4030_v36  ;;  %3574 = vmatprep.mubr.msk.f32.mxu1 %vm4029_vm0, %v4030_v36 }
 0x135   : > { %v957_v32 = vmax.f32 %v894_v22, 0.0  ;;  %v958_v39 = vmax.f32 %v895_v52, 0.0 }
 0x137   : > { %3354 = vmatmul.mubr.f32.gmra.mrb[74].mxu0 %v948_v27  ;;  %3575 = vmatmul.mubr.f32.gmra.mrb[74].mxu1 %v1618_v28  ;;  %v4703_v27 = vld [vmem:[%s5645_s6] ss:$0 sm:$0xff]  ;;  %v725_v62 = vpop.permute.xlu1 %724 }
 0x138   : > { %3356 = vmatprep.mubr.msk.f32.mxu0 %vm4029_vm0, %v4030_v36  ;;  %3577 = vmatprep.mubr.msk.f32.mxu1 %vm4029_vm0, %v4030_v36  ;;  %v1565_v53 = vadd.f32 %v4703_v27, %v1495_v21  ;;  %v4713_v28 = vld [vmem:[%s5657_s1] ss:$0 sm:$0xff]  ;;  %v1566_v38 = vadd.f32 %v4703_v27, %v1496_v31  ;;  %v1568_v56 = vadd.f32 %v4703_v27, %v1498_v46 }
 0x139   : > { %v826_v29 = vmul.f32 %v4713_v28, %v700_v26  ;;  %v827_v34 = vmul.f32 %v4713_v28, %v705_v54  ;;  %v828_v45 = vmul.f32 %v4713_v28, %v710_v41  ;;  %v829_v49 = vmul.f32 %v4713_v28, %v715_v44 }
 0x13a   : > { %v1628_v40 = vmax.f32 %v1565_v53, 0.0  ;;  %v1629_v48 = vmax.f32 %v1566_v38, 0.0  ;;  %v830_v63 = vmul.f32 %v4713_v28, %v720_v59  ;;  %v1631_v2 = vmax.f32 %v1568_v56, 0.0 }
 0x13b   : > { %3357 = vmatmul.mubr.f32.gmra.mrb[76].mxu0 %v949_v35  ;;  %3578 = vmatmul.mubr.f32.gmra.mrb[76].mxu1 %v1619_v37  ;;  %v1497_v35 = vmul.f32 %v4719_v30, %v705_v54  ;;  %v896_v37 = vadd.f32 %v4697_v51, %v826_v29  ;;  %v831_v3 = vmul.f32 %v4713_v28, %v725_v62  ;;  %v735_v12 = vpop.permute.xlu1 %734 }
 0x13c   : > { %3359 = vmatprep.mubr.msk.f32.mxu0 %vm4029_vm0, %v4030_v36  ;;  %3580 = vmatprep.mubr.msk.f32.mxu1 %vm4029_vm0, %v4030_v36  ;;  %v1570_v6 = vadd.f32 %v4703_v27, %v1500_v0  ;;  %v832_v13 = vmul.f32 %v4713_v28, %v730_v9  ;;  %v833_v17 = vmul.f32 %v4713_v28, %v735_v12 }
 0x13d   : > { %v959_v47 = vmax.f32 %v896_v37, 0.0  ;;  %v1572_v22 = vadd.f32 %v4703_v27, %v1502_v14  ;;  %v1504_v37 = vmul.f32 %v4719_v30, %v740_v23 }
 0x13e   : > { %v1633_v16 = vmax.f32 %v1570_v6, 0.0  ;;  %v902_v21 = vadd.f32 %v4697_v51, %v832_v13 }
 0x13f   : > { %3360 = vmatmul.mubr.f32.gmra.mrb[78].mxu0 %v950_v42  ;;  %3581 = vmatmul.mubr.f32.gmra.mrb[78].mxu1 %v1620_v43  ;;  %v897_v42 = vadd.f32 %v4697_v51, %v827_v34  ;;  %v1567_v43 = vadd.f32 %v4703_v27, %v1497_v35  ;;  %v745_v34 = vpop.permute.xlu1 %744  ;;  %v834_v35 = vmul.f32 %v4713_v28, %v740_v23 }
 0x140   : > { %3362 = vmatprep.mubr.msk.f32.mxu0 %vm4029_vm0, %v4030_v36  ;;  %3583 = vmatprep.mubr.msk.f32.mxu1 %vm4029_vm0, %v4030_v36  ;;  %v965_v38 = vmax.f32 %v902_v21, 0.0  ;;  %v835_v46 = vmul.f32 %v4713_v28, %v745_v34 }
 0x141   : > { %v960_v57 = vmax.f32 %v897_v42, 0.0  ;;  %v1630_v58 = vmax.f32 %v1567_v43, 0.0 }
 0x143   : > { %3363 = vmatmul.mubr.f32.gmra.mrb[80].mxu0 %v951_v50  ;;  %3584 = vmatmul.mubr.f32.gmra.mrb[80].mxu1 %v1621_v55  ;;  %v1499_v50 = vmul.f32 %v4719_v30, %v715_v44  ;;  %v898_v55 = vadd.f32 %v4697_v51, %v828_v45 }
 0x144   : > { %3365 = vmatprep.mubr.msk.f32.mxu0 %vm4029_vm0, %v4030_v36  ;;  %3586 = vmatprep.mubr.msk.f32.mxu1 %vm4029_vm0, %v4030_v36 }
 0x145   : > { %v961_v1 = vmax.f32 %v898_v55, 0.0 }
 0x147   : > { %3366 = vmatmul.mubr.f32.gmra.mrb[82].mxu0 %v952_v60  ;;  %3587 = vmatmul.mubr.f32.gmra.mrb[82].mxu1 %v1622_v61  ;;  %v899_v60 = vadd.f32 %v4697_v51, %v829_v49  ;;  %v1569_v61 = vadd.f32 %v4703_v27, %v1499_v50  ;;  %v1574_v49 = vadd.f32 %v4703_v27, %v1504_v37  ;;  %v750_v50 = vpop.permute.xlu0 %749 }
 0x148   : > { %3368 = vmatprep.mubr.msk.f32.mxu0 %vm4029_vm0, %v4030_v36  ;;  %3589 = vmatprep.mubr.msk.f32.mxu1 %vm4029_vm0, %v4030_v36 }
 0x149   : > { %v962_v7 = vmax.f32 %v899_v60, 0.0  ;;  %v1632_v8 = vmax.f32 %v1569_v61, 0.0 }
 0x14b   : > { %3369 = vmatmul.mubr.f32.gmra.mrb[84].mxu0 %v953_v4  ;;  %3590 = vmatmul.mubr.f32.gmra.mrb[84].mxu1 %v1623_v5  ;;  %v1501_v4 = vmul.f32 %v4719_v30, %v725_v62  ;;  %v900_v5 = vadd.f32 %v4697_v51, %v830_v63  ;;  %v905_v63 = vadd.f32 %v4697_v51, %v835_v46 }
 0x14c   : > { %3371 = vmatprep.mubr.msk.f32.mxu0 %vm4029_vm0, %v4030_v36  ;;  %3592 = vmatprep.mubr.msk.f32.mxu1 %vm4029_vm0, %v4030_v36 }
 0x14d   : > { %v963_v15 = vmax.f32 %v900_v5, 0.0  ;;  %v1637_v5 = vmax.f32 %v1574_v49, 0.0 }
 0x14f   : > { %3372 = vmatmul.mubr.f32.gmra.mrb[86].mxu0 %v954_v10  ;;  %3593 = vmatmul.mubr.f32.gmra.mrb[86].mxu1 %v1624_v11  ;;  %v901_v10 = vadd.f32 %v4697_v51, %v831_v3  ;;  %v1571_v11 = vadd.f32 %v4703_v27, %v1501_v4  ;;  %v1506_v3 = vmul.f32 %v4719_v30, %v750_v50 }
 0x150   : > { %3374 = vmatprep.mubr.msk.f32.mxu0 %vm4029_vm0, %v4030_v36  ;;  %3595 = vmatprep.mubr.msk.f32.mxu1 %vm4029_vm0, %v4030_v36 }
 0x153   : > { %3375 = vmatmul.mubr.f32.gmra.mrb[88].mxu0 %v955_v18  ;;  %3596 = vmatmul.mubr.f32.gmra.mrb[88].mxu1 %v1625_v19  ;;  %v1503_v18 = vmul.f32 %v4719_v30, %v735_v12  ;;  %v4778_v19 = vld [vmem:[%s5643_s4] ss:$0 sm:$0xff] }
 0x154   : > { %3377 = vmatprep.mubr.msk.f32.mxu0 %vm4029_vm0, %v4030_v36  ;;  %3598 = vmatprep.mubr.msk.f32.mxu1 %vm4029_vm0, %v4030_v36 }
 0x157   : > { %3378 = vmatmul.mubr.f32.gmra.mrb[90].mxu0 %v956_v24  ;;  %3599 = vmatmul.mubr.f32.gmra.mrb[90].mxu1 %v1626_v25  ;;  %v964_v24 = vmax.f32 %v901_v10, 0.0  ;;  %v1634_v25 = vmax.f32 %v1571_v11, 0.0 }
 0x158   : > { %3380 = vmatprep.mubr.msk.f32.mxu0 %vm4029_vm0, %v4030_v36  ;;  %3601 = vmatprep.mubr.msk.f32.mxu1 %vm4029_vm0, %v4030_v36 }
 0x15b   : > { %3381 = vmatmul.mubr.f32.gmra.mrb[92].mxu0 %v957_v32  ;;  %3602 = vmatmul.mubr.f32.gmra.mrb[92].mxu1 %v1627_v33  ;;  %v903_v32 = vadd.f32 %v4697_v51, %v833_v17  ;;  %v1573_v33 = vadd.f32 %v4703_v27, %v1503_v18  ;;  %v968_v17 = vmax.f32 %v905_v63, 0.0 }
 0x15c   : > { %3383 = vmatprep.mubr.msk.f32.mxu0 %vm4029_vm0, %v4030_v36  ;;  %3604 = vmatprep.mubr.msk.f32.mxu1 %vm4029_vm0, %v4030_v36 }
 0x15d   : > { %v966_v55 = vmax.f32 %v903_v32, 0.0  ;;  %v1636_v56 = vmax.f32 %v1573_v33, 0.0 }
 0x15f   : > { %3384 = vmatmul.mubr.f32.gmra.mrb[94].mxu0 %v958_v39  ;;  %3605 = vmatmul.mubr.f32.gmra.mrb[94].mxu1 %v1628_v40  ;;  %v1635_v39 = vmax.f32 %v1572_v22, 0.0 }
 0x160   : > { %3386 = vmatprep.mubr.msk.f32.mxu0 %vm4029_vm0, %v4030_v36  ;;  %3607 = vmatprep.mubr.msk.f32.mxu1 %vm4029_vm0, %v4030_v36 }
 0x163   : > { %3387 = vmatmul.mubr.f32.gmra.mrb[96].mxu0 %v959_v47  ;;  %3608 = vmatmul.mubr.f32.gmra.mrb[96].mxu1 %v1629_v48  ;;  %v1505_v47 = vmul.f32 %v4719_v30, %v745_v34  ;;  %v904_v48 = vadd.f32 %v4697_v51, %v834_v35 }
 0x164   : > { %3389 = vmatprep.mubr.msk.f32.mxu0 %vm4029_vm0, %v4030_v36  ;;  %3610 = vmatprep.mubr.msk.f32.mxu1 %vm4029_vm0, %v4030_v36 }
 0x165   : > { %v1575_v0 = vadd.f32 %v4703_v27, %v1505_v47  ;;  %v967_v4 = vmax.f32 %v904_v48, 0.0 }
 0x167   : > { %3390 = vmatmul.mubr.f32.gmra.mrb[98].mxu0 %v960_v57  ;;  %3611 = vmatmul.mubr.f32.gmra.mrb[98].mxu1 %v1630_v58  ;;  %v1638_v18 = vmax.f32 %v1575_v0, 0.0 }
 0x168   : > { %3392 = vmatprep.mubr.msk.f32.mxu0 %vm4029_vm0, %v4030_v36  ;;  %3613 = vmatprep.mubr.msk.f32.mxu1 %vm4029_vm0, %v4030_v36 }
 0x16b   : > { %3393 = vmatmul.mubr.f32.gmra.mrb[100].mxu0 %v961_v1  ;;  %3614 = vmatmul.mubr.f32.gmra.mrb[100].mxu1 %v1631_v2  ;;  %v755_v1 = vpop.permute.xlu1 %754  ;;  %v836_v2 = vmul.f32 %v4713_v28, %v750_v50 }
 0x16c   : > { %3395 = vmatprep.mubr.msk.f32.mxu0 %vm4029_vm0, %v4030_v36  ;;  %3616 = vmatprep.mubr.msk.f32.mxu1 %vm4029_vm0, %v4030_v36  ;;  %v837_v12 = vmul.f32 %v4713_v28, %v755_v1  ;;  %v1507_v13 = vmul.f32 %v4719_v30, %v755_v1 }
 0x16d   : > { %v906_v14 = vadd.f32 %v4697_v51, %v836_v2 }
 0x16f   : > { %3396 = vmatmul.mubr.f32.gmra.mrb[102].mxu0 %v962_v7  ;;  %3617 = vmatmul.mubr.f32.gmra.mrb[102].mxu1 %v1632_v8  ;;  %v969_v32 = vmax.f32 %v906_v14, 0.0 }
 0x170   : > { %3398 = vmatprep.mubr.msk.f32.mxu0 %vm4029_vm0, %v4030_v36  ;;  %3619 = vmatprep.mubr.msk.f32.mxu1 %vm4029_vm0, %v4030_v36 }
 0x173   : > { %3399 = vmatmul.mubr.f32.gmra.mrb[104].mxu0 %v963_v15  ;;  %3620 = vmatmul.mubr.f32.gmra.mrb[104].mxu1 %v1633_v16  ;;  %v1576_v15 = vadd.f32 %v4703_v27, %v1506_v3  ;;  %v760_v16 = vpop.permute.xlu0 %759 }
 0x174   : > { %3401 = vmatprep.mubr.msk.f32.mxu0 %vm4029_vm0, %v4030_v36  ;;  %3622 = vmatprep.mubr.msk.f32.mxu1 %vm4029_vm0, %v4030_v36 }
 0x175   : > { %v1639_v33 = vmax.f32 %v1576_v15, 0.0 }
 0x176   : > { %v1063_v26 = vpop.f32.mrb[0].mxu0  ;;  %v1733_v52 = vpop.f32.mrb[0].mxu1 }
 0x177   : > { %v1064_v53 = vadd.f32 %v4778_v19, %v1063_v26  ;;  %v1734_v54 = vadd.f32 %v4785_v20, %v1733_v52  ;;  %v3244_v29 = vpop.f32.mrb[1].mxu0  ;;  %3402 = vmatmul.mubr.f32.gmra.mrb[106].mxu0 %v964_v24  ;;  %v3465_v31 = vpop.f32.mrb[1].mxu1  ;;  %3623 = vmatmul.mubr.f32.gmra.mrb[106].mxu1 %v1634_v25  ;;  %v907_v52 = vadd.f32 %v4697_v51, %v837_v12 }
 0x178   : > { %3404 = vmatprep.mubr.msk.f32.mxu0 %vm4029_vm0, %v4030_v36  ;;  %3625 = vmatprep.mubr.msk.f32.mxu1 %vm4029_vm0, %v4030_v36  ;;  %v838_v29 = vmul.f32 %v4713_v28, %v760_v16  ;;  %v1508_v31 = vmul.f32 %v4719_v30, %v760_v16 }
 0x179   : > { %1378 = vst.msk [vmem:[%s4802_s25] sm:$0xff] %vm1377_vm1, %v1064_v53  ;;  %2047 = vst.msk [vmem:[%s4807_s27] sm:$0xff] %vm1377_vm1, %v1734_v54  ;;  %v1577_v53 = vadd.f32 %v4703_v27, %v1507_v13  ;;  %v765_v54 = vpop.permute.xlu1 %764  ;;  %v970_v46 = vmax.f32 %v907_v52, 0.0 }
 0x17a   : > { %v1068_v40 = vpop.f32.mrb[2].mxu0  ;;  %v1738_v41 = vpop.f32.mrb[2].mxu1 }
 0x17b   : > { %v1069_v42 = vadd.f32 %v4778_v19, %v1068_v40  ;;  %v1739_v43 = vadd.f32 %v4785_v20, %v1738_v41  ;;  %v3247_v44 = vpop.f32.mrb[3].mxu0  ;;  %3405 = vmatmul.mubr.f32.gmra.mrb[108].mxu0 %v965_v38  ;;  %v3468_v45 = vpop.f32.mrb[3].mxu1  ;;  %3626 = vmatmul.mubr.f32.gmra.mrb[108].mxu1 %v1635_v39  ;;  %v839_v41 = vmul.f32 %v4713_v28, %v765_v54  ;;  %v1640_v47 = vmax.f32 %v1577_v53, 0.0 }
 0x17c   : > { %3407 = vmatprep.mubr.msk.f32.mxu0 %vm4029_vm0, %v4030_v36  ;;  %3628 = vmatprep.mubr.msk.f32.mxu1 %vm4029_vm0, %v4030_v36  ;;  %v1578_v44 = vadd.f32 %v4703_v27, %v1508_v31  ;;  %v770_v45 = vpop.permute.xlu0 %769 }
 0x17d   : > { %1379 = vst.msk [vmem:[%s4802_s25 + $0x8] sm:$0xff] %vm1377_vm1, %v1069_v42  ;;  %2048 = vst.msk [vmem:[%s4807_s27 + $0x8] sm:$0xff] %vm1377_vm1, %v1739_v43  ;;  %v1509_v42 = vmul.f32 %v4719_v30, %v765_v54  ;;  %v908_v43 = vadd.f32 %v4697_v51, %v838_v29 }
 0x17e   : > { %v1073_v57 = vpop.f32.mrb[4].mxu0  ;;  %v1743_v58 = vpop.f32.mrb[4].mxu1  ;;  %v1641_v63 = vmax.f32 %v1578_v44, 0.0 }
 0x17f   : > { %v1074_v59 = vadd.f32 %v4778_v19, %v1073_v57  ;;  %v1744_v60 = vadd.f32 %v4785_v20, %v1743_v58  ;;  %v3250_v61 = vpop.f32.mrb[5].mxu0  ;;  %3408 = vmatmul.mubr.f32.gmra.mrb[110].mxu0 %v966_v55  ;;  %v3471_v62 = vpop.f32.mrb[5].mxu1  ;;  %3629 = vmatmul.mubr.f32.gmra.mrb[110].mxu1 %v1636_v56  ;;  %v909_v58 = vadd.f32 %v4697_v51, %v839_v41 }
 0x180   : > { %3410 = vmatprep.mubr.msk.f32.mxu0 %vm4029_vm0, %v4030_v36  ;;  %3631 = vmatprep.mubr.msk.f32.mxu1 %vm4029_vm0, %v4030_v36  ;;  %v1510_v61 = vmul.f32 %v4719_v30, %v770_v45  ;;  %v971_v62 = vmax.f32 %v908_v43, 0.0 }
 0x181   : > { %1380 = vst.msk [vmem:[%s4802_s25 + $0x10] sm:$0xff] %vm1377_vm1, %v1074_v59  ;;  %2049 = vst.msk [vmem:[%s4807_s27 + $0x10] sm:$0xff] %vm1377_vm1, %v1744_v60  ;;  %v1579_v59 = vadd.f32 %v4703_v27, %v1509_v42  ;;  %v840_v60 = vmul.f32 %v4713_v28, %v770_v45  ;;  %v972_v28 = vmax.f32 %v909_v58, 0.0 }
 0x182   : > { %v1078_v6 = vpop.f32.mrb[6].mxu0  ;;  %v1748_v7 = vpop.f32.mrb[6].mxu1 }
 0x183   : > { %v1079_v8 = vadd.f32 %v4778_v19, %v1078_v6  ;;  %v1749_v9 = vadd.f32 %v4785_v20, %v1748_v7  ;;  %v3253_v10 = vpop.f32.mrb[7].mxu0  ;;  %3411 = vmatmul.mubr.f32.gmra.mrb[112].mxu0 %v967_v4  ;;  %v3474_v11 = vpop.f32.mrb[7].mxu1  ;;  %3632 = vmatmul.mubr.f32.gmra.mrb[112].mxu1 %v1637_v5  ;;  %v1642_v30 = vmax.f32 %v1579_v59, 0.0  ;;  %v910_v6 = vadd.f32 %v4697_v51, %v840_v60 }
 0x184   : > { %3413 = vmatprep.mubr.msk.f32.mxu0 %vm4029_vm0, %v4030_v36  ;;  %3634 = vmatprep.mubr.msk.f32.mxu1 %vm4029_vm0, %v4030_v36  ;;  %v1580_v7 = vadd.f32 %v4703_v27, %v1510_v61 }
 0x185   : > { %1381 = vst.msk [vmem:[%s4802_s25 + $0x18] sm:$0xff] %vm1377_vm1, %v1079_v8  ;;  %2050 = vst.msk [vmem:[%s4807_s27 + $0x18] sm:$0xff] %vm1377_vm1, %v1749_v9  ;;  %v973_v51 = vmax.f32 %v910_v6, 0.0 }
 0x186   : > { %v1083_v21 = vpop.f32.mrb[8].mxu0  ;;  %v1753_v22 = vpop.f32.mrb[8].mxu1  ;;  %v1643_v27 = vmax.f32 %v1580_v7, 0.0 }
 0x187   : > { %v1084_v23 = vadd.f32 %v4778_v19, %v1083_v21  ;;  %v1754_v24 = vadd.f32 %v4785_v20, %v1753_v22  ;;  %v3256_v25 = vpop.f32.mrb[9].mxu0  ;;  %3414 = vmatmul.mubr.f32.gmra.mrb[114].mxu0 %v968_v17  ;;  %v3477_v26 = vpop.f32.mrb[9].mxu1  ;;  %3635 = vmatmul.mubr.f32.gmra.mrb[114].mxu1 %v1638_v18 }
 0x188   : > { %3416 = vmatprep.mubr.msk.f32.mxu0 %vm4029_vm0, %v4030_v36  ;;  %3637 = vmatprep.mubr.msk.f32.mxu1 %vm4029_vm0, %v4030_v36 }
 0x189   : > { %1382 = vst.msk [vmem:[%s4802_s25 + $0x20] sm:$0xff] %vm1377_vm1, %v1084_v23  ;;  %2051 = vst.msk [vmem:[%s4807_s27 + $0x20] sm:$0xff] %vm1377_vm1, %v1754_v24 }
 0x18a   : > { %v1088_v34 = vpop.f32.mrb[10].mxu0  ;;  %v1758_v35 = vpop.f32.mrb[10].mxu1 }
 0x18b   : > { %v1089_v37 = vadd.f32 %v4778_v19, %v1088_v34  ;;  %v1759_v38 = vadd.f32 %v4785_v20, %v1758_v35  ;;  %v3259_v39 = vpop.f32.mrb[11].mxu0  ;;  %3417 = vmatmul.mubr.f32.gmra.mrb[116].mxu0 %v969_v32  ;;  %v3480_v40 = vpop.f32.mrb[11].mxu1  ;;  %3638 = vmatmul.mubr.f32.gmra.mrb[116].mxu1 %v1639_v33 }
 0x18c   : > { %3419 = vmatprep.mubr.msk.f32.mxu0 %vm4029_vm0, %v4030_v36  ;;  %3640 = vmatprep.mubr.msk.f32.mxu1 %vm4029_vm0, %v4030_v36 }
 0x18d   : > { %1383 = vst.msk [vmem:[%s4802_s25 + $0x28] sm:$0xff] %vm1377_vm1, %v1089_v37  ;;  %2052 = vst.msk [vmem:[%s4807_s27 + $0x28] sm:$0xff] %vm1377_vm1, %v1759_v38 }
 0x18e   : > { %v1093_v48 = vpop.f32.mrb[12].mxu0  ;;  %v1763_v49 = vpop.f32.mrb[12].mxu1 }
 0x18f   : > { %v1094_v50 = vadd.f32 %v4778_v19, %v1093_v48  ;;  %v1764_v55 = vadd.f32 %v4785_v20, %v1763_v49  ;;  %v3262_v56 = vpop.f32.mrb[13].mxu0  ;;  %3420 = vmatmul.mubr.f32.gmra.mrb[118].mxu0 %v970_v46  ;;  %v3483_v57 = vpop.f32.mrb[13].mxu1  ;;  %3641 = vmatmul.mubr.f32.gmra.mrb[118].mxu1 %v1640_v47 }
 0x190   : > { %3422 = vmatprep.mubr.msk.f32.mxu0 %vm4029_vm0, %v4030_v36  ;;  %3643 = vmatprep.mubr.msk.f32.mxu1 %vm4029_vm0, %v4030_v36 }
 0x191   : > { %1384 = vst.msk [vmem:[%s4802_s25 + $0x30] sm:$0xff] %vm1377_vm1, %v1094_v50  ;;  %2053 = vst.msk [vmem:[%s4807_s27 + $0x30] sm:$0xff] %vm1377_vm1, %v1764_v55 }
 0x192   : > { %v1098_v0 = vpop.f32.mrb[14].mxu0  ;;  %v1768_v1 = vpop.f32.mrb[14].mxu1 }
 0x193   : > { %v1099_v2 = vadd.f32 %v4778_v19, %v1098_v0  ;;  %v1769_v3 = vadd.f32 %v4785_v20, %v1768_v1  ;;  %v3265_v4 = vpop.f32.mrb[15].mxu0  ;;  %3423 = vmatmul.mubr.f32.gmra.mrb[120].mxu0 %v971_v62  ;;  %v3486_v5 = vpop.f32.mrb[15].mxu1  ;;  %3644 = vmatmul.mubr.f32.gmra.mrb[120].mxu1 %v1641_v63 }
 0x194   : > { %3425 = vmatprep.mubr.msk.f32.mxu0 %vm4029_vm0, %v4030_v36  ;;  %3646 = vmatprep.mubr.msk.f32.mxu1 %vm4029_vm0, %v4030_v36 }
 0x195   : > { %1385 = vst.msk [vmem:[%s4802_s25 + $0x38] sm:$0xff] %vm1377_vm1, %v1099_v2  ;;  %2054 = vst.msk [vmem:[%s4807_s27 + $0x38] sm:$0xff] %vm1377_vm1, %v1769_v3 }
 0x196   : > { %v1103_v8 = vpop.f32.mrb[16].mxu0  ;;  %v1773_v9 = vpop.f32.mrb[16].mxu1 }
 0x197   : > { %v1104_v10 = vadd.f32 %v4778_v19, %v1103_v8  ;;  %v1774_v11 = vadd.f32 %v4785_v20, %v1773_v9  ;;  %v3268_v12 = vpop.f32.mrb[17].mxu0  ;;  %3426 = vmatmul.mubr.f32.gmra.mrb[122].mxu0 %v972_v28  ;;  %v3489_v13 = vpop.f32.mrb[17].mxu1  ;;  %3647 = vmatmul.mubr.f32.gmra.mrb[122].mxu1 %v1642_v30 }
 0x198   : > { %3428 = vmatprep.mubr.msk.f32.mxu0 %vm4029_vm0, %v4030_v36  ;;  %3649 = vmatprep.mubr.msk.f32.mxu1 %vm4029_vm0, %v4030_v36 }
 0x199   : > { %1386 = vst.msk [vmem:[%s4802_s25 + $0x40] sm:$0xff] %vm1377_vm1, %v1104_v10  ;;  %2055 = vst.msk [vmem:[%s4807_s27 + $0x40] sm:$0xff] %vm1377_vm1, %v1774_v11 }
 0x19a   : > { %v1108_v14 = vpop.f32.mrb[18].mxu0  ;;  %v1778_v15 = vpop.f32.mrb[18].mxu1 }
 0x19b   : > { %v1109_v16 = vadd.f32 %v4778_v19, %v1108_v14  ;;  %v1779_v17 = vadd.f32 %v4785_v20, %v1778_v15  ;;  %v3271_v18 = vpop.f32.mrb[19].mxu0  ;;  %3429 = vmatmul.mubr.f32.gmra.mrb[124].mxu0 %v973_v51  ;;  %v3492_v21 = vpop.f32.mrb[19].mxu1  ;;  %3650 = vmatmul.mubr.f32.gmra.mrb[124].mxu1 %v1643_v27 }
 0x19d   : > { %1387 = vst.msk [vmem:[%s4802_s25 + $0x48] sm:$0xff] %vm1377_vm1, %v1109_v16  ;;  %2056 = vst.msk [vmem:[%s4807_s27 + $0x48] sm:$0xff] %vm1377_vm1, %v1779_v17 }
 0x19e   : > { %v1113_v36 = vpop.f32.mrb[20].mxu0  ;;  %v1783_v22 = vpop.f32.mrb[20].mxu1 }
 0x19f   : > { %v1114_v23 = vadd.f32 %v4778_v19, %v1113_v36  ;;  %v1784_v24 = vadd.f32 %v4785_v20, %v1783_v22  ;;  %v3274_v25 = vpop.f32.mrb[21].mxu0  ;;  %v3495_v26 = vpop.f32.mrb[21].mxu1 }
 0x1a1   : > { %1388 = vst.msk [vmem:[%s4802_s25 + $0x50] sm:$0xff] %vm1377_vm1, %v1114_v23  ;;  %2057 = vst.msk [vmem:[%s4807_s27 + $0x50] sm:$0xff] %vm1377_vm1, %v1784_v24 }
 0x1a2   : > { %v1118_v52 = vpop.f32.mrb[22].mxu0  ;;  %v1788_v53 = vpop.f32.mrb[22].mxu1 }
 0x1a3   : > { %v1119_v54 = vadd.f32 %v4778_v19, %v1118_v52  ;;  %v1789_v29 = vadd.f32 %v4785_v20, %v1788_v53  ;;  %v3277_v31 = vpop.f32.mrb[23].mxu0  ;;  %v3498_v32 = vpop.f32.mrb[23].mxu1 }
 0x1a5   : > { %1389 = vst.msk [vmem:[%s4802_s25 + $0x58] sm:$0xff] %vm1377_vm1, %v1119_v54  ;;  %2058 = vst.msk [vmem:[%s4807_s27 + $0x58] sm:$0xff] %vm1377_vm1, %v1789_v29 }
 0x1a6   : > { %v1123_v33 = vpop.f32.mrb[24].mxu0  ;;  %v1793_v34 = vpop.f32.mrb[24].mxu1 }
 0x1a7   : > { %v1124_v35 = vadd.f32 %v4778_v19, %v1123_v33  ;;  %v1794_v37 = vadd.f32 %v4785_v20, %v1793_v34  ;;  %v3280_v38 = vpop.f32.mrb[25].mxu0  ;;  %v3501_v39 = vpop.f32.mrb[25].mxu1 }
 0x1a9   : > { %1390 = vst.msk [vmem:[%s4802_s25 + $0x60] sm:$0xff] %vm1377_vm1, %v1124_v35  ;;  %2059 = vst.msk [vmem:[%s4807_s27 + $0x60] sm:$0xff] %vm1377_vm1, %v1794_v37 }
 0x1aa   : > { %v1128_v40 = vpop.f32.mrb[26].mxu0  ;;  %v1798_v41 = vpop.f32.mrb[26].mxu1 }
 0x1ab   : > { %v1129_v42 = vadd.f32 %v4778_v19, %v1128_v40  ;;  %v1799_v43 = vadd.f32 %v4785_v20, %v1798_v41  ;;  %v3283_v44 = vpop.f32.mrb[27].mxu0  ;;  %v3504_v45 = vpop.f32.mrb[27].mxu1 }
 0x1ad   : > { %1391 = vst.msk [vmem:[%s4802_s25 + $0x68] sm:$0xff] %vm1377_vm1, %v1129_v42  ;;  %2060 = vst.msk [vmem:[%s4807_s27 + $0x68] sm:$0xff] %vm1377_vm1, %v1799_v43 }
 0x1ae   : > { %v1133_v46 = vpop.f32.mrb[28].mxu0  ;;  %v1803_v47 = vpop.f32.mrb[28].mxu1 }
 0x1af   : > { %v1134_v48 = vadd.f32 %v4778_v19, %v1133_v46  ;;  %v1804_v49 = vadd.f32 %v4785_v20, %v1803_v47  ;;  %v3286_v50 = vpop.f32.mrb[29].mxu0  ;;  %v3507_v55 = vpop.f32.mrb[29].mxu1 }
 0x1b1   : > { %1392 = vst.msk [vmem:[%s4802_s25 + $0x70] sm:$0xff] %vm1377_vm1, %v1134_v48  ;;  %2061 = vst.msk [vmem:[%s4807_s27 + $0x70] sm:$0xff] %vm1377_vm1, %v1804_v49 }
 0x1b2   : > { %v1138_v56 = vpop.f32.mrb[30].mxu0  ;;  %v1808_v57 = vpop.f32.mrb[30].mxu1 }
 0x1b3   : > { %v1139_v58 = vadd.f32 %v4778_v19, %v1138_v56  ;;  %v1809_v59 = vadd.f32 %v4785_v20, %v1808_v57  ;;  %v3289_v60 = vpop.f32.mrb[31].mxu0  ;;  %v3510_v61 = vpop.f32.mrb[31].mxu1 }
 0x1b5   : > { %1393 = vst.msk [vmem:[%s4802_s25 + $0x78] sm:$0xff] %vm1377_vm1, %v1139_v58  ;;  %2062 = vst.msk [vmem:[%s4807_s27 + $0x78] sm:$0xff] %vm1377_vm1, %v1809_v59 }
 0x1b6   : > { %v1143_v62 = vpop.f32.mrb[32].mxu0  ;;  %v1813_v63 = vpop.f32.mrb[32].mxu1 }
 0x1b7   : > { %v1144_v0 = vadd.f32 %v4778_v19, %v1143_v62  ;;  %v1814_v1 = vadd.f32 %v4785_v20, %v1813_v63  ;;  %v3292_v2 = vpop.f32.mrb[33].mxu0  ;;  %v3513_v3 = vpop.f32.mrb[33].mxu1 }
 0x1b9   : > { %1394 = vst.msk [vmem:[%s4802_s25 + $0x80] sm:$0xff] %vm1377_vm1, %v1144_v0  ;;  %2063 = vst.msk [vmem:[%s4807_s27 + $0x80] sm:$0xff] %vm1377_vm1, %v1814_v1 }
 0x1ba   : > { %v1148_v4 = vpop.f32.mrb[34].mxu0  ;;  %v1818_v5 = vpop.f32.mrb[34].mxu1 }
 0x1bb   : > { %v1149_v28 = vadd.f32 %v4778_v19, %v1148_v4  ;;  %v1819_v30 = vadd.f32 %v4785_v20, %v1818_v5  ;;  %v3295_v6 = vpop.f32.mrb[35].mxu0  ;;  %v3516_v7 = vpop.f32.mrb[35].mxu1 }
 0x1bd   : > { %1395 = vst.msk [vmem:[%s4802_s25 + $0x88] sm:$0xff] %vm1377_vm1, %v1149_v28  ;;  %2064 = vst.msk [vmem:[%s4807_s27 + $0x88] sm:$0xff] %vm1377_vm1, %v1819_v30 }
 0x1be   : > { %v1153_v8 = vpop.f32.mrb[36].mxu0  ;;  %v1823_v9 = vpop.f32.mrb[36].mxu1 }
 0x1bf   : > { %v1154_v10 = vadd.f32 %v4778_v19, %v1153_v8  ;;  %v1824_v11 = vadd.f32 %v4785_v20, %v1823_v9  ;;  %v3298_v12 = vpop.f32.mrb[37].mxu0  ;;  %v3519_v13 = vpop.f32.mrb[37].mxu1 }
 0x1c1   : > { %1396 = vst.msk [vmem:[%s4802_s25 + $0x90] sm:$0xff] %vm1377_vm1, %v1154_v10  ;;  %2065 = vst.msk [vmem:[%s4807_s27 + $0x90] sm:$0xff] %vm1377_vm1, %v1824_v11 }
 0x1c2   : > { %v1158_v51 = vpop.f32.mrb[38].mxu0  ;;  %v1828_v27 = vpop.f32.mrb[38].mxu1 }
 0x1c3   : > { %v1159_v14 = vadd.f32 %v4778_v19, %v1158_v51  ;;  %v1829_v15 = vadd.f32 %v4785_v20, %v1828_v27  ;;  %v3301_v16 = vpop.f32.mrb[39].mxu0  ;;  %v3522_v17 = vpop.f32.mrb[39].mxu1 }
 0x1c5   : > { %1397 = vst.msk [vmem:[%s4802_s25 + $0x98] sm:$0xff] %vm1377_vm1, %v1159_v14  ;;  %2066 = vst.msk [vmem:[%s4807_s27 + $0x98] sm:$0xff] %vm1377_vm1, %v1829_v15 }
 0x1c6   : > { %v1163_v18 = vpop.f32.mrb[40].mxu0  ;;  %v1833_v21 = vpop.f32.mrb[40].mxu1 }
 0x1c7   : > { %v1164_v36 = vadd.f32 %v4778_v19, %v1163_v18  ;;  %v1834_v22 = vadd.f32 %v4785_v20, %v1833_v21  ;;  %v3304_v23 = vpop.f32.mrb[41].mxu0  ;;  %v3525_v24 = vpop.f32.mrb[41].mxu1 }
 0x1c9   : > { %1398 = vst.msk [vmem:[%s4802_s25 + $0xa0] sm:$0xff] %vm1377_vm1, %v1164_v36  ;;  %2067 = vst.msk [vmem:[%s4807_s27 + $0xa0] sm:$0xff] %vm1377_vm1, %v1834_v22 }
 0x1ca   : > { %v1168_v25 = vpop.f32.mrb[42].mxu0  ;;  %v1838_v26 = vpop.f32.mrb[42].mxu1 }
 0x1cb   : > { %v1169_v52 = vadd.f32 %v4778_v19, %v1168_v25  ;;  %v1839_v53 = vadd.f32 %v4785_v20, %v1838_v26  ;;  %v3307_v54 = vpop.f32.mrb[43].mxu0  ;;  %v3528_v29 = vpop.f32.mrb[43].mxu1 }
 0x1cd   : > { %1399 = vst.msk [vmem:[%s4802_s25 + $0xa8] sm:$0xff] %vm1377_vm1, %v1169_v52  ;;  %2068 = vst.msk [vmem:[%s4807_s27 + $0xa8] sm:$0xff] %vm1377_vm1, %v1839_v53 }
 0x1ce   : > { %v1173_v31 = vpop.f32.mrb[44].mxu0  ;;  %v1843_v32 = vpop.f32.mrb[44].mxu1 }
 0x1cf   : > { %v1174_v33 = vadd.f32 %v4778_v19, %v1173_v31  ;;  %v1844_v34 = vadd.f32 %v4785_v20, %v1843_v32  ;;  %v3310_v35 = vpop.f32.mrb[45].mxu0  ;;  %v3531_v37 = vpop.f32.mrb[45].mxu1 }
 0x1d1   : > { %1400 = vst.msk [vmem:[%s4802_s25 + $0xb0] sm:$0xff] %vm1377_vm1, %v1174_v33  ;;  %2069 = vst.msk [vmem:[%s4807_s27 + $0xb0] sm:$0xff] %vm1377_vm1, %v1844_v34 }
 0x1d2   : > { %v1178_v38 = vpop.f32.mrb[46].mxu0  ;;  %v1848_v39 = vpop.f32.mrb[46].mxu1 }
 0x1d3   : > { %v1179_v40 = vadd.f32 %v4778_v19, %v1178_v38  ;;  %v1849_v41 = vadd.f32 %v4785_v20, %v1848_v39  ;;  %v3313_v42 = vpop.f32.mrb[47].mxu0  ;;  %v3534_v43 = vpop.f32.mrb[47].mxu1 }
 0x1d5   : > { %1401 = vst.msk [vmem:[%s4802_s25 + $0xb8] sm:$0xff] %vm1377_vm1, %v1179_v40  ;;  %2070 = vst.msk [vmem:[%s4807_s27 + $0xb8] sm:$0xff] %vm1377_vm1, %v1849_v41 }
 0x1d6   : > { %v1183_v44 = vpop.f32.mrb[48].mxu0  ;;  %v1853_v45 = vpop.f32.mrb[48].mxu1 }
 0x1d7   : > { %v1184_v46 = vadd.f32 %v4778_v19, %v1183_v44  ;;  %v1854_v47 = vadd.f32 %v4785_v20, %v1853_v45  ;;  %v3316_v48 = vpop.f32.mrb[49].mxu0  ;;  %v3537_v49 = vpop.f32.mrb[49].mxu1 }
 0x1d9   : > { %1402 = vst.msk [vmem:[%s4802_s25 + $0xc0] sm:$0xff] %vm1377_vm1, %v1184_v46  ;;  %2071 = vst.msk [vmem:[%s4807_s27 + $0xc0] sm:$0xff] %vm1377_vm1, %v1854_v47 }
 0x1da   : > { %v1188_v50 = vpop.f32.mrb[50].mxu0  ;;  %v1858_v55 = vpop.f32.mrb[50].mxu1 }
 0x1db   : > { %v1189_v56 = vadd.f32 %v4778_v19, %v1188_v50  ;;  %v1859_v57 = vadd.f32 %v4785_v20, %v1858_v55  ;;  %v3319_v58 = vpop.f32.mrb[51].mxu0  ;;  %v3540_v59 = vpop.f32.mrb[51].mxu1 }
 0x1dd   : > { %1403 = vst.msk [vmem:[%s4802_s25 + $0xc8] sm:$0xff] %vm1377_vm1, %v1189_v56  ;;  %2072 = vst.msk [vmem:[%s4807_s27 + $0xc8] sm:$0xff] %vm1377_vm1, %v1859_v57 }
 0x1de   : > { %v1193_v60 = vpop.f32.mrb[52].mxu0  ;;  %v1863_v61 = vpop.f32.mrb[52].mxu1 }
 0x1df   : > { %v1194_v62 = vadd.f32 %v4778_v19, %v1193_v60  ;;  %v1864_v63 = vadd.f32 %v4785_v20, %v1863_v61  ;;  %v3322_v0 = vpop.f32.mrb[53].mxu0  ;;  %v3543_v1 = vpop.f32.mrb[53].mxu1 }
 0x1e1   : > { %1404 = vst.msk [vmem:[%s4802_s25 + $0xd0] sm:$0xff] %vm1377_vm1, %v1194_v62  ;;  %2073 = vst.msk [vmem:[%s4807_s27 + $0xd0] sm:$0xff] %vm1377_vm1, %v1864_v63 }
 0x1e2   : > { %v1198_v2 = vpop.f32.mrb[54].mxu0  ;;  %v1868_v3 = vpop.f32.mrb[54].mxu1 }
 0x1e3   : > { %v1199_v4 = vadd.f32 %v4778_v19, %v1198_v2  ;;  %v1869_v5 = vadd.f32 %v4785_v20, %v1868_v3  ;;  %v3325_v28 = vpop.f32.mrb[55].mxu0  ;;  %v3546_v30 = vpop.f32.mrb[55].mxu1 }
 0x1e5   : > { %1405 = vst.msk [vmem:[%s4802_s25 + $0xd8] sm:$0xff] %vm1377_vm1, %v1199_v4  ;;  %2074 = vst.msk [vmem:[%s4807_s27 + $0xd8] sm:$0xff] %vm1377_vm1, %v1869_v5 }
 0x1e6   : > { %v1203_v6 = vpop.f32.mrb[56].mxu0  ;;  %v1873_v7 = vpop.f32.mrb[56].mxu1 }
 0x1e7   : > { %v1204_v8 = vadd.f32 %v4778_v19, %v1203_v6  ;;  %v1874_v9 = vadd.f32 %v4785_v20, %v1873_v7  ;;  %v3328_v10 = vpop.f32.mrb[57].mxu0  ;;  %v3549_v11 = vpop.f32.mrb[57].mxu1 }
 0x1e9   : > { %1406 = vst.msk [vmem:[%s4802_s25 + $0xe0] sm:$0xff] %vm1377_vm1, %v1204_v8  ;;  %2075 = vst.msk [vmem:[%s4807_s27 + $0xe0] sm:$0xff] %vm1377_vm1, %v1874_v9 }
 0x1ea   : > { %v1208_v12 = vpop.f32.mrb[58].mxu0  ;;  %v1878_v13 = vpop.f32.mrb[58].mxu1 }
 0x1eb   : > { %v1209_v51 = vadd.f32 %v4778_v19, %v1208_v12  ;;  %v1879_v27 = vadd.f32 %v4785_v20, %v1878_v13  ;;  %v3331_v14 = vpop.f32.mrb[59].mxu0  ;;  %v3552_v15 = vpop.f32.mrb[59].mxu1 }
 0x1ed   : > { %1407 = vst.msk [vmem:[%s4802_s25 + $0xe8] sm:$0xff] %vm1377_vm1, %v1209_v51  ;;  %2076 = vst.msk [vmem:[%s4807_s27 + $0xe8] sm:$0xff] %vm1377_vm1, %v1879_v27 }
 0x1ee   : > { %v1213_v16 = vpop.f32.mrb[60].mxu0  ;;  %v1883_v17 = vpop.f32.mrb[60].mxu1 }
 0x1ef   : > { %v1214_v18 = vadd.f32 %v4778_v19, %v1213_v16  ;;  %v1884_v21 = vadd.f32 %v4785_v20, %v1883_v17  ;;  %v3334_v36 = vpop.f32.mrb[61].mxu0  ;;  %v3555_v22 = vpop.f32.mrb[61].mxu1 }
 0x1f1   : > { %1408 = vst.msk [vmem:[%s4802_s25 + $0xf0] sm:$0xff] %vm1377_vm1, %v1214_v18  ;;  %2077 = vst.msk [vmem:[%s4807_s27 + $0xf0] sm:$0xff] %vm1377_vm1, %v1884_v21 }
 0x1f2   : > { %v1218_v23 = vpop.f32.mrb[62].mxu0  ;;  %v1888_v24 = vpop.f32.mrb[62].mxu1 }
 0x1f3   : > { %v1219_v25 = vadd.f32 %v4778_v19, %v1218_v23  ;;  %v1889_v26 = vadd.f32 %v4785_v20, %v1888_v24  ;;  %v3337_v52 = vpop.f32.mrb[63].mxu0  ;;  %v3558_v53 = vpop.f32.mrb[63].mxu1 }
 0x1f5   : > { %1409 = vst.msk [vmem:[%s4802_s25 + $0xf8] sm:$0xff] %vm1377_vm1, %v1219_v25  ;;  %2078 = vst.msk [vmem:[%s4807_s27 + $0xf8] sm:$0xff] %vm1377_vm1, %v1889_v26 }
 0x1f6   : > { %v1223_v54 = vpop.f32.mrb[64].mxu0  ;;  %v1893_v29 = vpop.f32.mrb[64].mxu1 }
 0x1f7   : > { %v1224_v31 = vadd.f32 %v4778_v19, %v1223_v54  ;;  %v1894_v32 = vadd.f32 %v4785_v20, %v1893_v29  ;;  %v3340_v33 = vpop.f32.mrb[65].mxu0  ;;  %v3561_v34 = vpop.f32.mrb[65].mxu1 }
 0x1f9   : > { %1410 = vst.msk [vmem:[%s4802_s25 + $0x100] sm:$0xff] %vm1377_vm1, %v1224_v31  ;;  %2079 = vst.msk [vmem:[%s4807_s27 + $0x100] sm:$0xff] %vm1377_vm1, %v1894_v32 }
 0x1fa   : > { %v1228_v35 = vpop.f32.mrb[66].mxu0  ;;  %v1898_v37 = vpop.f32.mrb[66].mxu1 }
 0x1fb   : > { %v1229_v38 = vadd.f32 %v4778_v19, %v1228_v35  ;;  %v1899_v39 = vadd.f32 %v4785_v20, %v1898_v37  ;;  %v3343_v40 = vpop.f32.mrb[67].mxu0  ;;  %v3564_v41 = vpop.f32.mrb[67].mxu1 }
 0x1fd   : > { %1411 = vst.msk [vmem:[%s4802_s25 + $0x108] sm:$0xff] %vm1377_vm1, %v1229_v38  ;;  %2080 = vst.msk [vmem:[%s4807_s27 + $0x108] sm:$0xff] %vm1377_vm1, %v1899_v39 }
 0x1fe   : > { %v1233_v42 = vpop.f32.mrb[68].mxu0  ;;  %v1903_v43 = vpop.f32.mrb[68].mxu1 }
 0x1ff   : > { %v1234_v44 = vadd.f32 %v4778_v19, %v1233_v42  ;;  %v1904_v45 = vadd.f32 %v4785_v20, %v1903_v43  ;;  %v3346_v46 = vpop.f32.mrb[69].mxu0  ;;  %v3567_v47 = vpop.f32.mrb[69].mxu1 }
 0x201   : > { %1412 = vst.msk [vmem:[%s4802_s25 + $0x110] sm:$0xff] %vm1377_vm1, %v1234_v44  ;;  %2081 = vst.msk [vmem:[%s4807_s27 + $0x110] sm:$0xff] %vm1377_vm1, %v1904_v45 }
 0x202   : > { %v1238_v48 = vpop.f32.mrb[70].mxu0  ;;  %v1908_v49 = vpop.f32.mrb[70].mxu1 }
 0x203   : > { %v1239_v50 = vadd.f32 %v4778_v19, %v1238_v48  ;;  %v1909_v55 = vadd.f32 %v4785_v20, %v1908_v49  ;;  %v3349_v56 = vpop.f32.mrb[71].mxu0  ;;  %v3570_v57 = vpop.f32.mrb[71].mxu1 }
 0x205   : > { %1413 = vst.msk [vmem:[%s4802_s25 + $0x118] sm:$0xff] %vm1377_vm1, %v1239_v50  ;;  %2082 = vst.msk [vmem:[%s4807_s27 + $0x118] sm:$0xff] %vm1377_vm1, %v1909_v55 }
 0x206   : > { %v1243_v58 = vpop.f32.mrb[72].mxu0  ;;  %v1913_v59 = vpop.f32.mrb[72].mxu1 }
 0x207   : > { %v1244_v60 = vadd.f32 %v4778_v19, %v1243_v58  ;;  %v1914_v61 = vadd.f32 %v4785_v20, %v1913_v59  ;;  %v3352_v62 = vpop.f32.mrb[73].mxu0  ;;  %v3573_v63 = vpop.f32.mrb[73].mxu1 }
 0x209   : > { %1414 = vst.msk [vmem:[%s4802_s25 + $0x120] sm:$0xff] %vm1377_vm1, %v1244_v60  ;;  %2083 = vst.msk [vmem:[%s4807_s27 + $0x120] sm:$0xff] %vm1377_vm1, %v1914_v61 }
 0x20a   : > { %v1248_v0 = vpop.f32.mrb[74].mxu0  ;;  %v1918_v1 = vpop.f32.mrb[74].mxu1 }
 0x20b   : > { %v1249_v2 = vadd.f32 %v4778_v19, %v1248_v0  ;;  %v1919_v3 = vadd.f32 %v4785_v20, %v1918_v1  ;;  %v3355_v4 = vpop.f32.mrb[75].mxu0  ;;  %v3576_v5 = vpop.f32.mrb[75].mxu1 }
 0x20d   : > { %1415 = vst.msk [vmem:[%s4802_s25 + $0x128] sm:$0xff] %vm1377_vm1, %v1249_v2  ;;  %2084 = vst.msk [vmem:[%s4807_s27 + $0x128] sm:$0xff] %vm1377_vm1, %v1919_v3 }
 0x20e   : > { %v1253_v28 = vpop.f32.mrb[76].mxu0  ;;  %v1923_v30 = vpop.f32.mrb[76].mxu1 }
 0x20f   : > { %v1254_v6 = vadd.f32 %v4778_v19, %v1253_v28  ;;  %v1924_v7 = vadd.f32 %v4785_v20, %v1923_v30  ;;  %v3358_v8 = vpop.f32.mrb[77].mxu0  ;;  %v3579_v9 = vpop.f32.mrb[77].mxu1 }
 0x211   : > { %1416 = vst.msk [vmem:[%s4802_s25 + $0x130] sm:$0xff] %vm1377_vm1, %v1254_v6  ;;  %2085 = vst.msk [vmem:[%s4807_s27 + $0x130] sm:$0xff] %vm1377_vm1, %v1924_v7 }
 0x212   : > { %v1258_v10 = vpop.f32.mrb[78].mxu0  ;;  %v1928_v11 = vpop.f32.mrb[78].mxu1 }
 0x213   : > { %v1259_v12 = vadd.f32 %v4778_v19, %v1258_v10  ;;  %v1929_v13 = vadd.f32 %v4785_v20, %v1928_v11  ;;  %v3361_v51 = vpop.f32.mrb[79].mxu0  ;;  %v3582_v27 = vpop.f32.mrb[79].mxu1 }
 0x215   : > { %1417 = vst.msk [vmem:[%s4802_s25 + $0x138] sm:$0xff] %vm1377_vm1, %v1259_v12  ;;  %2086 = vst.msk [vmem:[%s4807_s27 + $0x138] sm:$0xff] %vm1377_vm1, %v1929_v13 }
 0x216   : > { %v1263_v14 = vpop.f32.mrb[80].mxu0  ;;  %v1933_v15 = vpop.f32.mrb[80].mxu1 }
 0x217   : > { %v1264_v16 = vadd.f32 %v4778_v19, %v1263_v14  ;;  %v1934_v17 = vadd.f32 %v4785_v20, %v1933_v15  ;;  %v3364_v18 = vpop.f32.mrb[81].mxu0  ;;  %v3585_v21 = vpop.f32.mrb[81].mxu1 }
 0x219   : > { %1418 = vst.msk [vmem:[%s4802_s25 + $0x140] sm:$0xff] %vm1377_vm1, %v1264_v16  ;;  %2087 = vst.msk [vmem:[%s4807_s27 + $0x140] sm:$0xff] %vm1377_vm1, %v1934_v17 }
 0x21a   : > { %v1268_v36 = vpop.f32.mrb[82].mxu0  ;;  %v1938_v22 = vpop.f32.mrb[82].mxu1 }
 0x21b   : > { %v1269_v23 = vadd.f32 %v4778_v19, %v1268_v36  ;;  %v1939_v24 = vadd.f32 %v4785_v20, %v1938_v22  ;;  %v3367_v25 = vpop.f32.mrb[83].mxu0  ;;  %v3588_v26 = vpop.f32.mrb[83].mxu1  ;;  %v5172_v36 = vld [vmem:[%s5643_s4] ss:$0 sm:$0xff] }
 0x21d   : > { %1419 = vst.msk [vmem:[%s4802_s25 + $0x148] sm:$0xff] %vm1377_vm1, %v1269_v23  ;;  %2088 = vst.msk [vmem:[%s4807_s27 + $0x148] sm:$0xff] %vm1377_vm1, %v1939_v24 }
 0x21e   : > { %v1273_v52 = vpop.f32.mrb[84].mxu0  ;;  %v1943_v53 = vpop.f32.mrb[84].mxu1 }
 0x21f   : > { %v1274_v54 = vadd.f32 %v4778_v19, %v1273_v52  ;;  %v1944_v29 = vadd.f32 %v4785_v20, %v1943_v53  ;;  %v3370_v31 = vpop.f32.mrb[85].mxu0  ;;  %v3591_v32 = vpop.f32.mrb[85].mxu1 }
 0x221   : > { %1420 = vst.msk [vmem:[%s4802_s25 + $0x150] sm:$0xff] %vm1377_vm1, %v1274_v54  ;;  %2089 = vst.msk [vmem:[%s4807_s27 + $0x150] sm:$0xff] %vm1377_vm1, %v1944_v29 }
 0x222   : > { %v1278_v33 = vpop.f32.mrb[86].mxu0  ;;  %v1948_v34 = vpop.f32.mrb[86].mxu1 }
 0x223   : > { %v1279_v35 = vadd.f32 %v4778_v19, %v1278_v33  ;;  %v1949_v37 = vadd.f32 %v4785_v20, %v1948_v34  ;;  %v3373_v38 = vpop.f32.mrb[87].mxu0  ;;  %v3594_v39 = vpop.f32.mrb[87].mxu1 }
 0x225   : > { %1421 = vst.msk [vmem:[%s4802_s25 + $0x158] sm:$0xff] %vm1377_vm1, %v1279_v35  ;;  %2090 = vst.msk [vmem:[%s4807_s27 + $0x158] sm:$0xff] %vm1377_vm1, %v1949_v37 }
 0x226   : > { %v1283_v40 = vpop.f32.mrb[88].mxu0  ;;  %v1953_v41 = vpop.f32.mrb[88].mxu1 }
 0x227   : > { %v1284_v42 = vadd.f32 %v4778_v19, %v1283_v40  ;;  %v1954_v43 = vadd.f32 %v4785_v20, %v1953_v41  ;;  %v3376_v44 = vpop.f32.mrb[89].mxu0  ;;  %v3597_v45 = vpop.f32.mrb[89].mxu1 }
 0x229   : > { %1422 = vst.msk [vmem:[%s4802_s25 + $0x160] sm:$0xff] %vm1377_vm1, %v1284_v42  ;;  %2091 = vst.msk [vmem:[%s4807_s27 + $0x160] sm:$0xff] %vm1377_vm1, %v1954_v43 }
 0x22a   : > { %v1288_v46 = vpop.f32.mrb[90].mxu0  ;;  %v1958_v47 = vpop.f32.mrb[90].mxu1 }
 0x22b   : > { %v1289_v48 = vadd.f32 %v4778_v19, %v1288_v46  ;;  %v1959_v49 = vadd.f32 %v4785_v20, %v1958_v47  ;;  %v3379_v50 = vpop.f32.mrb[91].mxu0  ;;  %v3600_v55 = vpop.f32.mrb[91].mxu1 }
 0x22d   : > { %1423 = vst.msk [vmem:[%s4802_s25 + $0x168] sm:$0xff] %vm1377_vm1, %v1289_v48  ;;  %2092 = vst.msk [vmem:[%s4807_s27 + $0x168] sm:$0xff] %vm1377_vm1, %v1959_v49 }
 0x22e   : > { %v1293_v56 = vpop.f32.mrb[92].mxu0  ;;  %v1963_v57 = vpop.f32.mrb[92].mxu1 }
 0x22f   : > { %v1294_v58 = vadd.f32 %v4778_v19, %v1293_v56  ;;  %v1964_v59 = vadd.f32 %v4785_v20, %v1963_v57  ;;  %v3382_v60 = vpop.f32.mrb[93].mxu0  ;;  %v3603_v61 = vpop.f32.mrb[93].mxu1 }
 0x231   : > { %1424 = vst.msk [vmem:[%s4802_s25 + $0x170] sm:$0xff] %vm1377_vm1, %v1294_v58  ;;  %2093 = vst.msk [vmem:[%s4807_s27 + $0x170] sm:$0xff] %vm1377_vm1, %v1964_v59 }
 0x232   : > { %v1298_v62 = vpop.f32.mrb[94].mxu0  ;;  %v1968_v63 = vpop.f32.mrb[94].mxu1 }
 0x233   : > { %v1299_v0 = vadd.f32 %v4778_v19, %v1298_v62  ;;  %v1969_v1 = vadd.f32 %v4785_v20, %v1968_v63  ;;  %v3385_v2 = vpop.f32.mrb[95].mxu0  ;;  %v3606_v3 = vpop.f32.mrb[95].mxu1 }
 0x235   : > { %1425 = vst.msk [vmem:[%s4802_s25 + $0x178] sm:$0xff] %vm1377_vm1, %v1299_v0  ;;  %2094 = vst.msk [vmem:[%s4807_s27 + $0x178] sm:$0xff] %vm1377_vm1, %v1969_v1 }
 0x236   : > { %v1303_v4 = vpop.f32.mrb[96].mxu0  ;;  %v1973_v5 = vpop.f32.mrb[96].mxu1 }
 0x237   : > { %v1304_v28 = vadd.f32 %v4778_v19, %v1303_v4  ;;  %v1974_v30 = vadd.f32 %v4785_v20, %v1973_v5  ;;  %v3388_v6 = vpop.f32.mrb[97].mxu0  ;;  %v3609_v7 = vpop.f32.mrb[97].mxu1 }
 0x239   : > { %1426 = vst.msk [vmem:[%s4802_s25 + $0x180] sm:$0xff] %vm1377_vm1, %v1304_v28  ;;  %2095 = vst.msk [vmem:[%s4807_s27 + $0x180] sm:$0xff] %vm1377_vm1, %v1974_v30 }
 0x23a   : > { %v1308_v8 = vpop.f32.mrb[98].mxu0  ;;  %v1978_v9 = vpop.f32.mrb[98].mxu1 }
 0x23b   : > { %v1309_v10 = vadd.f32 %v4778_v19, %v1308_v8  ;;  %v1979_v11 = vadd.f32 %v4785_v20, %v1978_v9  ;;  %v3391_v12 = vpop.f32.mrb[99].mxu0  ;;  %v3612_v13 = vpop.f32.mrb[99].mxu1 }
 0x23d   : > { %1427 = vst.msk [vmem:[%s4802_s25 + $0x188] sm:$0xff] %vm1377_vm1, %v1309_v10  ;;  %2096 = vst.msk [vmem:[%s4807_s27 + $0x188] sm:$0xff] %vm1377_vm1, %v1979_v11 }
 0x23e   : > { %v1313_v51 = vpop.f32.mrb[100].mxu0  ;;  %v1983_v27 = vpop.f32.mrb[100].mxu1 }
 0x23f   : > { %v1314_v14 = vadd.f32 %v4778_v19, %v1313_v51  ;;  %v1984_v15 = vadd.f32 %v4785_v20, %v1983_v27  ;;  %v3394_v16 = vpop.f32.mrb[101].mxu0  ;;  %v3615_v17 = vpop.f32.mrb[101].mxu1  ;;  %v5178_v19 = vld [vmem:[%s5647_s8] ss:$0 sm:$0xff] }
 0x241   : > { %1428 = vst.msk [vmem:[%s4802_s25 + $0x190] sm:$0xff] %vm1377_vm1, %v1314_v14  ;;  %2097 = vst.msk [vmem:[%s4807_s27 + $0x190] sm:$0xff] %vm1377_vm1, %v1984_v15 }
 0x242   : > { %v1318_v18 = vpop.f32.mrb[102].mxu0  ;;  %v1988_v21 = vpop.f32.mrb[102].mxu1 }
 0x243   : > { %v1319_v22 = vadd.f32 %v5172_v36, %v1318_v18  ;;  %v1989_v20 = vadd.f32 %v5178_v19, %v1988_v21  ;;  %v3397_v23 = vpop.f32.mrb[103].mxu0  ;;  %v3618_v24 = vpop.f32.mrb[103].mxu1 }
 0x245   : > { %1429 = vst.msk [vmem:[%s4802_s25 + $0x198] sm:$0xff] %vm1377_vm1, %v1319_v22  ;;  %2098 = vst.msk [vmem:[%s4807_s27 + $0x198] sm:$0xff] %vm1377_vm1, %v1989_v20 }
 0x246   : > { %v1323_v25 = vpop.f32.mrb[104].mxu0  ;;  %v1993_v26 = vpop.f32.mrb[104].mxu1 }
 0x247   : > { %v1324_v52 = vadd.f32 %v5172_v36, %v1323_v25  ;;  %v1994_v53 = vadd.f32 %v5178_v19, %v1993_v26  ;;  %v3400_v54 = vpop.f32.mrb[105].mxu0  ;;  %v3621_v29 = vpop.f32.mrb[105].mxu1 }
 0x249   : > { %1430 = vst.msk [vmem:[%s4802_s25 + $0x1a0] sm:$0xff] %vm1377_vm1, %v1324_v52  ;;  %2099 = vst.msk [vmem:[%s4807_s27 + $0x1a0] sm:$0xff] %vm1377_vm1, %v1994_v53 }
 0x24a   : > { %v1328_v31 = vpop.f32.mrb[106].mxu0  ;;  %v1998_v32 = vpop.f32.mrb[106].mxu1 }
 0x24b   : > { %v1329_v33 = vadd.f32 %v5172_v36, %v1328_v31  ;;  %v1999_v34 = vadd.f32 %v5178_v19, %v1998_v32  ;;  %v3403_v35 = vpop.f32.mrb[107].mxu0  ;;  %v3624_v37 = vpop.f32.mrb[107].mxu1 }
 0x24d   : > { %1431 = vst.msk [vmem:[%s4802_s25 + $0x1a8] sm:$0xff] %vm1377_vm1, %v1329_v33  ;;  %2100 = vst.msk [vmem:[%s4807_s27 + $0x1a8] sm:$0xff] %vm1377_vm1, %v1999_v34 }
 0x24e   : > { %v1333_v38 = vpop.f32.mrb[108].mxu0  ;;  %v2003_v39 = vpop.f32.mrb[108].mxu1 }
 0x24f   : > { %v1334_v40 = vadd.f32 %v5172_v36, %v1333_v38  ;;  %v2004_v41 = vadd.f32 %v5178_v19, %v2003_v39  ;;  %v3406_v42 = vpop.f32.mrb[109].mxu0  ;;  %v3627_v43 = vpop.f32.mrb[109].mxu1 }
 0x251   : > { %1432 = vst.msk [vmem:[%s4802_s25 + $0x1b0] sm:$0xff] %vm1377_vm1, %v1334_v40  ;;  %2101 = vst.msk [vmem:[%s4807_s27 + $0x1b0] sm:$0xff] %vm1377_vm1, %v2004_v41 }
 0x252   : > { %v1338_v44 = vpop.f32.mrb[110].mxu0  ;;  %v2008_v45 = vpop.f32.mrb[110].mxu1 }
 0x253   : > { %v1339_v46 = vadd.f32 %v5172_v36, %v1338_v44  ;;  %v2009_v47 = vadd.f32 %v5178_v19, %v2008_v45  ;;  %v3409_v48 = vpop.f32.mrb[111].mxu0  ;;  %v3630_v49 = vpop.f32.mrb[111].mxu1 }
 0x255   : > { %1433 = vst.msk [vmem:[%s4802_s25 + $0x1b8] sm:$0xff] %vm1377_vm1, %v1339_v46  ;;  %2102 = vst.msk [vmem:[%s4807_s27 + $0x1b8] sm:$0xff] %vm1377_vm1, %v2009_v47 }
 0x256   : > { %v1343_v50 = vpop.f32.mrb[112].mxu0  ;;  %v2013_v55 = vpop.f32.mrb[112].mxu1 }
 0x257   : > { %v1344_v56 = vadd.f32 %v5172_v36, %v1343_v50  ;;  %v2014_v57 = vadd.f32 %v5178_v19, %v2013_v55  ;;  %v3412_v58 = vpop.f32.mrb[113].mxu0  ;;  %v3633_v59 = vpop.f32.mrb[113].mxu1 }
 0x259   : > { %1434 = vst.msk [vmem:[%s4802_s25 + $0x1c0] sm:$0xff] %vm1377_vm1, %v1344_v56  ;;  %2103 = vst.msk [vmem:[%s4807_s27 + $0x1c0] sm:$0xff] %vm1377_vm1, %v2014_v57 }
 0x25a   : > { %v1348_v60 = vpop.f32.mrb[114].mxu0  ;;  %v2018_v61 = vpop.f32.mrb[114].mxu1 }
 0x25b   : > { %v1349_v62 = vadd.f32 %v5172_v36, %v1348_v60  ;;  %v2019_v63 = vadd.f32 %v5178_v19, %v2018_v61  ;;  %v3415_v0 = vpop.f32.mrb[115].mxu0  ;;  %v3636_v1 = vpop.f32.mrb[115].mxu1 }
 0x25d   : > { %1435 = vst.msk [vmem:[%s4802_s25 + $0x1c8] sm:$0xff] %vm1377_vm1, %v1349_v62  ;;  %2104 = vst.msk [vmem:[%s4807_s27 + $0x1c8] sm:$0xff] %vm1377_vm1, %v2019_v63 }
 0x25e   : > { %v1353_v2 = vpop.f32.mrb[116].mxu0  ;;  %v2023_v3 = vpop.f32.mrb[116].mxu1 }
 0x25f   : > { %v1354_v4 = vadd.f32 %v5172_v36, %v1353_v2  ;;  %v2024_v5 = vadd.f32 %v5178_v19, %v2023_v3  ;;  %v3418_v28 = vpop.f32.mrb[117].mxu0  ;;  %v3639_v30 = vpop.f32.mrb[117].mxu1 }
 0x261   : > { %1436 = vst.msk [vmem:[%s4802_s25 + $0x1d0] sm:$0xff] %vm1377_vm1, %v1354_v4  ;;  %2105 = vst.msk [vmem:[%s4807_s27 + $0x1d0] sm:$0xff] %vm1377_vm1, %v2024_v5 }
 0x262   : > { %v1358_v6 = vpop.f32.mrb[118].mxu0  ;;  %v2028_v7 = vpop.f32.mrb[118].mxu1 }
 0x263   : > { %v1359_v8 = vadd.f32 %v5172_v36, %v1358_v6  ;;  %v2029_v9 = vadd.f32 %v5178_v19, %v2028_v7  ;;  %v3421_v10 = vpop.f32.mrb[119].mxu0  ;;  %v3642_v11 = vpop.f32.mrb[119].mxu1 }
 0x265   : > { %1437 = vst.msk [vmem:[%s4802_s25 + $0x1d8] sm:$0xff] %vm1377_vm1, %v1359_v8  ;;  %2106 = vst.msk [vmem:[%s4807_s27 + $0x1d8] sm:$0xff] %vm1377_vm1, %v2029_v9 }
 0x266   : > { %v1363_v12 = vpop.f32.mrb[120].mxu0  ;;  %v2033_v13 = vpop.f32.mrb[120].mxu1 }
 0x267   : > { %v1364_v51 = vadd.f32 %v5172_v36, %v1363_v12  ;;  %v2034_v27 = vadd.f32 %v5178_v19, %v2033_v13  ;;  %v3424_v14 = vpop.f32.mrb[121].mxu0  ;;  %v3645_v15 = vpop.f32.mrb[121].mxu1 }
 0x269   : > { %1438 = vst.msk [vmem:[%s4802_s25 + $0x1e0] sm:$0xff] %vm1377_vm1, %v1364_v51  ;;  %2107 = vst.msk [vmem:[%s4807_s27 + $0x1e0] sm:$0xff] %vm1377_vm1, %v2034_v27 }
 0x26a   : > { %v1368_v16 = vpop.f32.mrb[122].mxu0  ;;  %v2038_v17 = vpop.f32.mrb[122].mxu1 }
 0x26b   : > { %v1369_v18 = vadd.f32 %v5172_v36, %v1368_v16  ;;  %v2039_v21 = vadd.f32 %v5178_v19, %v2038_v17  ;;  %v3427_v22 = vpop.f32.mrb[123].mxu0  ;;  %v3648_v20 = vpop.f32.mrb[123].mxu1  ;;  %2120 = sbr.rel (!%p4111_p4) target bundleno = 710 (0x2c6), region = 60 }
 0x26d   : > { %1439 = vst.msk [vmem:[%s4802_s25 + $0x1e8] sm:$0xff] %vm1377_vm1, %v1369_v18  ;;  %2108 = vst.msk [vmem:[%s4807_s27 + $0x1e8] sm:$0xff] %vm1377_vm1, %v2039_v21 }
 0x26e   : > { %v1373_v23 = vpop.f32.mrb[124].mxu0  ;;  %v2043_v24 = vpop.f32.mrb[124].mxu1 }
 0x26f   : > { %v1374_v25 = vadd.f32 %v5172_v36, %v1373_v23  ;;  %v2044_v26 = vadd.f32 %v5178_v19, %v2043_v24  ;;  %v3430_v52 = vpop.f32.mrb[125].mxu0  ;;  %v3651_v53 = vpop.f32.mrb[125].mxu1 }
 0x271   : > { %1440 = vst.msk [vmem:[%s4802_s25 + $0x1f0] sm:$0xff] %vm1377_vm1, %v1374_v25  ;;  %2109 = vst.msk [vmem:[%s4807_s27 + $0x1f0] sm:$0xff] %vm1377_vm1, %v2044_v26 }
 0x272   : > { %s5673_s11 = smov (!%p2123_p8, %s2122_s11), 63 }
 0x273   : > { %s3028_s19 = sshll.u32 %s5673_s11, 7 }
 0x274   : > { %p3031_p9 = scmp.eq.s32.totalorder %s3028_s19, 0 }
 0x275   : > { %3867 = sdivrem.u32 (!%p3031_p9), %s5673_s11, 63 }
 0x276   : > { %2131 = sbr.rel (%p3031_p9) target bundleno = 710 (0x2c6), region = 64 }
 0x27e   : > { %s5264_s23 = spop.drf %3867 }
 0x27f   : > { %p3032_p10 = scmp.le.s32.totalorder %s5264_s23, 0 }
 0x280   : > { %s5659_s24 = smov (!%p3032_p10), %s5258_s13  ;;  %s5660_s28 = smov (!%p3032_p10), %s4802_s25 }
 0x281   : > { %2936 = sbr.rel (%p3032_p10) target bundleno = 681 (0x2a9), region = 212  ;;  %s5273_s26 = smov (!%p3032_p10), 0  }
 0x282   : > { %s5275_s29 = smov (!%p3032_p10), 0  }
 0x288 LB: >> { %v2319_v36 = vld [vmem:[%s3969_s28] sm:$0xff]  ;;  %v2321_v19 = vld [vmem:[%s3969_s28 + $0x8] sm:$0xff]  ;;  %v2323_v54 = vld [vmem:[%s3969_s28 + $0x10] sm:$0xff]  ;;  %s2445_s30 = sadd.s32 1, %s3973_s26  ;;  %s2313_s29 = sadd.s32 1, %s3977_s29   ;;  %s3977_s29 = sphi %s5275_s29, %s2313_s29   ;;  %s3973_s26 = sphi %s5273_s26, %s5663_s26   ;;  %s3969_s28 = sphi %s5660_s28, %s5662_s28   ;;  %s3965_s24 = sphi %s5659_s24, %s5661_s24  }
 0x289   : >> { %2320 = vst [vmem:[%s3965_s24] sm:$0xff] %v2319_v36  ;;  %2322 = vst [vmem:[%s3965_s24 + $0x8] sm:$0xff] %v2321_v19  ;;  %v2325_v29 = vld [vmem:[%s3969_s28 + $0x18] sm:$0xff]  ;;  %v2327_v31 = vld [vmem:[%s3969_s28 + $0x20] sm:$0xff]  ;;  %p2446_p11 = scmp.ge.s32.totalorder %s2445_s30, %s5264_s23  ;;  %p2312_p12 = scmp.ge.s32.totalorder %s2313_s29, %s5264_s23 }
 0x28a   : >> { %2324 = vst [vmem:[%s3965_s24 + $0x10] sm:$0xff] %v2323_v54  ;;  %v2329_v32 = vld [vmem:[%s3969_s28 + $0x28] sm:$0xff]  ;;  %2326 = vst [vmem:[%s3965_s24 + $0x18] sm:$0xff] %v2325_v29  ;;  %v2331_v33 = vld [vmem:[%s3969_s28 + $0x30] sm:$0xff] }
 0x28b   : >> { %2328 = vst [vmem:[%s3965_s24 + $0x20] sm:$0xff] %v2327_v31  ;;  %2330 = vst [vmem:[%s3965_s24 + $0x28] sm:$0xff] %v2329_v32  ;;  %v2333_v34 = vld [vmem:[%s3969_s28 + $0x38] sm:$0xff]  ;;  %v2335_v35 = vld [vmem:[%s3969_s28 + $0x40] sm:$0xff]  ;;  %s5675_s30 = smov (%p2446_p11, %s2445_s30), 0 }
 0x28c   : >> { %2332 = vst [vmem:[%s3965_s24 + $0x30] sm:$0xff] %v2331_v33  ;;  %2334 = vst [vmem:[%s3965_s24 + $0x38] sm:$0xff] %v2333_v34  ;;  %v2337_v37 = vld [vmem:[%s3969_s28 + $0x48] sm:$0xff]  ;;  %v2339_v38 = vld [vmem:[%s3969_s28 + $0x50] sm:$0xff]  ;;  %s2448_s12 = smul.u32 504, %s5675_s30  ;;  %s5663_s26 = smov %s5675_s30 }
 0x28d   : >> { %2336 = vst [vmem:[%s3965_s24 + $0x40] sm:$0xff] %v2335_v35  ;;  %v2341_v39 = vld [vmem:[%s3969_s28 + $0x58] sm:$0xff]  ;;  %2338 = vst [vmem:[%s3965_s24 + $0x48] sm:$0xff] %v2337_v37  ;;  %v2343_v40 = vld [vmem:[%s3969_s28 + $0x60] sm:$0xff] }
 0x28e   : >> { %2340 = vst [vmem:[%s3965_s24 + $0x50] sm:$0xff] %v2339_v38  ;;  %2342 = vst [vmem:[%s3965_s24 + $0x58] sm:$0xff] %v2341_v39  ;;  %v2345_v41 = vld [vmem:[%s3969_s28 + $0x68] sm:$0xff]  ;;  %v2347_v42 = vld [vmem:[%s3969_s28 + $0x70] sm:$0xff]  ;;  %s5337_s15 = scalar_lea.vmem %s4802_s25, %s2448_s12 [#allocation2]   ;;  %s5340_s18 = scalar_lea.vmem %s5258_s13, %s2448_s12  }
 0x28f   : >> { %2344 = vst [vmem:[%s3965_s24 + $0x60] sm:$0xff] %v2343_v40  ;;  %2346 = vst [vmem:[%s3965_s24 + $0x68] sm:$0xff] %v2345_v41  ;;  %v2349_v43 = vld [vmem:[%s3969_s28 + $0x78] sm:$0xff]  ;;  %v2351_v44 = vld [vmem:[%s3969_s28 + $0x80] sm:$0xff] }
 0x290   : >> { %2348 = vst [vmem:[%s3965_s24 + $0x70] sm:$0xff] %v2347_v42  ;;  %v2353_v45 = vld [vmem:[%s3969_s28 + $0x88] sm:$0xff]  ;;  %2350 = vst [vmem:[%s3965_s24 + $0x78] sm:$0xff] %v2349_v43  ;;  %v2355_v46 = vld [vmem:[%s3969_s28 + $0x90] sm:$0xff] }
 0x291   : >> { %2352 = vst [vmem:[%s3965_s24 + $0x80] sm:$0xff] %v2351_v44  ;;  %2354 = vst [vmem:[%s3965_s24 + $0x88] sm:$0xff] %v2353_v45  ;;  %v2357_v47 = vld [vmem:[%s3969_s28 + $0x98] sm:$0xff]  ;;  %v2359_v48 = vld [vmem:[%s3969_s28 + $0xa0] sm:$0xff] }
 0x292   : >> { %2356 = vst [vmem:[%s3965_s24 + $0x90] sm:$0xff] %v2355_v46  ;;  %2358 = vst [vmem:[%s3965_s24 + $0x98] sm:$0xff] %v2357_v47  ;;  %v2361_v49 = vld [vmem:[%s3969_s28 + $0xa8] sm:$0xff]  ;;  %v2363_v50 = vld [vmem:[%s3969_s28 + $0xb0] sm:$0xff] }
 0x293   : >> { %2360 = vst [vmem:[%s3965_s24 + $0xa0] sm:$0xff] %v2359_v48  ;;  %v2365_v55 = vld [vmem:[%s3969_s28 + $0xb8] sm:$0xff]  ;;  %2362 = vst [vmem:[%s3965_s24 + $0xa8] sm:$0xff] %v2361_v49  ;;  %v2367_v56 = vld [vmem:[%s3969_s28 + $0xc0] sm:$0xff] }
 0x294   : >> { %2364 = vst [vmem:[%s3965_s24 + $0xb0] sm:$0xff] %v2363_v50  ;;  %2366 = vst [vmem:[%s3965_s24 + $0xb8] sm:$0xff] %v2365_v55  ;;  %v2369_v57 = vld [vmem:[%s3969_s28 + $0xc8] sm:$0xff]  ;;  %v2371_v58 = vld [vmem:[%s3969_s28 + $0xd0] sm:$0xff] }
 0x295   : >> { %2368 = vst [vmem:[%s3965_s24 + $0xc0] sm:$0xff] %v2367_v56  ;;  %2370 = vst [vmem:[%s3965_s24 + $0xc8] sm:$0xff] %v2369_v57  ;;  %v2373_v59 = vld [vmem:[%s3969_s28 + $0xd8] sm:$0xff]  ;;  %v2375_v60 = vld [vmem:[%s3969_s28 + $0xe0] sm:$0xff] }
 0x296   : >> { %2372 = vst [vmem:[%s3965_s24 + $0xd0] sm:$0xff] %v2371_v58  ;;  %v2377_v61 = vld [vmem:[%s3969_s28 + $0xe8] sm:$0xff]  ;;  %2374 = vst [vmem:[%s3965_s24 + $0xd8] sm:$0xff] %v2373_v59  ;;  %v2379_v62 = vld [vmem:[%s3969_s28 + $0xf0] sm:$0xff] }
 0x297   : >> { %2376 = vst [vmem:[%s3965_s24 + $0xe0] sm:$0xff] %v2375_v60  ;;  %2378 = vst [vmem:[%s3965_s24 + $0xe8] sm:$0xff] %v2377_v61  ;;  %v2381_v63 = vld [vmem:[%s3969_s28 + $0xf8] sm:$0xff]  ;;  %v2383_v0 = vld [vmem:[%s3969_s28 + $0x100] sm:$0xff] }
 0x298   : >> { %2380 = vst [vmem:[%s3965_s24 + $0xf0] sm:$0xff] %v2379_v62  ;;  %2382 = vst [vmem:[%s3965_s24 + $0xf8] sm:$0xff] %v2381_v63  ;;  %v2385_v1 = vld [vmem:[%s3969_s28 + $0x108] sm:$0xff]  ;;  %v2387_v2 = vld [vmem:[%s3969_s28 + $0x110] sm:$0xff] }
 0x299   : >> { %2384 = vst [vmem:[%s3965_s24 + $0x100] sm:$0xff] %v2383_v0  ;;  %v2389_v3 = vld [vmem:[%s3969_s28 + $0x118] sm:$0xff]  ;;  %2386 = vst [vmem:[%s3965_s24 + $0x108] sm:$0xff] %v2385_v1  ;;  %v2391_v4 = vld [vmem:[%s3969_s28 + $0x120] sm:$0xff] }
 0x29a   : >> { %2388 = vst [vmem:[%s3965_s24 + $0x110] sm:$0xff] %v2387_v2  ;;  %2390 = vst [vmem:[%s3965_s24 + $0x118] sm:$0xff] %v2389_v3  ;;  %v2393_v5 = vld [vmem:[%s3969_s28 + $0x128] sm:$0xff]  ;;  %v2395_v28 = vld [vmem:[%s3969_s28 + $0x130] sm:$0xff] }
 0x29b   : >> { %2392 = vst [vmem:[%s3965_s24 + $0x120] sm:$0xff] %v2391_v4  ;;  %2394 = vst [vmem:[%s3965_s24 + $0x128] sm:$0xff] %v2393_v5  ;;  %v2397_v30 = vld [vmem:[%s3969_s28 + $0x138] sm:$0xff]  ;;  %v2399_v6 = vld [vmem:[%s3969_s28 + $0x140] sm:$0xff] }
 0x29c   : >> { %2396 = vst [vmem:[%s3965_s24 + $0x130] sm:$0xff] %v2395_v28  ;;  %v2401_v7 = vld [vmem:[%s3969_s28 + $0x148] sm:$0xff]  ;;  %2398 = vst [vmem:[%s3965_s24 + $0x138] sm:$0xff] %v2397_v30  ;;  %v2403_v8 = vld [vmem:[%s3969_s28 + $0x150] sm:$0xff] }
 0x29d   : >> { %2400 = vst [vmem:[%s3965_s24 + $0x140] sm:$0xff] %v2399_v6  ;;  %2402 = vst [vmem:[%s3965_s24 + $0x148] sm:$0xff] %v2401_v7  ;;  %v2405_v9 = vld [vmem:[%s3969_s28 + $0x158] sm:$0xff]  ;;  %v2407_v10 = vld [vmem:[%s3969_s28 + $0x160] sm:$0xff] }
 0x29e   : >> { %2404 = vst [vmem:[%s3965_s24 + $0x150] sm:$0xff] %v2403_v8  ;;  %2406 = vst [vmem:[%s3965_s24 + $0x158] sm:$0xff] %v2405_v9  ;;  %v2409_v11 = vld [vmem:[%s3969_s28 + $0x168] sm:$0xff]  ;;  %v2411_v12 = vld [vmem:[%s3969_s28 + $0x170] sm:$0xff] }
 0x29f   : >> { %2408 = vst [vmem:[%s3965_s24 + $0x160] sm:$0xff] %v2407_v10  ;;  %v2413_v13 = vld [vmem:[%s3969_s28 + $0x178] sm:$0xff]  ;;  %2410 = vst [vmem:[%s3965_s24 + $0x168] sm:$0xff] %v2409_v11  ;;  %v2415_v51 = vld [vmem:[%s3969_s28 + $0x180] sm:$0xff] }
 0x2a0   : >> { %2412 = vst [vmem:[%s3965_s24 + $0x170] sm:$0xff] %v2411_v12  ;;  %2414 = vst [vmem:[%s3965_s24 + $0x178] sm:$0xff] %v2413_v13  ;;  %v2417_v27 = vld [vmem:[%s3969_s28 + $0x188] sm:$0xff]  ;;  %v2419_v14 = vld [vmem:[%s3969_s28 + $0x190] sm:$0xff] }
 0x2a1   : >> { %2416 = vst [vmem:[%s3965_s24 + $0x180] sm:$0xff] %v2415_v51  ;;  %2418 = vst [vmem:[%s3965_s24 + $0x188] sm:$0xff] %v2417_v27  ;;  %v2421_v15 = vld [vmem:[%s3969_s28 + $0x198] sm:$0xff]  ;;  %v2423_v16 = vld [vmem:[%s3969_s28 + $0x1a0] sm:$0xff] }
 0x2a2   : >> { %2420 = vst [vmem:[%s3965_s24 + $0x190] sm:$0xff] %v2419_v14  ;;  %v2425_v17 = vld [vmem:[%s3969_s28 + $0x1a8] sm:$0xff]  ;;  %2422 = vst [vmem:[%s3965_s24 + $0x198] sm:$0xff] %v2421_v15  ;;  %v2427_v18 = vld [vmem:[%s3969_s28 + $0x1b0] sm:$0xff]  ;;  %2315 = sbr.rel (!%p2312_p12) target bundleno = 648 (0x288), region = 218 }
 0x2a3   : >> { %2424 = vst [vmem:[%s3965_s24 + $0x1a0] sm:$0xff] %v2423_v16  ;;  %2426 = vst [vmem:[%s3965_s24 + $0x1a8] sm:$0xff] %v2425_v17  ;;  %v2429_v21 = vld [vmem:[%s3969_s28 + $0x1b8] sm:$0xff]  ;;  %v2431_v22 = vld [vmem:[%s3969_s28 + $0x1c0] sm:$0xff] }
 0x2a4   : >> { %2428 = vst [vmem:[%s3965_s24 + $0x1b0] sm:$0xff] %v2427_v18  ;;  %2430 = vst [vmem:[%s3965_s24 + $0x1b8] sm:$0xff] %v2429_v21  ;;  %v2433_v20 = vld [vmem:[%s3969_s28 + $0x1c8] sm:$0xff]  ;;  %v2435_v23 = vld [vmem:[%s3969_s28 + $0x1d0] sm:$0xff] }
 0x2a5   : >> { %2432 = vst [vmem:[%s3965_s24 + $0x1c0] sm:$0xff] %v2431_v22  ;;  %v2437_v24 = vld [vmem:[%s3969_s28 + $0x1d8] sm:$0xff]  ;;  %2434 = vst [vmem:[%s3965_s24 + $0x1c8] sm:$0xff] %v2433_v20  ;;  %v2439_v25 = vld [vmem:[%s3969_s28 + $0x1e0] sm:$0xff] }
 0x2a6   : >> { %2436 = vst [vmem:[%s3965_s24 + $0x1d0] sm:$0xff] %v2435_v23  ;;  %2438 = vst [vmem:[%s3965_s24 + $0x1d8] sm:$0xff] %v2437_v24  ;;  %v2441_v26 = vld [vmem:[%s3969_s28 + $0x1e8] sm:$0xff]  ;;  %v2443_v52 = vld [vmem:[%s3969_s28 + $0x1f0] sm:$0xff]  ;;  %s5662_s28 = smov %s5337_s15 }
 0x2a7   : >> { %2440 = vst [vmem:[%s3965_s24 + $0x1e0] sm:$0xff] %v2439_v25  ;;  %2442 = vst [vmem:[%s3965_s24 + $0x1e8] sm:$0xff] %v2441_v26 }
 0x2a8   : >> { %2444 = vst [vmem:[%s3965_s24 + $0x1f0] sm:$0xff] %v2443_v52  ;;  %s5661_s24 = smov %s5340_s18 }
 0x2a9 PF: > { %3869 = sdivrem.u32 %s5673_s11, 63 }
 0x2aa   : > { %s3033_s19 = smul.u32 504, %s5264_s23 }
 0x2ac   : > { %s2456_s12 = scalar_lea.vmem %s4802_s25, %s3033_s19 [#allocation2]   ;;  %s2458_s0 = scalar_lea.vmem %s5258_s13, %s3033_s19  }
 0x2b2   : > { %s3870_s1 = spop.drf %3869 }
 0x2b3   : > { %p3035_p13 = scmp.le.s32.totalorder %s3870_s1, 0 }
 0x2b4   : > { %s3979_s18 = smov (!%p3035_p13), %s2458_s0   ;;  %s3983_s2 = smov (!%p3035_p13), %s2456_s12  }
 0x2b5   : > { %2950 = sbr.rel (%p3035_p13) target bundleno = 710 (0x2c6), region = 223  ;;  %s3987_s15 = smov (!%p3035_p13), 0  }
 0x2b6   : > { %s3991_s3 = smov (!%p3035_p13), 0  }
 0x2bc LB: >> { %v2468_v53 = vld [vmem:[%s3985_s2] sm:$0xff]  ;;  %s2470_s24 = sadd.s32 1, %s3989_s15  ;;  %s2462_s3 = sadd.s32 1, %s3993_s3   ;;  %s3993_s3 = sphi %s3991_s3, %s2462_s3   ;;  %s3989_s15 = sphi %s3987_s15, %s3988_s15   ;;  %s3985_s2 = sphi %s3983_s2, %s2475_s2   ;;  %s3981_s18 = sphi %s3979_s18, %s2476_s18  }
 0x2bd   : >> { %2469 = vst [vmem:[%s3981_s18] sm:$0xff] %v2468_v53  ;;  %p2471_p0 = scmp.ge.s32.totalorder %s2470_s24, %s3870_s1  ;;  %p2461_p1 = scmp.ge.s32.totalorder %s2462_s3, %s3870_s1 }
 0x2bf   : >> { %s5677_s24 = smov (%p2471_p0, %s2470_s24), 0  ;;  %2464 = sbr.rel (!%p2461_p1) target bundleno = 700 (0x2bc), region = 229 }
 0x2c0   : >> { %s3036_s25 = sshll.u32 %s5677_s24, 3  ;;  %s3988_s15 = smov %s5677_s24  }
 0x2c1   : >> { %s2475_s2 = scalar_lea.vmem %s2456_s12, %s3036_s25 [#allocation2]   ;;  %s2476_s18 = scalar_lea.vmem %s2458_s0, %s3036_s25  }
 0x2c6 PF: > { %2482 = sbr.rel (!%p4111_p4) target bundleno = 801 (0x321), region = 112  ;;  %s2484_s11 = ssub.s32 (%p4111_p4), 125, %s4116_s22 }
 0x2c7   : > { %s3051_s13 = smul.u32 (%p4111_p4), 504, %s4099_s16  ;;  %p2485_p2 = scmp.lt.s32.totalorder (%p4111_p4), %s2484_s11, 63 }
 0x2c9   : > { %s5447_s26 = scalar_lea.vmem (%p4111_p4), %s5649_s10, %s3051_s13  }
 0x2cd   : > { %s5679_s11 = smov (!%p2485_p2, %s2484_s11), 63 }
 0x2ce   : > { %s3038_s2 = sshll.u32 %s5679_s11, 7 }
 0x2cf   : > { %p3041_p3 = scmp.eq.s32.totalorder %s3038_s2, 0 }
 0x2d0   : > { %3871 = sdivrem.u32 (!%p3041_p3), %s5679_s11, 63 }
 0x2d1   : > { %2493 = sbr.rel (%p3041_p3) target bundleno = 801 (0x321), region = 116 }
 0x2d9   : > { %s5453_s0 = spop.drf %3871 }
 0x2da   : > { %p3042_p4 = scmp.le.s32.totalorder %s5453_s0, 0 }
 0x2db   : > { %s5664_s1 = smov (!%p3042_p4), %s5447_s26  ;;  %s5665_s3 = smov (!%p3042_p4), %s4807_s27 }
 0x2dc   : > { %2964 = sbr.rel (%p3042_p4) target bundleno = 772 (0x304), region = 234  ;;  %s5462_s16 = smov (!%p3042_p4), 0  }
 0x2dd   : > { %s5464_s21 = smov (!%p3042_p4), 0  }
 0x2e3 LB: >> { %v2681_v36 = vld [vmem:[%s4001_s3] sm:$0xff]  ;;  %v2683_v19 = vld [vmem:[%s4001_s3 + $0x8] sm:$0xff]  ;;  %v2685_v54 = vld [vmem:[%s4001_s3 + $0x10] sm:$0xff]  ;;  %s2807_s22 = sadd.s32 1, %s4005_s16  ;;  %s2675_s21 = sadd.s32 1, %s4009_s21   ;;  %s4009_s21 = sphi %s5464_s21, %s2675_s21   ;;  %s4005_s16 = sphi %s5462_s16, %s5668_s16   ;;  %s4001_s3 = sphi %s5665_s3, %s5667_s3   ;;  %s3997_s1 = sphi %s5664_s1, %s5666_s1  }
 0x2e4   : >> { %2682 = vst [vmem:[%s3997_s1] sm:$0xff] %v2681_v36  ;;  %2684 = vst [vmem:[%s3997_s1 + $0x8] sm:$0xff] %v2683_v19  ;;  %v2687_v29 = vld [vmem:[%s4001_s3 + $0x18] sm:$0xff]  ;;  %v2689_v31 = vld [vmem:[%s4001_s3 + $0x20] sm:$0xff]  ;;  %p2808_p5 = scmp.ge.s32.totalorder %s2807_s22, %s5453_s0  ;;  %p2674_p6 = scmp.ge.s32.totalorder %s2675_s21, %s5453_s0 }
 0x2e5   : >> { %2686 = vst [vmem:[%s3997_s1 + $0x10] sm:$0xff] %v2685_v54  ;;  %v2691_v32 = vld [vmem:[%s4001_s3 + $0x28] sm:$0xff]  ;;  %2688 = vst [vmem:[%s3997_s1 + $0x18] sm:$0xff] %v2687_v29  ;;  %v2693_v33 = vld [vmem:[%s4001_s3 + $0x30] sm:$0xff] }
 0x2e6   : >> { %2690 = vst [vmem:[%s3997_s1 + $0x20] sm:$0xff] %v2689_v31  ;;  %2692 = vst [vmem:[%s3997_s1 + $0x28] sm:$0xff] %v2691_v32  ;;  %v2695_v34 = vld [vmem:[%s4001_s3 + $0x38] sm:$0xff]  ;;  %v2697_v35 = vld [vmem:[%s4001_s3 + $0x40] sm:$0xff]  ;;  %s5681_s22 = smov (%p2808_p5, %s2807_s22), 0 }
 0x2e7   : >> { %2694 = vst [vmem:[%s3997_s1 + $0x30] sm:$0xff] %v2693_v33  ;;  %2696 = vst [vmem:[%s3997_s1 + $0x38] sm:$0xff] %v2695_v34  ;;  %v2699_v37 = vld [vmem:[%s4001_s3 + $0x48] sm:$0xff]  ;;  %v2701_v38 = vld [vmem:[%s4001_s3 + $0x50] sm:$0xff]  ;;  %s2810_s29 = smul.u32 504, %s5681_s22  ;;  %s5668_s16 = smov %s5681_s22 }
 0x2e8   : >> { %2698 = vst [vmem:[%s3997_s1 + $0x40] sm:$0xff] %v2697_v35  ;;  %v2703_v39 = vld [vmem:[%s4001_s3 + $0x58] sm:$0xff]  ;;  %2700 = vst [vmem:[%s3997_s1 + $0x48] sm:$0xff] %v2699_v37  ;;  %v2705_v40 = vld [vmem:[%s4001_s3 + $0x60] sm:$0xff] }
 0x2e9   : >> { %2702 = vst [vmem:[%s3997_s1 + $0x50] sm:$0xff] %v2701_v38  ;;  %2704 = vst [vmem:[%s3997_s1 + $0x58] sm:$0xff] %v2703_v39  ;;  %v2707_v41 = vld [vmem:[%s4001_s3 + $0x68] sm:$0xff]  ;;  %v2709_v42 = vld [vmem:[%s4001_s3 + $0x70] sm:$0xff]  ;;  %s5526_s30 = scalar_lea.vmem %s4807_s27, %s2810_s29 [#allocation3]   ;;  %s5529_s19 = scalar_lea.vmem %s5447_s26, %s2810_s29  }
 0x2ea   : >> { %2706 = vst [vmem:[%s3997_s1 + $0x60] sm:$0xff] %v2705_v40  ;;  %2708 = vst [vmem:[%s3997_s1 + $0x68] sm:$0xff] %v2707_v41  ;;  %v2711_v43 = vld [vmem:[%s4001_s3 + $0x78] sm:$0xff]  ;;  %v2713_v44 = vld [vmem:[%s4001_s3 + $0x80] sm:$0xff] }
 0x2eb   : >> { %2710 = vst [vmem:[%s3997_s1 + $0x70] sm:$0xff] %v2709_v42  ;;  %v2715_v45 = vld [vmem:[%s4001_s3 + $0x88] sm:$0xff]  ;;  %2712 = vst [vmem:[%s3997_s1 + $0x78] sm:$0xff] %v2711_v43  ;;  %v2717_v46 = vld [vmem:[%s4001_s3 + $0x90] sm:$0xff] }
 0x2ec   : >> { %2714 = vst [vmem:[%s3997_s1 + $0x80] sm:$0xff] %v2713_v44  ;;  %2716 = vst [vmem:[%s3997_s1 + $0x88] sm:$0xff] %v2715_v45  ;;  %v2719_v47 = vld [vmem:[%s4001_s3 + $0x98] sm:$0xff]  ;;  %v2721_v48 = vld [vmem:[%s4001_s3 + $0xa0] sm:$0xff] }
 0x2ed   : >> { %2718 = vst [vmem:[%s3997_s1 + $0x90] sm:$0xff] %v2717_v46  ;;  %2720 = vst [vmem:[%s3997_s1 + $0x98] sm:$0xff] %v2719_v47  ;;  %v2723_v49 = vld [vmem:[%s4001_s3 + $0xa8] sm:$0xff]  ;;  %v2725_v50 = vld [vmem:[%s4001_s3 + $0xb0] sm:$0xff] }
 0x2ee   : >> { %2722 = vst [vmem:[%s3997_s1 + $0xa0] sm:$0xff] %v2721_v48  ;;  %v2727_v55 = vld [vmem:[%s4001_s3 + $0xb8] sm:$0xff]  ;;  %2724 = vst [vmem:[%s3997_s1 + $0xa8] sm:$0xff] %v2723_v49  ;;  %v2729_v56 = vld [vmem:[%s4001_s3 + $0xc0] sm:$0xff] }
 0x2ef   : >> { %2726 = vst [vmem:[%s3997_s1 + $0xb0] sm:$0xff] %v2725_v50  ;;  %2728 = vst [vmem:[%s3997_s1 + $0xb8] sm:$0xff] %v2727_v55  ;;  %v2731_v57 = vld [vmem:[%s4001_s3 + $0xc8] sm:$0xff]  ;;  %v2733_v58 = vld [vmem:[%s4001_s3 + $0xd0] sm:$0xff] }
 0x2f0   : >> { %2730 = vst [vmem:[%s3997_s1 + $0xc0] sm:$0xff] %v2729_v56  ;;  %2732 = vst [vmem:[%s3997_s1 + $0xc8] sm:$0xff] %v2731_v57  ;;  %v2735_v59 = vld [vmem:[%s4001_s3 + $0xd8] sm:$0xff]  ;;  %v2737_v60 = vld [vmem:[%s4001_s3 + $0xe0] sm:$0xff] }
 0x2f1   : >> { %2734 = vst [vmem:[%s3997_s1 + $0xd0] sm:$0xff] %v2733_v58  ;;  %v2739_v61 = vld [vmem:[%s4001_s3 + $0xe8] sm:$0xff]  ;;  %2736 = vst [vmem:[%s3997_s1 + $0xd8] sm:$0xff] %v2735_v59  ;;  %v2741_v62 = vld [vmem:[%s4001_s3 + $0xf0] sm:$0xff] }
 0x2f2   : >> { %2738 = vst [vmem:[%s3997_s1 + $0xe0] sm:$0xff] %v2737_v60  ;;  %2740 = vst [vmem:[%s3997_s1 + $0xe8] sm:$0xff] %v2739_v61  ;;  %v2743_v63 = vld [vmem:[%s4001_s3 + $0xf8] sm:$0xff]  ;;  %v2745_v0 = vld [vmem:[%s4001_s3 + $0x100] sm:$0xff] }
 0x2f3   : >> { %2742 = vst [vmem:[%s3997_s1 + $0xf0] sm:$0xff] %v2741_v62  ;;  %2744 = vst [vmem:[%s3997_s1 + $0xf8] sm:$0xff] %v2743_v63  ;;  %v2747_v1 = vld [vmem:[%s4001_s3 + $0x108] sm:$0xff]  ;;  %v2749_v2 = vld [vmem:[%s4001_s3 + $0x110] sm:$0xff] }
 0x2f4   : >> { %2746 = vst [vmem:[%s3997_s1 + $0x100] sm:$0xff] %v2745_v0  ;;  %v2751_v3 = vld [vmem:[%s4001_s3 + $0x118] sm:$0xff]  ;;  %2748 = vst [vmem:[%s3997_s1 + $0x108] sm:$0xff] %v2747_v1  ;;  %v2753_v4 = vld [vmem:[%s4001_s3 + $0x120] sm:$0xff] }
 0x2f5   : >> { %2750 = vst [vmem:[%s3997_s1 + $0x110] sm:$0xff] %v2749_v2  ;;  %2752 = vst [vmem:[%s3997_s1 + $0x118] sm:$0xff] %v2751_v3  ;;  %v2755_v5 = vld [vmem:[%s4001_s3 + $0x128] sm:$0xff]  ;;  %v2757_v28 = vld [vmem:[%s4001_s3 + $0x130] sm:$0xff] }
 0x2f6   : >> { %2754 = vst [vmem:[%s3997_s1 + $0x120] sm:$0xff] %v2753_v4  ;;  %2756 = vst [vmem:[%s3997_s1 + $0x128] sm:$0xff] %v2755_v5  ;;  %v2759_v30 = vld [vmem:[%s4001_s3 + $0x138] sm:$0xff]  ;;  %v2761_v6 = vld [vmem:[%s4001_s3 + $0x140] sm:$0xff] }
 0x2f7   : >> { %2758 = vst [vmem:[%s3997_s1 + $0x130] sm:$0xff] %v2757_v28  ;;  %v2763_v7 = vld [vmem:[%s4001_s3 + $0x148] sm:$0xff]  ;;  %2760 = vst [vmem:[%s3997_s1 + $0x138] sm:$0xff] %v2759_v30  ;;  %v2765_v8 = vld [vmem:[%s4001_s3 + $0x150] sm:$0xff] }
 0x2f8   : >> { %2762 = vst [vmem:[%s3997_s1 + $0x140] sm:$0xff] %v2761_v6  ;;  %2764 = vst [vmem:[%s3997_s1 + $0x148] sm:$0xff] %v2763_v7  ;;  %v2767_v9 = vld [vmem:[%s4001_s3 + $0x158] sm:$0xff]  ;;  %v2769_v10 = vld [vmem:[%s4001_s3 + $0x160] sm:$0xff] }
 0x2f9   : >> { %2766 = vst [vmem:[%s3997_s1 + $0x150] sm:$0xff] %v2765_v8  ;;  %2768 = vst [vmem:[%s3997_s1 + $0x158] sm:$0xff] %v2767_v9  ;;  %v2771_v11 = vld [vmem:[%s4001_s3 + $0x168] sm:$0xff]  ;;  %v2773_v12 = vld [vmem:[%s4001_s3 + $0x170] sm:$0xff] }
 0x2fa   : >> { %2770 = vst [vmem:[%s3997_s1 + $0x160] sm:$0xff] %v2769_v10  ;;  %v2775_v13 = vld [vmem:[%s4001_s3 + $0x178] sm:$0xff]  ;;  %2772 = vst [vmem:[%s3997_s1 + $0x168] sm:$0xff] %v2771_v11  ;;  %v2777_v51 = vld [vmem:[%s4001_s3 + $0x180] sm:$0xff] }
 0x2fb   : >> { %2774 = vst [vmem:[%s3997_s1 + $0x170] sm:$0xff] %v2773_v12  ;;  %2776 = vst [vmem:[%s3997_s1 + $0x178] sm:$0xff] %v2775_v13  ;;  %v2779_v27 = vld [vmem:[%s4001_s3 + $0x188] sm:$0xff]  ;;  %v2781_v14 = vld [vmem:[%s4001_s3 + $0x190] sm:$0xff] }
 0x2fc   : >> { %2778 = vst [vmem:[%s3997_s1 + $0x180] sm:$0xff] %v2777_v51  ;;  %2780 = vst [vmem:[%s3997_s1 + $0x188] sm:$0xff] %v2779_v27  ;;  %v2783_v15 = vld [vmem:[%s4001_s3 + $0x198] sm:$0xff]  ;;  %v2785_v16 = vld [vmem:[%s4001_s3 + $0x1a0] sm:$0xff] }
 0x2fd   : >> { %2782 = vst [vmem:[%s3997_s1 + $0x190] sm:$0xff] %v2781_v14  ;;  %v2787_v17 = vld [vmem:[%s4001_s3 + $0x1a8] sm:$0xff]  ;;  %2784 = vst [vmem:[%s3997_s1 + $0x198] sm:$0xff] %v2783_v15  ;;  %v2789_v18 = vld [vmem:[%s4001_s3 + $0x1b0] sm:$0xff]  ;;  %2677 = sbr.rel (!%p2674_p6) target bundleno = 739 (0x2e3), region = 240 }
 0x2fe   : >> { %2786 = vst [vmem:[%s3997_s1 + $0x1a0] sm:$0xff] %v2785_v16  ;;  %2788 = vst [vmem:[%s3997_s1 + $0x1a8] sm:$0xff] %v2787_v17  ;;  %v2791_v21 = vld [vmem:[%s4001_s3 + $0x1b8] sm:$0xff]  ;;  %v2793_v22 = vld [vmem:[%s4001_s3 + $0x1c0] sm:$0xff] }
 0x2ff   : >> { %2790 = vst [vmem:[%s3997_s1 + $0x1b0] sm:$0xff] %v2789_v18  ;;  %2792 = vst [vmem:[%s3997_s1 + $0x1b8] sm:$0xff] %v2791_v21  ;;  %v2795_v20 = vld [vmem:[%s4001_s3 + $0x1c8] sm:$0xff]  ;;  %v2797_v23 = vld [vmem:[%s4001_s3 + $0x1d0] sm:$0xff] }
 0x300   : >> { %2794 = vst [vmem:[%s3997_s1 + $0x1c0] sm:$0xff] %v2793_v22  ;;  %v2799_v24 = vld [vmem:[%s4001_s3 + $0x1d8] sm:$0xff]  ;;  %2796 = vst [vmem:[%s3997_s1 + $0x1c8] sm:$0xff] %v2795_v20  ;;  %v2801_v25 = vld [vmem:[%s4001_s3 + $0x1e0] sm:$0xff] }
 0x301   : >> { %2798 = vst [vmem:[%s3997_s1 + $0x1d0] sm:$0xff] %v2797_v23  ;;  %2800 = vst [vmem:[%s3997_s1 + $0x1d8] sm:$0xff] %v2799_v24  ;;  %v2803_v26 = vld [vmem:[%s4001_s3 + $0x1e8] sm:$0xff]  ;;  %v2805_v52 = vld [vmem:[%s4001_s3 + $0x1f0] sm:$0xff]  ;;  %s5667_s3 = smov %s5526_s30 }
 0x302   : >> { %2802 = vst [vmem:[%s3997_s1 + $0x1e0] sm:$0xff] %v2801_v25  ;;  %2804 = vst [vmem:[%s3997_s1 + $0x1e8] sm:$0xff] %v2803_v26 }
 0x303   : >> { %2806 = vst [vmem:[%s3997_s1 + $0x1f0] sm:$0xff] %v2805_v52  ;;  %s5666_s1 = smov %s5529_s19 }
 0x304 PF: > { %3873 = sdivrem.u32 %s5679_s11, 63 }
 0x305   : > { %s3043_s12 = smul.u32 504, %s5453_s0 }
 0x307   : > { %s2818_s18 = scalar_lea.vmem %s4807_s27, %s3043_s12 [#allocation3]   ;;  %s2820_s15 = scalar_lea.vmem %s5447_s26, %s3043_s12  }
 0x30d   : > { %s3874_s24 = spop.drf %3873 }
 0x30e   : > { %p3045_p7 = scmp.le.s32.totalorder %s3874_s24, 0 }
 0x30f   : > { %s4011_s25 = smov (!%p3045_p7), %s2820_s15   ;;  %s4015_s13 = smov (!%p3045_p7), %s2818_s18  }
 0x310   : > { %2978 = sbr.rel (%p3045_p7) target bundleno = 801 (0x321), region = 245  ;;  %s4019_s23 = smov (!%p3045_p7), 0  }
 0x311   : > { %s4023_s28 = smov (!%p3045_p7), 0  }
 0x317 LB: >> { %v2830_v53 = vld [vmem:[%s4017_s13] sm:$0xff]  ;;  %s2832_s2 = sadd.s32 1, %s4021_s23  ;;  %s2824_s28 = sadd.s32 1, %s4025_s28   ;;  %s4025_s28 = sphi %s4023_s28, %s2824_s28   ;;  %s4021_s23 = sphi %s4019_s23, %s4020_s23   ;;  %s4017_s13 = sphi %s4015_s13, %s2837_s13   ;;  %s4013_s25 = sphi %s4011_s25, %s2838_s25  }
 0x318   : >> { %2831 = vst [vmem:[%s4013_s25] sm:$0xff] %v2830_v53  ;;  %p2833_p8 = scmp.ge.s32.totalorder %s2832_s2, %s3874_s24  ;;  %p2823_p9 = scmp.ge.s32.totalorder %s2824_s28, %s3874_s24 }
 0x31a   : >> { %s5683_s2 = smov (%p2833_p8, %s2832_s2), 0  ;;  %2826 = sbr.rel (!%p2823_p9) target bundleno = 791 (0x317), region = 251 }
 0x31b   : >> { %s3046_s27 = sshll.u32 %s5683_s2, 3  ;;  %s4020_s23 = smov %s5683_s2  }
 0x31c   : >> { %s2837_s13 = scalar_lea.vmem %s2818_s18, %s3046_s27 [#allocation3]   ;;  %s2838_s25 = scalar_lea.vmem %s2820_s15, %s3046_s27  }
 0x321 PF: > { %p18_p10 = scmp.ge.s32.totalorder %s4101_s17, 4   ;;  %s5669_s13 = smov %s3957_s14 }
 0x322   : > { %s5670_s14 = smov %s4109_s20  ;;  %s5671_s15 = smov %s4101_s17 }
 0x323   :  { %20 = sbr.rel (!%p18_p10) target bundleno = 7 (0x7), region = 262 }

</bundles_post_ra>
